<compile_context>
chip_gen: v7x
topology: tpu7x:2x2x1
jax: 0.10.0
libtpu: 0.0.40
codegen_flags: <defaults>
</compile_context>

<pallas_src>
import math
from functools import partial

import jax
import jax.numpy as jnp
from jax.experimental import pallas as pl
from jax.experimental.pallas import tpu as pltpu


# (py, ry) pairs per row offset ro = py + ry (identical table for columns).
_OFF2PHASES = {0: ((0, 0),), 1: ((0, 1), (1, 0)), 2: ((1, 1),)}

# For phase coordinate p and 2x2-tap coordinate r, the 3x3-kernel taps (in the
# upsampled conv) that collapse onto the original-pixel read at offset p + r.
_TAPS_FOR = {(0, 0): (0,), (0, 1): (1, 2), (1, 0): (0, 1), (1, 1): (2,)}


def _build_groups():
    """9 (row-offset, col-offset) groups; each lists its (phase, tap) members.

    The member order fixes BOTH the column order of the packed weight matrix
    and the order the kernel unpacks the wide-dot results — kept in sync by
    construction (both iterate _GROUPS).
    """
    groups = []
    for ro in range(3):
        for co in range(3):
            members = tuple(
                (2 * py + px, 2 * ry + rx)
                for (py, ry) in _OFF2PHASES[ro]
                for (px, rx) in _OFF2PHASES[co])
            groups.append((ro, co, members))
    return tuple(groups)


_GROUPS = _build_groups()
assert sum(len(m) for _, _, m in _GROUPS) == 16


def _subpixel_conv_kernel(wp2, xflat_ref, w_ref, b_ref, o_ref):
    """One (batch, row-tile) grid step.

    wp2       : static int, W + 2 (padded row length of the original image)
    xflat_ref : (1, (H+3)*(W+2), Cp)   flattened zero-padded ORIGINAL image
    w_ref     : (Cp, 16*Cp)            packed effective 2x2 phase weights
    b_ref     : (1, Cp)                f32 bias
    o_ref     : (1, 2, 2, TH*(W+2), Cp) phase-major output tile (compute dtype)
    """
    cp = o_ref.shape[4]
    lw = o_ref.shape[3]                               # TH * (W+2) rows per tile
    # First flattened row of this tile's band (multiple of 8 by construction).
    row0 = pl.multiple_of(pl.program_id(1) * lw, 8)

    # Bias-initialised f32 accumulators, one per subpixel phase (broadcast once,
    # hoisted out of the group loop).
    bias_row = b_ref[0, :].astype(jnp.float32)
    acc0 = jnp.broadcast_to(bias_row[None, :], (lw, cp))
    acc = [acc0, acc0, acc0, acc0]

    # 9 wide MXU dots, one per (row-offset, col-offset) group.  Each LHS patch
    # is a contiguous flat window of the padded image (no shifted VMEM buffers);
    # the 2 junk columns per logical row are trimmed in the wrapper.
    goff = 0
    for ro, co, members in _GROUPS:
        k = len(members)
        patch = xflat_ref[0, pl.ds(row0 + ro * wp2 + co, lw), :]      # (lw, Cp)
        res = jnp.dot(patch, w_ref[:, goff:goff + k * cp],
                      preferred_element_type=jnp.float32)             # (lw, k*Cp)
        for j, (ph, _tap) in enumerate(members):
            acc[ph] = acc[ph] + res[:, j * cp:(j + 1) * cp]           # lane-aligned
        goff += k * cp

    for ph in range(4):
        o_ref[0, ph // 2, ph % 2, :, :] = acc[ph].astype(o_ref.dtype)


def _packed_phase_weights(weight_oihw, c_pad):
    """Fold the nearest-2x upsample into the 3x3 conv and pack for wide dots.

    Returns a (c_pad, 16*c_pad) matrix: for each of the 9 (row-offset,
    col-offset) groups in _GROUPS order, the member (phase, tap) Cin x Cout
    blocks sit consecutively along the columns (group widths 1/2/4 * c_pad).
    Tap pre-sums are exact (distributivity) and done in f32 before any cast.
    """
    c = weight_oihw.shape[0]
    w = jnp.transpose(weight_oihw, (2, 3, 1, 0)).astype(jnp.float32)  # (3,3,Ci,Co)
    weff = {}
    for py in range(2):
        for px in range(2):
            for ry in range(2):
                for rx in range(2):
                    wsum = None
                    for kh in _TAPS_FOR[(py, ry)]:
                        for kw in _TAPS_FOR[(px, rx)]:
                            term = w[kh, kw]
                            wsum = term if wsum is None else wsum + term
                    weff[(2 * py + px, 2 * ry + rx)] = jnp.pad(
                        wsum, ((0, c_pad - c), (0, c_pad - c)))
    cols = [weff[(ph, tap)] for _, _, members in _GROUPS for (ph, tap) in members]
    return jnp.concatenate(cols, axis=1)                    # (c_pad, 16*c_pad)


def _usable_vmem_bytes():
    """Per-core VMEM capacity minus headroom for Mosaic-internal scratch."""
    cap = 128 * 2**20
    try:
        cap = int(pltpu.get_tpu_info().vmem_capacity_bytes)
    except Exception:
        pass
    # ~12 MiB headroom: v7x (64 MiB) -> ~52 MiB usable, v5e/v6e (128) -> 116 MiB.
    return max(cap - 12 * 2**20, 24 * 2**20)


def _step_footprint(th, H, W, cp, in_isz, out_isz):
    """Approximate per-grid-step VMEM live set (double buffers included)."""
    wp2 = W + 2
    lw = th * wp2
    in_block = (H + 3) * wp2 * cp * in_isz            # resident padded image
    w_block = 16 * cp * cp * in_isz                    # packed weights
    b_block = cp * 4
    out_block = 4 * lw * cp * out_isz                  # phase-major output tile
    acc = 4 * lw * cp * 4                              # f32 accumulators
    live = lw * cp * in_isz + 4 * lw * cp * 4          # patch + widest dot result
    return 2 * (in_block + w_block + b_block + out_block) + acc + live


def _valid_row_tile(th, H, W):
    return H % th == 0 and (th == H or (th * (W + 2)) % 8 == 0)


def _pick_row_tile(N, H, W, cp, in_isz, out_isz, budget):
    cands = [d for d in range(1, H + 1) if _valid_row_tile(d, H, W)]
    # v7x has 2 TensorCores: when N == 1 keep >= 2 steps on a parallel axis.
    if N == 1 and H > 1:
        halved = [d for d in cands if d <= H // 2]
        if halved:
            cands = halved
    fitting = [d for d in cands
               if _step_footprint(d, H, W, cp, in_isz, out_isz) <= budget]
    if not fitting:
        # TODO(synk): also split the W axis for extreme H*W*C configurations.
        smallest = min(cands)
        raise ValueError(
            "UpSample Pallas kernel: no row tile fits the VMEM budget "
            f"(H={H}, W={W}, Cpad={cp}; smallest footprint "
            f"{_step_footprint(smallest, H, W, cp, in_isz, out_isz)} B > "
            f"budget {budget} B).")
    return max(fitting)


def upsample_forward(x_nchw, weight_oihw, bias, temb=None, *,
                     compute_dtype=jnp.bfloat16, row_tile=None,
                     out_dtype=jnp.float32):
    """Equivalent of UpSample.forward (temb accepted and ignored, as in PyTorch).

    x_nchw: (N, C, H, W), weight_oihw: (C, C, 3, 3), bias: (C,).
    Returns (N, C, 2H, 2W) in out_dtype (f32 by default, like the nn.Module).
    """
    del temb                                    # the PyTorch module ignores it too
    N, C, H, W = x_nchw.shape
    assert weight_oihw.shape == (C, C, 3, 3) and bias.shape == (C,)

    in_isz = jnp.dtype(compute_dtype).itemsize
    out_isz = in_isz                            # kernel stores in compute dtype
    cp = ((C + 127) // 128) * 128               # lane-dense channel count
    wp2 = W + 2
    rows_flat = (H + 3) * wp2

    # NCHW -> NHWC (C on the lane axis); zero-pad rows by (1, 2) [the extra
    # bottom row lets every tap read a contiguous flat window], cols by (1, 1),
    # channels up to cp.  Flattening (H+3, W+2) into one axis is a free XLA
    # reshape, so the kernel never relayouts the band.
    # TODO(synk): keep activations NHWC across the whole network (and/or use
    # allow_input_fusion) to drop this NCHW->NHWC prologue pass entirely.
    x = jnp.transpose(x_nchw, (0, 2, 3, 1))
    xp = jnp.pad(x, ((0, 0), (1, 2), (1, 1), (0, cp - C))).astype(compute_dtype)
    xflat = xp.reshape(N, rows_flat, cp)

    w_packed = _packed_phase_weights(weight_oihw, cp).astype(compute_dtype)
    b = jnp.pad(bias.astype(jnp.float32), (0, cp - C)).reshape(1, cp)

    budget = _usable_vmem_bytes()
    if row_tile is not None and _valid_row_tile(row_tile, H, W):
        th = row_tile
    else:
        th = _pick_row_tile(N, H, W, cp, in_isz, out_isz, budget)
    lw = th * wp2
    grid = (N, H // th)

    footprint = _step_footprint(th, H, W, cp, in_isz, out_isz)
    vmem_limit = int(min(budget, max(32 * 2**20, int(1.5 * footprint))))

    def run(single_buffer_consts):
        # Grid-constant weight/bias blocks: single-buffer them to reclaim VMEM.
        const_kw = {"pipeline_mode": pl.Buffered(1)} if single_buffer_consts else {}
        grid_spec = pltpu.PrefetchScalarGridSpec(
            num_scalar_prefetch=0,
            grid=grid,
            in_specs=[
                # Whole flattened padded image per batch element stays resident
                # in VMEM across the row-tile axis (block index independent of t).
                pl.BlockSpec((1, rows_flat, cp), lambda n, t: (n, 0, 0)),
                pl.BlockSpec((cp, 16 * cp), lambda n, t: (0, 0), **const_kw),
                pl.BlockSpec((1, cp), lambda n, t: (0, 0), **const_kw),
            ],
            # (On v5e/v6e, pipeline_mode=pl.Buffered(3) here can hide exposed
            # output-writeback DMA if profiling shows it; skipped on v7x.)
            out_specs=pl.BlockSpec((1, 2, 2, lw, cp),
                                   lambda n, t: (n, 0, 0, t, 0)),
        )
        return pl.pallas_call(
            partial(_subpixel_conv_kernel, wp2),
            out_shape=jax.ShapeDtypeStruct((N, 2, 2, H * wp2, cp), compute_dtype),
            grid_spec=grid_spec,
            compiler_params=pltpu.CompilerParams(
                dimension_semantics=("parallel", "parallel"),
                vmem_limit_bytes=vmem_limit),
        )(xflat, w_packed, b)

    out_phase = None
    if hasattr(pl, "Buffered"):
        try:
            out_phase = run(True)
        except Exception:   # pipeline_mode unsupported on this version: fall back
            out_phase = None
    if out_phase is None:
        out_phase = run(False)

    # (N, 2, 2, H*(W+2), Cp) -> (N, C, 2H, 2W): trim junk columns / channel
    # padding and fold the subpixel interleave into the single NCHW transpose
    # this PyTorch-layout API requires (stores were compute-dtype, so on the
    # bf16 path this pass reads half the bytes of an f32 layout).
    out = out_phase.reshape(N, 2, 2, H, wp2, cp)[:, :, :, :, :W, :C]
    out = jnp.transpose(out, (0, 5, 3, 1, 4, 2))        # (N, C, H, 2, W, 2)
    return out.reshape(N, C, 2 * H, 2 * W).astype(out_dtype)


def make_params(in_ch, key):
    """Deterministic xavier_uniform_ weight + zero bias (as in initialize())."""
    fan_in = in_ch * 3 * 3
    fan_out = in_ch * 3 * 3
    bound = math.sqrt(6.0 / (fan_in + fan_out))
    weight = jax.random.uniform(key, (in_ch, in_ch, 3, 3),
                                minval=-bound, maxval=bound,
                                dtype=jnp.float32)      # (Cout, Cin, kh, kw)
    bias = jnp.zeros((in_ch,), jnp.float32)
    return weight, bias


def _reference(x_nchw, weight_oihw, bias):
    """Pure-JAX reference (nearest 2x upsample + XLA conv) for validation."""
    x = jnp.repeat(jnp.repeat(x_nchw, 2, axis=2), 2, axis=3)
    y = jax.lax.conv_general_dilated(
        x, weight_oihw, window_strides=(1, 1), padding=((1, 1), (1, 1)),
        dimension_numbers=("NCHW", "OIHW", "NCHW"))
    return y + bias[None, :, None, None]


if __name__ == "__main__":
    key = jax.random.PRNGKey(0)
    kx, kw, kb = jax.random.split(key, 3)

    N, C, H, W = 2, 4, 16, 16
    x = jax.random.normal(kx, (N, C, H, W), dtype=jnp.float32)
    temb = jax.random.normal(key, (N, 32), dtype=jnp.float32)   # unused, as in PyTorch

    weight, bias = make_params(C, kw)                  # xavier weight, zero bias
    bias_rnd = 0.1 * jax.random.normal(kb, (C,), dtype=jnp.float32)

    # 1) f32 compute path, explicit row tiling (grid = (2, 2)) and a nonzero
    #    bias to exercise the bias-initialized accumulators: tight check.
    out_f32 = upsample_forward(x, weight, bias_rnd, temb,
                               compute_dtype=jnp.float32, row_tile=8)
    out_f32 = jax.block_until_ready(out_f32)
    ref_f32 = _reference(x, weight, bias_rnd)
    assert out_f32.shape == (N, C, 2 * H, 2 * W), out_f32.shape
    assert jnp.allclose(out_f32, ref_f32, rtol=1e-4, atol=1e-4), \
        float(jnp.max(jnp.abs(out_f32 - ref_f32)))

    # 2) Production path: bf16 MXU inputs + bf16 stores, f32 accumulation,
    #    auto row tile, module-default zero bias: loose check (bf16 rounding).
    out_bf16 = upsample_forward(x, weight, bias, temb)
    out_bf16 = jax.block_until_ready(out_bf16)
    ref = _reference(x, weight, bias)
    assert out_bf16.shape == (N, C, 2 * H, 2 * W), out_bf16.shape
    assert jnp.allclose(out_bf16, ref, rtol=5e-2, atol=5e-2), \
        float(jnp.max(jnp.abs(out_bf16 - ref)))

    print("KERNEL_OK")
</pallas_src>

<mosaic_0001>
module attributes {stable_mosaic.version = 11 : i64} {
  func.func @_subpixel_conv_kernel(%arg0: i32, %arg1: i32, %arg2: memref<1x342x128xf32, #tpu.memory_space<vmem>>, %arg3: memref<128x2048xf32, #tpu.memory_space<vmem>>, %arg4: memref<1x128xf32, #tpu.memory_space<vmem>>, %arg5: memref<1x2x2x144x128xf32, #tpu.memory_space<vmem>>) attributes {dimension_semantics = [#tpu.dimension_semantics<parallel>, #tpu.dimension_semantics<parallel>], iteration_bounds = array<i64: 2, 2>, scalar_prefetch = 0 : i64, scratch_operands = 0 : i64, tpu.core_type = #tpu.core_type<tc>, window_params = [{transform_indices = @transform_0, window_bounds = array<i64: 1, 342, 128>}, {pipeline_mode = #tpu.pipeline_mode<synchronous>, transform_indices = @transform_1, window_bounds = array<i64: 128, 2048>}, {pipeline_mode = #tpu.pipeline_mode<synchronous>, transform_indices = @transform_2, window_bounds = array<i64: 1, 128>}, {transform_indices = @transform_3, window_bounds = array<i64: 1, 2, 2, 144, 128>}]} {
    %c144_i32 = arith.constant 144 : i32
    %0 = arith.muli %arg1, %c144_i32 : i32
    %1 = tpu.assume_multiple %0, 8 : i32
    %c0 = arith.constant 0 : index
    %c0_0 = arith.constant 0 : index
    %2 = vector.load %arg4[%c0, %c0_0] : memref<1x128xf32, #tpu.memory_space<vmem>>, vector<1x128xf32>
    %3 = vector.shape_cast %2 : vector<1x128xf32> to vector<128xf32>
    %4 = vector.shape_cast %3 : vector<128xf32> to vector<1x128xf32>
    %5 = vector.shape_cast %4 : vector<1x128xf32> to vector<1x128xf32>
    %6 = vector.broadcast %5 : vector<1x128xf32> to vector<144x128xf32>
    %c0_i32 = arith.constant 0 : i32
    %7 = arith.addi %1, %c0_i32 : i32
    %c0_i32_1 = arith.constant 0 : i32
    %8 = arith.addi %7, %c0_i32_1 : i32
    %c0_2 = arith.constant 0 : index
    %9 = arith.index_cast %8 : i32 to index
    %c0_3 = arith.constant 0 : index
    %10 = vector.load %arg2[%c0_2, %9, %c0_3] : memref<1x342x128xf32, #tpu.memory_space<vmem>>, vector<1x144x128xf32>
    %11 = vector.shape_cast %10 : vector<1x144x128xf32> to vector<144x128xf32>
    %c0_4 = arith.constant 0 : index
    %c0_5 = arith.constant 0 : index
    %12 = vector.load %arg3[%c0_4, %c0_5] : memref<128x2048xf32, #tpu.memory_space<vmem>>, vector<128x128xf32>
    %cst = arith.constant dense<0.000000e+00> : vector<144x128xf32>
    %13 = tpu.matmul %11, %12, %cst {dimension_numbers = #tpu.dot_dimension_numbers<[1], [0], [0], [1], [0, 0, 1, 1], [], []>} : vector<144x128xf32>, vector<128x128xf32>, vector<144x128xf32> -> vector<144x128xf32>
    %14 = arith.addf %6, %13 : vector<144x128xf32>
    %c0_i32_6 = arith.constant 0 : i32
    %15 = arith.addi %1, %c0_i32_6 : i32
    %c1_i32 = arith.constant 1 : i32
    %16 = arith.addi %15, %c1_i32 : i32
    %c0_7 = arith.constant 0 : index
    %17 = arith.index_cast %16 : i32 to index
    %c0_8 = arith.constant 0 : index
    %18 = vector.load %arg2[%c0_7, %17, %c0_8] : memref<1x342x128xf32, #tpu.memory_space<vmem>>, vector<1x144x128xf32>
    %19 = vector.shape_cast %18 : vector<1x144x128xf32> to vector<144x128xf32>
    %c0_9 = arith.constant 0 : index
    %c128 = arith.constant 128 : index
    %20 = vector.load %arg3[%c0_9, %c128] : memref<128x2048xf32, #tpu.memory_space<vmem>>, vector<128x256xf32>
    %cst_10 = arith.constant dense<0.000000e+00> : vector<144x256xf32>
    %21 = tpu.matmul %19, %20, %cst_10 {dimension_numbers = #tpu.dot_dimension_numbers<[1], [0], [0], [1], [0, 0, 1, 1], [], []>} : vector<144x128xf32>, vector<128x256xf32>, vector<144x256xf32> -> vector<144x256xf32>
    %22 = vector.extract_strided_slice %21 {offsets = [0, 0], sizes = [144, 128], strides = [1, 1]} : vector<144x256xf32> to vector<144x128xf32>
    %23 = arith.addf %14, %22 : vector<144x128xf32>
    %24 = vector.extract_strided_slice %21 {offsets = [0, 128], sizes = [144, 128], strides = [1, 1]} : vector<144x256xf32> to vector<144x128xf32>
    %25 = arith.addf %6, %24 : vector<144x128xf32>
    %c0_i32_11 = arith.constant 0 : i32
    %26 = arith.addi %1, %c0_i32_11 : i32
    %c2_i32 = arith.constant 2 : i32
    %27 = arith.addi %26, %c2_i32 : i32
    %c0_12 = arith.constant 0 : index
    %28 = arith.index_cast %27 : i32 to index
    %c0_13 = arith.constant 0 : index
    %29 = vector.load %arg2[%c0_12, %28, %c0_13] : memref<1x342x128xf32, #tpu.memory_space<vmem>>, vector<1x144x128xf32>
    %30 = vector.shape_cast %29 : vector<1x144x128xf32> to vector<144x128xf32>
    %c0_14 = arith.constant 0 : index
    %c384 = arith.constant 384 : index
    %31 = vector.load %arg3[%c0_14, %c384] : memref<128x2048xf32, #tpu.memory_space<vmem>>, vector<128x128xf32>
    %cst_15 = arith.constant dense<0.000000e+00> : vector<144x128xf32>
    %32 = tpu.matmul %30, %31, %cst_15 {dimension_numbers = #tpu.dot_dimension_numbers<[1], [0], [0], [1], [0, 0, 1, 1], [], []>} : vector<144x128xf32>, vector<128x128xf32>, vector<144x128xf32> -> vector<144x128xf32>
    %33 = arith.addf %25, %32 : vector<144x128xf32>
    %c18_i32 = arith.constant 18 : i32
    %34 = arith.addi %1, %c18_i32 : i32
    %c0_i32_16 = arith.constant 0 : i32
    %35 = arith.addi %34, %c0_i32_16 : i32
    %c0_17 = arith.constant 0 : index
    %36 = arith.index_cast %35 : i32 to index
    %c0_18 = arith.constant 0 : index
    %37 = vector.load %arg2[%c0_17, %36, %c0_18] : memref<1x342x128xf32, #tpu.memory_space<vmem>>, vector<1x144x128xf32>
    %38 = vector.shape_cast %37 : vector<1x144x128xf32> to vector<144x128xf32>
    %c0_19 = arith.constant 0 : index
    %c512 = arith.constant 512 : index
    %39 = vector.load %arg3[%c0_19, %c512] : memref<128x2048xf32, #tpu.memory_space<vmem>>, vector<128x256xf32>
    %cst_20 = arith.constant dense<0.000000e+00> : vector<144x256xf32>
    %40 = tpu.matmul %38, %39, %cst_20 {dimension_numbers = #tpu.dot_dimension_numbers<[1], [0], [0], [1], [0, 0, 1, 1], [], []>} : vector<144x128xf32>, vector<128x256xf32>, vector<144x256xf32> -> vector<144x256xf32>
    %41 = vector.extract_strided_slice %40 {offsets = [0, 0], sizes = [144, 128], strides = [1, 1]} : vector<144x256xf32> to vector<144x128xf32>
    %42 = arith.addf %23, %41 : vector<144x128xf32>
    %43 = vector.extract_strided_slice %40 {offsets = [0, 128], sizes = [144, 128], strides = [1, 1]} : vector<144x256xf32> to vector<144x128xf32>
    %44 = arith.addf %6, %43 : vector<144x128xf32>
    %c18_i32_21 = arith.constant 18 : i32
    %45 = arith.addi %1, %c18_i32_21 : i32
    %c1_i32_22 = arith.constant 1 : i32
    %46 = arith.addi %45, %c1_i32_22 : i32
    %c0_23 = arith.constant 0 : index
    %47 = arith.index_cast %46 : i32 to index
    %c0_24 = arith.constant 0 : index
    %48 = vector.load %arg2[%c0_23, %47, %c0_24] : memref<1x342x128xf32, #tpu.memory_space<vmem>>, vector<1x144x128xf32>
    %49 = vector.shape_cast %48 : vector<1x144x128xf32> to vector<144x128xf32>
    %c0_25 = arith.constant 0 : index
    %c768 = arith.constant 768 : index
    %50 = vector.load %arg3[%c0_25, %c768] : memref<128x2048xf32, #tpu.memory_space<vmem>>, vector<128x512xf32>
    %cst_26 = arith.constant dense<0.000000e+00> : vector<144x512xf32>
    %51 = tpu.matmul %49, %50, %cst_26 {dimension_numbers = #tpu.dot_dimension_numbers<[1], [0], [0], [1], [0, 0, 1, 1], [], []>} : vector<144x128xf32>, vector<128x512xf32>, vector<144x512xf32> -> vector<144x512xf32>
    %52 = vector.extract_strided_slice %51 {offsets = [0, 0], sizes = [144, 128], strides = [1, 1]} : vector<144x512xf32> to vector<144x128xf32>
    %53 = arith.addf %42, %52 : vector<144x128xf32>
    %54 = vector.extract_strided_slice %51 {offsets = [0, 128], sizes = [144, 128], strides = [1, 1]} : vector<144x512xf32> to vector<144x128xf32>
    %55 = arith.addf %33, %54 : vector<144x128xf32>
    %56 = vector.extract_strided_slice %51 {offsets = [0, 256], sizes = [144, 128], strides = [1, 1]} : vector<144x512xf32> to vector<144x128xf32>
    %57 = arith.addf %44, %56 : vector<144x128xf32>
    %58 = vector.extract_strided_slice %51 {offsets = [0, 384], sizes = [144, 128], strides = [1, 1]} : vector<144x512xf32> to vector<144x128xf32>
    %59 = arith.addf %6, %58 : vector<144x128xf32>
    %c18_i32_27 = arith.constant 18 : i32
    %60 = arith.addi %1, %c18_i32_27 : i32
    %c2_i32_28 = arith.constant 2 : i32
    %61 = arith.addi %60, %c2_i32_28 : i32
    %c0_29 = arith.constant 0 : index
    %62 = arith.index_cast %61 : i32 to index
    %c0_30 = arith.constant 0 : index
    %63 = vector.load %arg2[%c0_29, %62, %c0_30] : memref<1x342x128xf32, #tpu.memory_space<vmem>>, vector<1x144x128xf32>
    %64 = vector.shape_cast %63 : vector<1x144x128xf32> to vector<144x128xf32>
    %c0_31 = arith.constant 0 : index
    %c1280 = arith.constant 1280 : index
    %65 = vector.load %arg3[%c0_31, %c1280] : memref<128x2048xf32, #tpu.memory_space<vmem>>, vector<128x256xf32>
    %cst_32 = arith.constant dense<0.000000e+00> : vector<144x256xf32>
    %66 = tpu.matmul %64, %65, %cst_32 {dimension_numbers = #tpu.dot_dimension_numbers<[1], [0], [0], [1], [0, 0, 1, 1], [], []>} : vector<144x128xf32>, vector<128x256xf32>, vector<144x256xf32> -> vector<144x256xf32>
    %67 = vector.extract_strided_slice %66 {offsets = [0, 0], sizes = [144, 128], strides = [1, 1]} : vector<144x256xf32> to vector<144x128xf32>
    %68 = arith.addf %55, %67 : vector<144x128xf32>
    %69 = vector.extract_strided_slice %66 {offsets = [0, 128], sizes = [144, 128], strides = [1, 1]} : vector<144x256xf32> to vector<144x128xf32>
    %70 = arith.addf %59, %69 : vector<144x128xf32>
    %c36_i32 = arith.constant 36 : i32
    %71 = arith.addi %1, %c36_i32 : i32
    %c0_i32_33 = arith.constant 0 : i32
    %72 = arith.addi %71, %c0_i32_33 : i32
    %c0_34 = arith.constant 0 : index
    %73 = arith.index_cast %72 : i32 to index
    %c0_35 = arith.constant 0 : index
    %74 = vector.load %arg2[%c0_34, %73, %c0_35] : memref<1x342x128xf32, #tpu.memory_space<vmem>>, vector<1x144x128xf32>
    %75 = vector.shape_cast %74 : vector<1x144x128xf32> to vector<144x128xf32>
    %c0_36 = arith.constant 0 : index
    %c1536 = arith.constant 1536 : index
    %76 = vector.load %arg3[%c0_36, %c1536] : memref<128x2048xf32, #tpu.memory_space<vmem>>, vector<128x128xf32>
    %cst_37 = arith.constant dense<0.000000e+00> : vector<144x128xf32>
    %77 = tpu.matmul %75, %76, %cst_37 {dimension_numbers = #tpu.dot_dimension_numbers<[1], [0], [0], [1], [0, 0, 1, 1], [], []>} : vector<144x128xf32>, vector<128x128xf32>, vector<144x128xf32> -> vector<144x128xf32>
    %78 = arith.addf %57, %77 : vector<144x128xf32>
    %c36_i32_38 = arith.constant 36 : i32
    %79 = arith.addi %1, %c36_i32_38 : i32
    %c1_i32_39 = arith.constant 1 : i32
    %80 = arith.addi %79, %c1_i32_39 : i32
    %c0_40 = arith.constant 0 : index
    %81 = arith.index_cast %80 : i32 to index
    %c0_41 = arith.constant 0 : index
    %82 = vector.load %arg2[%c0_40, %81, %c0_41] : memref<1x342x128xf32, #tpu.memory_space<vmem>>, vector<1x144x128xf32>
    %83 = vector.shape_cast %82 : vector<1x144x128xf32> to vector<144x128xf32>
    %c0_42 = arith.constant 0 : index
    %c1664 = arith.constant 1664 : index
    %84 = vector.load %arg3[%c0_42, %c1664] : memref<128x2048xf32, #tpu.memory_space<vmem>>, vector<128x256xf32>
    %cst_43 = arith.constant dense<0.000000e+00> : vector<144x256xf32>
    %85 = tpu.matmul %83, %84, %cst_43 {dimension_numbers = #tpu.dot_dimension_numbers<[1], [0], [0], [1], [0, 0, 1, 1], [], []>} : vector<144x128xf32>, vector<128x256xf32>, vector<144x256xf32> -> vector<144x256xf32>
    %86 = vector.extract_strided_slice %85 {offsets = [0, 0], sizes = [144, 128], strides = [1, 1]} : vector<144x256xf32> to vector<144x128xf32>
    %87 = arith.addf %78, %86 : vector<144x128xf32>
    %88 = vector.extract_strided_slice %85 {offsets = [0, 128], sizes = [144, 128], strides = [1, 1]} : vector<144x256xf32> to vector<144x128xf32>
    %89 = arith.addf %70, %88 : vector<144x128xf32>
    %c36_i32_44 = arith.constant 36 : i32
    %90 = arith.addi %1, %c36_i32_44 : i32
    %c2_i32_45 = arith.constant 2 : i32
    %91 = arith.addi %90, %c2_i32_45 : i32
    %c0_46 = arith.constant 0 : index
    %92 = arith.index_cast %91 : i32 to index
    %c0_47 = arith.constant 0 : index
    %93 = vector.load %arg2[%c0_46, %92, %c0_47] : memref<1x342x128xf32, #tpu.memory_space<vmem>>, vector<1x144x128xf32>
    %94 = vector.shape_cast %93 : vector<1x144x128xf32> to vector<144x128xf32>
    %c0_48 = arith.constant 0 : index
    %c1920 = arith.constant 1920 : index
    %95 = vector.load %arg3[%c0_48, %c1920] : memref<128x2048xf32, #tpu.memory_space<vmem>>, vector<128x128xf32>
    %cst_49 = arith.constant dense<0.000000e+00> : vector<144x128xf32>
    %96 = tpu.matmul %94, %95, %cst_49 {dimension_numbers = #tpu.dot_dimension_numbers<[1], [0], [0], [1], [0, 0, 1, 1], [], []>} : vector<144x128xf32>, vector<128x128xf32>, vector<144x128xf32> -> vector<144x128xf32>
    %97 = arith.addf %89, %96 : vector<144x128xf32>
    %c0_50 = arith.constant 0 : index
    %c0_51 = arith.constant 0 : index
    %c0_52 = arith.constant 0 : index
    %c0_53 = arith.constant 0 : index
    %c0_54 = arith.constant 0 : index
    %98 = vector.load %arg5[%c0_50, %c0_51, %c0_52, %c0_53, %c0_54] : memref<1x2x2x144x128xf32, #tpu.memory_space<vmem>>, vector<1x1x1x144x128xf32>
    %99 = vector.shape_cast %98 : vector<1x1x1x144x128xf32> to vector<144x128xf32>
    %100 = vector.shape_cast %53 : vector<144x128xf32> to vector<1x1x1x144x128xf32>
    tpu.vector_store %arg5[%c0_50, %c0_51, %c0_52, %c0_53, %c0_54], %100 {strides = array<i32>} : memref<1x2x2x144x128xf32, #tpu.memory_space<vmem>>, vector<1x1x1x144x128xf32>,
    %c0_55 = arith.constant 0 : index
    %c0_56 = arith.constant 0 : index
    %c1 = arith.constant 1 : index
    %c0_57 = arith.constant 0 : index
    %c0_58 = arith.constant 0 : index
    %101 = vector.load %arg5[%c0_55, %c0_56, %c1, %c0_57, %c0_58] : memref<1x2x2x144x128xf32, #tpu.memory_space<vmem>>, vector<1x1x1x144x128xf32>
    %102 = vector.shape_cast %101 : vector<1x1x1x144x128xf32> to vector<144x128xf32>
    %103 = vector.shape_cast %68 : vector<144x128xf32> to vector<1x1x1x144x128xf32>
    tpu.vector_store %arg5[%c0_55, %c0_56, %c1, %c0_57, %c0_58], %103 {strides = array<i32>} : memref<1x2x2x144x128xf32, #tpu.memory_space<vmem>>, vector<1x1x1x144x128xf32>,
    %c0_59 = arith.constant 0 : index
    %c1_60 = arith.constant 1 : index
    %c0_61 = arith.constant 0 : index
    %c0_62 = arith.constant 0 : index
    %c0_63 = arith.constant 0 : index
    %104 = vector.load %arg5[%c0_59, %c1_60, %c0_61, %c0_62, %c0_63] : memref<1x2x2x144x128xf32, #tpu.memory_space<vmem>>, vector<1x1x1x144x128xf32>
    %105 = vector.shape_cast %104 : vector<1x1x1x144x128xf32> to vector<144x128xf32>
    %106 = vector.shape_cast %87 : vector<144x128xf32> to vector<1x1x1x144x128xf32>
    tpu.vector_store %arg5[%c0_59, %c1_60, %c0_61, %c0_62, %c0_63], %106 {strides = array<i32>} : memref<1x2x2x144x128xf32, #tpu.memory_space<vmem>>, vector<1x1x1x144x128xf32>,
    %c0_64 = arith.constant 0 : index
    %c1_65 = arith.constant 1 : index
    %c1_66 = arith.constant 1 : index
    %c0_67 = arith.constant 0 : index
    %c0_68 = arith.constant 0 : index
    %107 = vector.load %arg5[%c0_64, %c1_65, %c1_66, %c0_67, %c0_68] : memref<1x2x2x144x128xf32, #tpu.memory_space<vmem>>, vector<1x1x1x144x128xf32>
    %108 = vector.shape_cast %107 : vector<1x1x1x144x128xf32> to vector<144x128xf32>
    %109 = vector.shape_cast %97 : vector<144x128xf32> to vector<1x1x1x144x128xf32>
    tpu.vector_store %arg5[%c0_64, %c1_65, %c1_66, %c0_67, %c0_68], %109 {strides = array<i32>} : memref<1x2x2x144x128xf32, #tpu.memory_space<vmem>>, vector<1x1x1x144x128xf32>,
    return
  }
  func.func @transform_0(%arg0: i32, %arg1: i32) -> (i32, i32, i32) {
    %c0_i32 = arith.constant 0 : i32
    %c0_i32_0 = arith.constant 0 : i32
    %c0_i32_1 = arith.constant 0 : i32
    return %arg0, %c0_i32, %c0_i32_0 : i32, i32, i32
  }
  func.func @transform_1(%arg0: i32, %arg1: i32) -> (i32, i32) {
    %c0_i32 = arith.constant 0 : i32
    %c0_i32_0 = arith.constant 0 : i32
    %c0_i32_1 = arith.constant 0 : i32
    return %c0_i32, %c0_i32_0 : i32, i32
  }
  func.func @transform_2(%arg0: i32, %arg1: i32) -> (i32, i32) {
    %c0_i32 = arith.constant 0 : i32
    %c0_i32_0 = arith.constant 0 : i32
    %c0_i32_1 = arith.constant 0 : i32
    return %c0_i32, %c0_i32_0 : i32, i32
  }
  func.func @transform_3(%arg0: i32, %arg1: i32) -> (i32, i32, i32, i32, i32) {
    %c0_i32 = arith.constant 0 : i32
    %c0_i32_0 = arith.constant 0 : i32
    %c0_i32_1 = arith.constant 0 : i32
    %c0_i32_2 = arith.constant 0 : i32
    return %arg0, %c0_i32, %c0_i32_0, %arg1, %c0_i32_1 : i32, i32, i32, i32, i32
  }
}

module attributes {stable_mosaic.version = 11 : i64} {
  func.func @_subpixel_conv_kernel(%arg0: i32, %arg1: i32, %arg2: memref<1x342x128xf32, #tpu.memory_space<vmem>>, %arg3: memref<128x2048xf32, #tpu.memory_space<vmem>>, %arg4: memref<1x128xf32, #tpu.memory_space<vmem>>, %arg5: memref<1x2x2x144x128xf32, #tpu.memory_space<vmem>>) attributes {dimension_semantics = [#tpu.dimension_semantics<parallel>, #tpu.dimension_semantics<parallel>], iteration_bounds = array<i64: 2, 2>, scalar_prefetch = 0 : i64, scratch_operands = 0 : i64, tpu.core_type = #tpu.core_type<tc>, window_params = [{transform_indices = @transform_0, window_bounds = array<i64: 1, 342, 128>}, {pipeline_mode = #tpu.pipeline_mode<synchronous>, transform_indices = @transform_1, window_bounds = array<i64: 128, 2048>}, {pipeline_mode = #tpu.pipeline_mode<synchronous>, transform_indices = @transform_2, window_bounds = array<i64: 1, 128>}, {transform_indices = @transform_3, window_bounds = array<i64: 1, 2, 2, 144, 128>}]} {
    %c144_i32 = arith.constant 144 : i32
    %0 = arith.muli %arg1, %c144_i32 : i32
    %1 = tpu.assume_multiple %0, 8 : i32
    %c0 = arith.constant 0 : index
    %c0_0 = arith.constant 0 : index
    %2 = vector.load %arg4[%c0, %c0_0] : memref<1x128xf32, #tpu.memory_space<vmem>>, vector<1x128xf32>
    %3 = vector.shape_cast %2 : vector<1x128xf32> to vector<128xf32>
    %4 = vector.shape_cast %3 : vector<128xf32> to vector<1x128xf32>
    %5 = vector.shape_cast %4 : vector<1x128xf32> to vector<1x128xf32>
    %6 = vector.broadcast %5 : vector<1x128xf32> to vector<144x128xf32>
    %c0_i32 = arith.constant 0 : i32
    %7 = arith.addi %1, %c0_i32 : i32
    %c0_i32_1 = arith.constant 0 : i32
    %8 = arith.addi %7, %c0_i32_1 : i32
    %c0_2 = arith.constant 0 : index
    %9 = arith.index_cast %8 : i32 to index
    %c0_3 = arith.constant 0 : index
    %10 = vector.load %arg2[%c0_2, %9, %c0_3] : memref<1x342x128xf32, #tpu.memory_space<vmem>>, vector<1x144x128xf32>
    %11 = vector.shape_cast %10 : vector<1x144x128xf32> to vector<144x128xf32>
    %c0_4 = arith.constant 0 : index
    %c0_5 = arith.constant 0 : index
    %12 = vector.load %arg3[%c0_4, %c0_5] : memref<128x2048xf32, #tpu.memory_space<vmem>>, vector<128x128xf32>
    %cst = arith.constant dense<0.000000e+00> : vector<144x128xf32>
    %13 = tpu.matmul %11, %12, %cst {dimension_numbers = #tpu.dot_dimension_numbers<[1], [0], [0], [1], [0, 0, 1, 1], [], []>} : vector<144x128xf32>, vector<128x128xf32>, vector<144x128xf32> -> vector<144x128xf32>
    %14 = arith.addf %6, %13 : vector<144x128xf32>
    %c0_i32_6 = arith.constant 0 : i32
    %15 = arith.addi %1, %c0_i32_6 : i32
    %c1_i32 = arith.constant 1 : i32
    %16 = arith.addi %15, %c1_i32 : i32
    %c0_7 = arith.constant 0 : index
    %17 = arith.index_cast %16 : i32 to index
    %c0_8 = arith.constant 0 : index
    %18 = vector.load %arg2[%c0_7, %17, %c0_8] : memref<1x342x128xf32, #tpu.memory_space<vmem>>, vector<1x144x128xf32>
    %19 = vector.shape_cast %18 : vector<1x144x128xf32> to vector<144x128xf32>
    %c0_9 = arith.constant 0 : index
    %c128 = arith.constant 128 : index
    %20 = vector.load %arg3[%c0_9, %c128] : memref<128x2048xf32, #tpu.memory_space<vmem>>, vector<128x256xf32>
    %cst_10 = arith.constant dense<0.000000e+00> : vector<144x256xf32>
    %21 = tpu.matmul %19, %20, %cst_10 {dimension_numbers = #tpu.dot_dimension_numbers<[1], [0], [0], [1], [0, 0, 1, 1], [], []>} : vector<144x128xf32>, vector<128x256xf32>, vector<144x256xf32> -> vector<144x256xf32>
    %22 = vector.extract_strided_slice %21 {offsets = [0, 0], sizes = [144, 128], strides = [1, 1]} : vector<144x256xf32> to vector<144x128xf32>
    %23 = arith.addf %14, %22 : vector<144x128xf32>
    %24 = vector.extract_strided_slice %21 {offsets = [0, 128], sizes = [144, 128], strides = [1, 1]} : vector<144x256xf32> to vector<144x128xf32>
    %25 = arith.addf %6, %24 : vector<144x128xf32>
    %c0_i32_11 = arith.constant 0 : i32
    %26 = arith.addi %1, %c0_i32_11 : i32
    %c2_i32 = arith.constant 2 : i32
    %27 = arith.addi %26, %c2_i32 : i32
    %c0_12 = arith.constant 0 : index
    %28 = arith.index_cast %27 : i32 to index
    %c0_13 = arith.constant 0 : index
    %29 = vector.load %arg2[%c0_12, %28, %c0_13] : memref<1x342x128xf32, #tpu.memory_space<vmem>>, vector<1x144x128xf32>
    %30 = vector.shape_cast %29 : vector<1x144x128xf32> to vector<144x128xf32>
    %c0_14 = arith.constant 0 : index
    %c384 = arith.constant 384 : index
    %31 = vector.load %arg3[%c0_14, %c384] : memref<128x2048xf32, #tpu.memory_space<vmem>>, vector<128x128xf32>
    %cst_15 = arith.constant dense<0.000000e+00> : vector<144x128xf32>
    %32 = tpu.matmul %30, %31, %cst_15 {dimension_numbers = #tpu.dot_dimension_numbers<[1], [0], [0], [1], [0, 0, 1, 1], [], []>} : vector<144x128xf32>, vector<128x128xf32>, vector<144x128xf32> -> vector<144x128xf32>
    %33 = arith.addf %25, %32 : vector<144x128xf32>
    %c18_i32 = arith.constant 18 : i32
    %34 = arith.addi %1, %c18_i32 : i32
    %c0_i32_16 = arith.constant 0 : i32
    %35 = arith.addi %34, %c0_i32_16 : i32
    %c0_17 = arith.constant 0 : index
    %36 = arith.index_cast %35 : i32 to index
    %c0_18 = arith.constant 0 : index
    %37 = vector.load %arg2[%c0_17, %36, %c0_18] : memref<1x342x128xf32, #tpu.memory_space<vmem>>, vector<1x144x128xf32>
    %38 = vector.shape_cast %37 : vector<1x144x128xf32> to vector<144x128xf32>
    %c0_19 = arith.constant 0 : index
    %c512 = arith.constant 512 : index
    %39 = vector.load %arg3[%c0_19, %c512] : memref<128x2048xf32, #tpu.memory_space<vmem>>, vector<128x256xf32>
    %cst_20 = arith.constant dense<0.000000e+00> : vector<144x256xf32>
    %40 = tpu.matmul %38, %39, %cst_20 {dimension_numbers = #tpu.dot_dimension_numbers<[1], [0], [0], [1], [0, 0, 1, 1], [], []>} : vector<144x128xf32>, vector<128x256xf32>, vector<144x256xf32> -> vector<144x256xf32>
    %41 = vector.extract_strided_slice %40 {offsets = [0, 0], sizes = [144, 128], strides = [1, 1]} : vector<144x256xf32> to vector<144x128xf32>
    %42 = arith.addf %23, %41 : vector<144x128xf32>
    %43 = vector.extract_strided_slice %40 {offsets = [0, 128], sizes = [144, 128], strides = [1, 1]} : vector<144x256xf32> to vector<144x128xf32>
    %44 = arith.addf %6, %43 : vector<144x128xf32>
    %c18_i32_21 = arith.constant 18 : i32
    %45 = arith.addi %1, %c18_i32_21 : i32
    %c1_i32_22 = arith.constant 1 : i32
    %46 = arith.addi %45, %c1_i32_22 : i32
    %c0_23 = arith.constant 0 : index
    %47 = arith.index_cast %46 : i32 to index
    %c0_24 = arith.constant 0 : index
    %48 = vector.load %arg2[%c0_23, %47, %c0_24] : memref<1x342x128xf32, #tpu.memory_space<vmem>>, vector<1x144x128xf32>
    %49 = vector.shape_cast %48 : vector<1x144x128xf32> to vector<144x128xf32>
    %c0_25 = arith.constant 0 : index
    %c768 = arith.constant 768 : index
    %50 = vector.load %arg3[%c0_25, %c768] : memref<128x2048xf32, #tpu.memory_space<vmem>>, vector<128x512xf32>
    %cst_26 = arith.constant dense<0.000000e+00> : vector<144x512xf32>
    %51 = tpu.matmul %49, %50, %cst_26 {dimension_numbers = #tpu.dot_dimension_numbers<[1], [0], [0], [1], [0, 0, 1, 1], [], []>} : vector<144x128xf32>, vector<128x512xf32>, vector<144x512xf32> -> vector<144x512xf32>
    %52 = vector.extract_strided_slice %51 {offsets = [0, 0], sizes = [144, 128], strides = [1, 1]} : vector<144x512xf32> to vector<144x128xf32>
    %53 = arith.addf %42, %52 : vector<144x128xf32>
    %54 = vector.extract_strided_slice %51 {offsets = [0, 128], sizes = [144, 128], strides = [1, 1]} : vector<144x512xf32> to vector<144x128xf32>
    %55 = arith.addf %33, %54 : vector<144x128xf32>
    %56 = vector.extract_strided_slice %51 {offsets = [0, 256], sizes = [144, 128], strides = [1, 1]} : vector<144x512xf32> to vector<144x128xf32>
    %57 = arith.addf %44, %56 : vector<144x128xf32>
    %58 = vector.extract_strided_slice %51 {offsets = [0, 384], sizes = [144, 128], strides = [1, 1]} : vector<144x512xf32> to vector<144x128xf32>
    %59 = arith.addf %6, %58 : vector<144x128xf32>
    %c18_i32_27 = arith.constant 18 : i32
    %60 = arith.addi %1, %c18_i32_27 : i32
    %c2_i32_28 = arith.constant 2 : i32
    %61 = arith.addi %60, %c2_i32_28 : i32
    %c0_29 = arith.constant 0 : index
    %62 = arith.index_cast %61 : i32 to index
    %c0_30 = arith.constant 0 : index
    %63 = vector.load %arg2[%c0_29, %62, %c0_30] : memref<1x342x128xf32, #tpu.memory_space<vmem>>, vector<1x144x128xf32>
    %64 = vector.shape_cast %63 : vector<1x144x128xf32> to vector<144x128xf32>
    %c0_31 = arith.constant 0 : index
    %c1280 = arith.constant 1280 : index
    %65 = vector.load %arg3[%c0_31, %c1280] : memref<128x2048xf32, #tpu.memory_space<vmem>>, vector<128x256xf32>
    %cst_32 = arith.constant dense<0.000000e+00> : vector<144x256xf32>
    %66 = tpu.matmul %64, %65, %cst_32 {dimension_numbers = #tpu.dot_dimension_numbers<[1], [0], [0], [1], [0, 0, 1, 1], [], []>} : vector<144x128xf32>, vector<128x256xf32>, vector<144x256xf32> -> vector<144x256xf32>
    %67 = vector.extract_strided_slice %66 {offsets = [0, 0], sizes = [144, 128], strides = [1, 1]} : vector<144x256xf32> to vector<144x128xf32>
    %68 = arith.addf %55, %67 : vector<144x128xf32>
    %69 = vector.extract_strided_slice %66 {offsets = [0, 128], sizes = [144, 128], strides = [1, 1]} : vector<144x256xf32> to vector<144x128xf32>
    %70 = arith.addf %59, %69 : vector<144x128xf32>
    %c36_i32 = arith.constant 36 : i32
    %71 = arith.addi %1, %c36_i32 : i32
    %c0_i32_33 = arith.constant 0 : i32
    %72 = arith.addi %71, %c0_i32_33 : i32
    %c0_34 = arith.constant 0 : index
    %73 = arith.index_cast %72 : i32 to index
    %c0_35 = arith.constant 0 : index
    %74 = vector.load %arg2[%c0_34, %73, %c0_35] : memref<1x342x128xf32, #tpu.memory_space<vmem>>, vector<1x144x128xf32>
    %75 = vector.shape_cast %74 : vector<1x144x128xf32> to vector<144x128xf32>
    %c0_36 = arith.constant 0 : index
    %c1536 = arith.constant 1536 : index
    %76 = vector.load %arg3[%c0_36, %c1536] : memref<128x2048xf32, #tpu.memory_space<vmem>>, vector<128x128xf32>
    %cst_37 = arith.constant dense<0.000000e+00> : vector<144x128xf32>
    %77 = tpu.matmul %75, %76, %cst_37 {dimension_numbers = #tpu.dot_dimension_numbers<[1], [0], [0], [1], [0, 0, 1, 1], [], []>} : vector<144x128xf32>, vector<128x128xf32>, vector<144x128xf32> -> vector<144x128xf32>
    %78 = arith.addf %57, %77 : vector<144x128xf32>
    %c36_i32_38 = arith.constant 36 : i32
    %79 = arith.addi %1, %c36_i32_38 : i32
    %c1_i32_39 = arith.constant 1 : i32
    %80 = arith.addi %79, %c1_i32_39 : i32
    %c0_40 = arith.constant 0 : index
    %81 = arith.index_cast %80 : i32 to index
    %c0_41 = arith.constant 0 : index
    %82 = vector.load %arg2[%c0_40, %81, %c0_41] : memref<1x342x128xf32, #tpu.memory_space<vmem>>, vector<1x144x128xf32>
    %83 = vector.shape_cast %82 : vector<1x144x128xf32> to vector<144x128xf32>
    %c0_42 = arith.constant 0 : index
    %c1664 = arith.constant 1664 : index
    %84 = vector.load %arg3[%c0_42, %c1664] : memref<128x2048xf32, #tpu.memory_space<vmem>>, vector<128x256xf32>
    %cst_43 = arith.constant dense<0.000000e+00> : vector<144x256xf32>
    %85 = tpu.matmul %83, %84, %cst_43 {dimension_numbers = #tpu.dot_dimension_numbers<[1], [0], [0], [1], [0, 0, 1, 1], [], []>} : vector<144x128xf32>, vector<128x256xf32>, vector<144x256xf32> -> vector<144x256xf32>
    %86 = vector.extract_strided_slice %85 {offsets = [0, 0], sizes = [144, 128], strides = [1, 1]} : vector<144x256xf32> to vector<144x128xf32>
    %87 = arith.addf %78, %86 : vector<144x128xf32>
    %88 = vector.extract_strided_slice %85 {offsets = [0, 128], sizes = [144, 128], strides = [1, 1]} : vector<144x256xf32> to vector<144x128xf32>
    %89 = arith.addf %70, %88 : vector<144x128xf32>
    %c36_i32_44 = arith.constant 36 : i32
    %90 = arith.addi %1, %c36_i32_44 : i32
    %c2_i32_45 = arith.constant 2 : i32
    %91 = arith.addi %90, %c2_i32_45 : i32
    %c0_46 = arith.constant 0 : index
    %92 = arith.index_cast %91 : i32 to index
    %c0_47 = arith.constant 0 : index
    %93 = vector.load %arg2[%c0_46, %92, %c0_47] : memref<1x342x128xf32, #tpu.memory_space<vmem>>, vector<1x144x128xf32>
    %94 = vector.shape_cast %93 : vector<1x144x128xf32> to vector<144x128xf32>
    %c0_48 = arith.constant 0 : index
    %c1920 = arith.constant 1920 : index
    %95 = vector.load %arg3[%c0_48, %c1920] : memref<128x2048xf32, #tpu.memory_space<vmem>>, vector<128x128xf32>
    %cst_49 = arith.constant dense<0.000000e+00> : vector<144x128xf32>
    %96 = tpu.matmul %94, %95, %cst_49 {dimension_numbers = #tpu.dot_dimension_numbers<[1], [0], [0], [1], [0, 0, 1, 1], [], []>} : vector<144x128xf32>, vector<128x128xf32>, vector<144x128xf32> -> vector<144x128xf32>
    %97 = arith.addf %89, %96 : vector<144x128xf32>
    %c0_50 = arith.constant 0 : index
    %c0_51 = arith.constant 0 : index
    %c0_52 = arith.constant 0 : index
    %c0_53 = arith.constant 0 : index
    %c0_54 = arith.constant 0 : index
    %98 = vector.load %arg5[%c0_50, %c0_51, %c0_52, %c0_53, %c0_54] : memref<1x2x2x144x128xf32, #tpu.memory_space<vmem>>, vector<1x1x1x144x128xf32>
    %99 = vector.shape_cast %98 : vector<1x1x1x144x128xf32> to vector<144x128xf32>
    %100 = vector.shape_cast %53 : vector<144x128xf32> to vector<1x1x1x144x128xf32>
    tpu.vector_store %arg5[%c0_50, %c0_51, %c0_52, %c0_53, %c0_54], %100 {strides = array<i32>} : memref<1x2x2x144x128xf32, #tpu.memory_space<vmem>>, vector<1x1x1x144x128xf32>,
    %c0_55 = arith.constant 0 : index
    %c0_56 = arith.constant 0 : index
    %c1 = arith.constant 1 : index
    %c0_57 = arith.constant 0 : index
    %c0_58 = arith.constant 0 : index
    %101 = vector.load %arg5[%c0_55, %c0_56, %c1, %c0_57, %c0_58] : memref<1x2x2x144x128xf32, #tpu.memory_space<vmem>>, vector<1x1x1x144x128xf32>
    %102 = vector.shape_cast %101 : vector<1x1x1x144x128xf32> to vector<144x128xf32>
    %103 = vector.shape_cast %68 : vector<144x128xf32> to vector<1x1x1x144x128xf32>
    tpu.vector_store %arg5[%c0_55, %c0_56, %c1, %c0_57, %c0_58], %103 {strides = array<i32>} : memref<1x2x2x144x128xf32, #tpu.memory_space<vmem>>, vector<1x1x1x144x128xf32>,
    %c0_59 = arith.constant 0 : index
    %c1_60 = arith.constant 1 : index
    %c0_61 = arith.constant 0 : index
    %c0_62 = arith.constant 0 : index
    %c0_63 = arith.constant 0 : index
    %104 = vector.load %arg5[%c0_59, %c1_60, %c0_61, %c0_62, %c0_63] : memref<1x2x2x144x128xf32, #tpu.memory_space<vmem>>, vector<1x1x1x144x128xf32>
    %105 = vector.shape_cast %104 : vector<1x1x1x144x128xf32> to vector<144x128xf32>
    %106 = vector.shape_cast %87 : vector<144x128xf32> to vector<1x1x1x144x128xf32>
    tpu.vector_store %arg5[%c0_59, %c1_60, %c0_61, %c0_62, %c0_63], %106 {strides = array<i32>} : memref<1x2x2x144x128xf32, #tpu.memory_space<vmem>>, vector<1x1x1x144x128xf32>,
    %c0_64 = arith.constant 0 : index
    %c1_65 = arith.constant 1 : index
    %c1_66 = arith.constant 1 : index
    %c0_67 = arith.constant 0 : index
    %c0_68 = arith.constant 0 : index
    %107 = vector.load %arg5[%c0_64, %c1_65, %c1_66, %c0_67, %c0_68] : memref<1x2x2x144x128xf32, #tpu.memory_space<vmem>>, vector<1x1x1x144x128xf32>
    %108 = vector.shape_cast %107 : vector<1x1x1x144x128xf32> to vector<144x128xf32>
    %109 = vector.shape_cast %97 : vector<144x128xf32> to vector<1x1x1x144x128xf32>
    tpu.vector_store %arg5[%c0_64, %c1_65, %c1_66, %c0_67, %c0_68], %109 {strides = array<i32>} : memref<1x2x2x144x128xf32, #tpu.memory_space<vmem>>, vector<1x1x1x144x128xf32>,
    return
  }
  func.func @transform_0(%arg0: i32, %arg1: i32) -> (i32, i32, i32) {
    %c0_i32 = arith.constant 0 : i32
    %c0_i32_0 = arith.constant 0 : i32
    %c0_i32_1 = arith.constant 0 : i32
    return %arg0, %c0_i32, %c0_i32_0 : i32, i32, i32
  }
  func.func @transform_1(%arg0: i32, %arg1: i32) -> (i32, i32) {
    %c0_i32 = arith.constant 0 : i32
    %c0_i32_0 = arith.constant 0 : i32
    %c0_i32_1 = arith.constant 0 : i32
    return %c0_i32, %c0_i32_0 : i32, i32
  }
  func.func @transform_2(%arg0: i32, %arg1: i32) -> (i32, i32) {
    %c0_i32 = arith.constant 0 : i32
    %c0_i32_0 = arith.constant 0 : i32
    %c0_i32_1 = arith.constant 0 : i32
    return %c0_i32, %c0_i32_0 : i32, i32
  }
  func.func @transform_3(%arg0: i32, %arg1: i32) -> (i32, i32, i32, i32, i32) {
    %c0_i32 = arith.constant 0 : i32
    %c0_i32_0 = arith.constant 0 : i32
    %c0_i32_1 = arith.constant 0 : i32
    %c0_i32_2 = arith.constant 0 : i32
    return %arg0, %c0_i32, %c0_i32_0, %arg1, %c0_i32_1 : i32, i32, i32, i32, i32
  }
}

</mosaic_0001>

<bundles_post_ra>
// kernel: tpu_custom_call.1
= control target key start
LH: loop header
LB: loop body
LE: loop exit
PB: predicated region body
PF: predicated region fallthrough
CT: control target
= control target key end

     0   :  { %8 = vsyncpa [#allocation3], 0  ;;  %s5232_s0 = inlined_call_operand.vmem [shape: f32[2,342,128], index: 0, kind: input, shape index: {}]   ;;  %s5233_s1 = inlined_call_operand.hbm [shape: f32[128,2048], index: 1, kind: input, shape index: {}]   ;;  %s5234_s2 = inlined_call_operand.hbm [shape: f32[1,128], index: 2, kind: input, shape index: {}]   ;;  %s5235_s3 = inlined_call_operand.hbm [shape: f32[2,2,2,288,128], index: 3, kind: output, shape index: {}]  }
   0x1   :  { %9 = vsyncpa [#allocation6], 0 }
   0x2   :  { %10 = vsyncpa [#allocation4], 0 }
   0x3   :  { %12 = vsyncpa [#allocation4 + $0x1], 0  ;;  %s4025_s12 = smov 0   ;;  %s4027_s13 = smov 0  }
   0x4   :  { %s4029_s14 = smov 0   ;;  %s4031_s15 = smov 0  }
   0x5   :  { %s4033_s16 = smov 0   ;;  %s4035_s17 = smov 0  }
   0x6   :  { %s4037_s18 = smov 0   ;;  %s4039_s19 = smov 0  }
   0x7 LB: > { %5243 = sst [smem:[#allocation13_spill]] %s3987_s18  ;;  %s2845_s20 = sadd.s32 4294967295, %s3991_s19   ;;  %s3991_s19 = sphi %s4039_s19, %s18_s19   ;;  %s3987_s18 = sphi %s4037_s18, %s5257_s18   ;;  %s3983_s17 = sphi %s4035_s17, %s5262_s17   ;;  %s3979_s16 = sphi %s4033_s16, %s5255_s16   ;;  %s3975_s15 = sphi %s4031_s15, %s5261_s15   ;;  %s3971_s14 = sphi %s4029_s14, %s5260_s14   ;;  %s3967_s13 = sphi %s4027_s13, %s5259_s13   ;;  %s3963_s12 = sphi %s4025_s12, %s5258_s12  }
   0x8   : > { %s2846_s21 = sadd.s32 4294967294, %s3991_s19   ;;  %s27_s22 = sadd.s32 1, %s3983_s17 }
   0x9   : > { %s30_s23 = sadd.s32 1, %s3987_s18  ;;  %p28_p0 = scmp.ge.s32.totalorder %s27_s22, 2 }
   0xa   : > { %s107_s24 = sadd.s32 1, %s3971_s14  ;;  %p117_p1 = scmp.ne.s32.totalorder %s3971_s14, %s3967_s13 }
   0xb   : > { %p118_p2 = scmp.eq.s32.totalorder %s2845_s20, 3  ;;  %s5264_s22 = smov (%p28_p0, %s27_s22), 0 }
   0xc   : > { %5244 = sst [smem:[#allocation14_spill]] %s5264_s22  ;;  %s5266_s23 = smov (!%p28_p0, %s30_s23), %s3987_s18 }
   0xd   : > { %s103_s25 = ssub.s32 %s3983_s17, %s5264_s22  ;;  %p4077_p3 = por %p118_p2, %p117_p1 }
   0xe   : > { %p32_p4 = scmp.ge.s32.totalorder %s5266_s23, 2  ;;  %p123_p5 = scmp.ne.s32.totalorder %s3967_s13, %s3963_s12 }
   0xf   : > { %s5245_s26 = scalar_select %p4077_p3, 1, 0 }
  0x10   : > { %p124_p6 = scmp.eq.s32.totalorder %s2846_s21, 3  ;;  %p2847_p7 = scmp.ge.s32.totalorder %s3991_s19, 1 }
  0x11   : > { %s5268_s23 = smov (%p32_p4, %s5266_s23), 0  ;;  %p131_p9 = scmp.lt.s32.totalorder %s3991_s19, 5 }
  0x12   : > { %5246 = sst [smem:[#allocation15_spill]] %s5268_s23  ;;  %p4086_p8 = por %p124_p6, %p123_p5 }
  0x13   : > { %s102_s28 = ssub.s32 %s3987_s18, %s5268_s23  ;;  %p4093_p10 = pnand %p2847_p7, %p131_p9 }
  0x14   : > { %s5247_s27 = scalar_select %p4086_p8, 1, 0 }
  0x15   : > { %s104_s29 = sor.u32 %s103_s25, %s102_s28  ;;  %p4097_p12 = scmp.eq.s32.totalorder %s2845_s20, 0 }
  0x16   : > { %s5248_s30 = scalar_select %p4093_p10, 1, 0 }
  0x17   : > { %p105_p11 = scmp.eq.s32.totalorder %s104_s29, 0  ;;  %p3768_p13 = pneg %p4093_p10 }
  0x18   : > { %s5249_s4 = scalar_select %p4097_p12, 1, 0 }
  0x19   : > { %s4104_s5 = scalar_select %p105_p11, %s3971_s14, %s107_s24  }
  0x1a   : > { %s3993_s6 = smov [#allocation2]   ;;  %p4108_p0 = pnand %p4097_p12, %p3768_p13 }
  0x1b   : > { %s143_s7 = sshll.u32 %s3993_s6, 4  ;;  %s3861_s11 = scalar_lea.hbm %s5233_s1, 32768  ;;  %s144_s7 = int_to_ptr.vmem [resolvable:$true] %s143_s7 }
  0x1c   : > { %p3862_p1 = scmp.ne.s32.totalorder %s5233_s1, %s3861_s11  ;;  %p3863_p2 = pneg %p4108_p0 }
  0x1d   : > { %p3868_p6 = scmp.lt.u32.totalorder %s3861_s11, %s5233_s1 }
  0x1e   : > { %p3864_p4 = pnand %p3863_p2, %p3862_p1 }
  0x20   : > { %p3865_p5 = pneg %p3864_p4 }
  0x22   : > { %p3870_p7 = pnand %p3868_p6, %p3865_p5 }
  0x24   : > { %3873 = shalt.err (!%p3870_p7)
}
  0x25   : > { %s3874_s28 = scalar_lea.vmem %s144_s7, 32768  ;;  %p3882_p8 = scmp.lt.s32.totalorder %s144_s7, %s144_s7 }
  0x26   : > { %p3875_p9 = scmp.ne.s32.totalorder %s144_s7, %s3874_s28  ;;  %p3883_p3 = scmp.lt.s32.totalorder %s3874_s28, %s3874_s28 }
  0x28   : > { %p3877_p11 = pnand %p3875_p9, %p3863_p2  ;;  %p3884_p12 = por %p3883_p3, %p3882_p8 }
  0x2a   : > { %p3878_p13 = pneg %p3877_p11 }
  0x2c   : > { %p3885_p10 = pnand %p3884_p12, %p3878_p13 }
  0x2e   : > { %3888 = shalt.err (!%p3885_p10)
}
  0x2f   : > { %s3994_s29 = smov 2048   ;;  %s3995_s6 = smov 128  }
  0x30   : > { %3771 = dma.hbm_to_vmem [thread:$0]  (!%p4108_p0), %s5233_s1, 32768, %s144_s7, [#allocation3], %s3994_s29, %s3994_s29, %s3995_s6  }
  0x31   : > { %s3996_s11 = smov [#allocation5]   ;;  %s3889_s25 = scalar_lea.hbm %s5234_s2, 16 }
  0x32   : > { %s157_s20 = sshll.u32 %s3996_s11, 4  ;;  %p3890_p3 = scmp.ne.s32.totalorder %s5234_s2, %s3889_s25  ;;  %s158_s20 = int_to_ptr.vmem [resolvable:$true] %s157_s20 }
  0x33   : > { %p3896_p12 = scmp.lt.u32.totalorder %s3889_s25, %s5234_s2 }
  0x34   : > { %p3892_p8 = pnand %p3890_p3, %p3863_p2 }
  0x36   : > { %p3893_p10 = pneg %p3892_p8 }
  0x38   : > { %p3898_p1 = pnand %p3896_p12, %p3893_p10 }
  0x3a   : > { %3901 = shalt.err (!%p3898_p1)
}
  0x3b   : > { %s3902_s7 = scalar_lea.vmem %s158_s20, 16  ;;  %s3909_s29 = scalar_lea.vmem %s158_s20, 32 }
  0x3c   : > { %p3903_p4 = scmp.ne.s32.totalorder %s158_s20, %s3902_s7  ;;  %p3910_p7 = scmp.lt.s32.totalorder %s158_s20, %s158_s20 }
  0x3d   : > { %p3911_p9 = scmp.lt.s32.totalorder %s3909_s29, %s3902_s7 }
  0x3e   : > { %p3905_p5 = pnand %p3903_p4, %p3863_p2 }
  0x3f   : > { %p3912_p11 = por %p3911_p9, %p3910_p7 }
  0x40   : > { %p3906_p6 = pneg %p3905_p5 }
  0x42   : > { %p3913_p13 = pnand %p3912_p11, %p3906_p6 }
  0x44   : > { %3916 = shalt.err (!%p3913_p13)
}
  0x45   : > { %3774 = dma.hbm_to_vmem [thread:$0]  (!%p4108_p0), %s5234_s2, 16, %s158_s20, [#allocation6]  }
  0x46   : > { %p5251_p3 = scmp.ne.s32.totalorder %s5248_s30, 0 }
  0x47   : > { %p5252_p8 = scmp.ne.s32.totalorder (!%p5251_p3), %s5249_s4, 0 }
  0x48   : > { %178 = sbr.rel (%p5251_p3) target bundleno = 631 (0x277), region = 32 }
  0x4f   : > { %3950 = dma.done.wait (%p5252_p8), [#allocation3], 32768  }
  0x50   : > { %3952 = vsyncadd (%p5252_p8), [#allocation3], 4294934528 }
  0x51   : > { %3954 = dma.done.wait (%p5252_p8), [#allocation6], 16  }
  0x52   : > { %3956 = vsyncadd (%p5252_p8), [#allocation6], 4294967280  ;;  %v3997_v0 = vmov 0.0   ;;  %p206_p0 = scmp.lt.s32.totalorder %s3979_s16, 1  ;;  %v239_v1 = vld [vmem:[#allocation2] sm:$0xff]  ;;  %v449_v3 = vld [vmem:[#allocation2 + $0x10] sm:$0xff] }
  0x53   : > { %544 = vmatprep.mubr.f32.mxu1 %v3997_v0  ;;  %v240_v2 = vld [vmem:[#allocation2 + $0x80] sm:$0xff]  ;;  %v451_v5 = vld [vmem:[#allocation2 + $0x90] sm:$0xff]  ;;  %v448_v6 = vld [vmem:[#allocation2 + $0x8] sm:$0xff]  ;;  %s212_s4 = smul.u32 144, %s3975_s15  ;;  %s203_s11 = sand.u32 1, %s3967_s13  }
  0x54   : > { %v3429_v4 = vpack.c.bf16 %v240_v2, %v239_v1  ;;  %v450_v7 = vld [vmem:[#allocation2 + $0x88] sm:$0xff]  ;;  %v3461_v8 = vpack.c.bf16 %v451_v5, %v449_v3  ;;  %v241_v10 = vld [vmem:[#allocation2 + $0x100] sm:$0xff]  ;;  %v453_v12 = vld [vmem:[#allocation2 + $0x110] sm:$0xff]  ;;  %s4167_s22 = scalar_select %p206_p0, %s3979_s16, 1 }
  0x55   : > { %v3463_v9 = vpack.c.bf16 %v450_v7, %v448_v6  ;;  %v242_v11 = vld [vmem:[#allocation2 + $0x180] sm:$0xff]  ;;  %v455_v14 = vld [vmem:[#allocation2 + $0x190] sm:$0xff]  ;;  %v452_v15 = vld [vmem:[#allocation2 + $0x108] sm:$0xff]  ;;  %s3749_s20 = smul.u32 576, %s203_s11  ;;  %s2677_s24 = scalar_lea.sflag [#allocation4], %s203_s11 }
  0x56   : > { %3430 = vmatprep.subr.bf16.mxu0 %v3429_v4  ;;  %v3433_v13 = vpack.c.bf16 %v242_v11, %v241_v10  ;;  %v454_v16 = vld [vmem:[#allocation2 + $0x188] sm:$0xff]  ;;  %3462 = vmatprep.subr.bf16.mxu1 %v3461_v8  ;;  %v3465_v17 = vpack.c.bf16 %v455_v14, %v453_v12  ;;  %v243_v18 = vld [vmem:[#allocation2 + $0x200] sm:$0xff]  ;;  %v457_v20 = vld [vmem:[#allocation2 + $0x210] sm:$0xff]  ;;  %s3750_s30 = smul.u32 344, %s4167_s22 }
  0x57   : > { %3432 = vmatpush3.bf16.msra.mxu0 %v3429_v4  ;;  %v244_v19 = vld [vmem:[#allocation2 + $0x280] sm:$0xff]  ;;  %3464 = vmatpush1.bf16.msra.mxu1 %v3463_v9  ;;  %v3467_v21 = vpack.c.bf16 %v454_v16, %v452_v15  ;;  %v459_v23 = vld [vmem:[#allocation2 + $0x290] sm:$0xff]  ;;  %v456_v24 = vld [vmem:[#allocation2 + $0x208] sm:$0xff]  ;;  %s4797_s21 = scalar_lea.vmem [#allocation7], %s3749_s20 }
  0x58   : > { %3434 = vmatprep.subr.bf16.mxu0 %v3433_v13  ;;  %v3437_v22 = vpack.c.bf16 %v244_v19, %v243_v18  ;;  %3466 = vmatprep.subr.bf16.mxu1 %v3465_v17  ;;  %v3469_v25 = vpack.c.bf16 %v459_v23, %v457_v20  ;;  %v458_v26 = vld [vmem:[#allocation2 + $0x288] sm:$0xff]  ;;  %v245_v27 = vld [vmem:[#allocation2 + $0x300] sm:$0xff]  ;;  %v461_v29 = vld [vmem:[#allocation2 + $0x310] sm:$0xff]  ;;  %s210_s9 = scalar_lea.vmem %s5232_s0, %s3750_s30 }
  0x59   : > { %v246_v28 = vld [vmem:[#allocation2 + $0x380] sm:$0xff]  ;;  %v463_v30 = vld [vmem:[#allocation2 + $0x390] sm:$0xff]  ;;  %v3471_v31 = vpack.c.bf16 %v458_v26, %v456_v24  ;;  %v460_v33 = vld [vmem:[#allocation2 + $0x308] sm:$0xff]  ;;  %s4174_s10 = scalar_lea.vmem %s210_s9, %s212_s4 }
  0x5a   : > { %v3441_v32 = vpack.c.bf16 %v246_v28, %v245_v27  ;;  %v3473_v34 = vpack.c.bf16 %v463_v30, %v461_v29  ;;  %v462_v35 = vld [vmem:[#allocation2 + $0x388] sm:$0xff]  ;;  %v247_v36 = vld [vmem:[#allocation2 + $0x400] sm:$0xff]  ;;  %v465_v38 = vld [vmem:[#allocation2 + $0x410] sm:$0xff] }
  0x5b   : > { %3436 = vmatpush3.bf16.msra.mxu0 %v3433_v13  ;;  %3468 = vmatpush1.bf16.msra.mxu1 %v3467_v21  ;;  %v248_v37 = vld [vmem:[#allocation2 + $0x480] sm:$0xff]  ;;  %v467_v39 = vld [vmem:[#allocation2 + $0x490] sm:$0xff]  ;;  %v3475_v40 = vpack.c.bf16 %v462_v35, %v460_v33  ;;  %v464_v42 = vld [vmem:[#allocation2 + $0x408] sm:$0xff] }
  0x5c   : > { %3438 = vmatprep.subr.bf16.mxu0 %v3437_v22  ;;  %3470 = vmatprep.subr.bf16.mxu1 %v3469_v25  ;;  %v3445_v41 = vpack.c.bf16 %v248_v37, %v247_v36  ;;  %v3477_v43 = vpack.c.bf16 %v467_v39, %v465_v38  ;;  %v466_v44 = vld [vmem:[#allocation2 + $0x488] sm:$0xff]  ;;  %v249_v45 = vld [vmem:[#allocation2 + $0x500] sm:$0xff]  ;;  %v469_v47 = vld [vmem:[#allocation2 + $0x510] sm:$0xff] }
  0x5d   : > { %v250_v46 = vld [vmem:[#allocation2 + $0x580] sm:$0xff]  ;;  %v471_v48 = vld [vmem:[#allocation2 + $0x590] sm:$0xff]  ;;  %v3479_v50 = vpack.c.bf16 %v466_v44, %v464_v42  ;;  %v468_v52 = vld [vmem:[#allocation2 + $0x508] sm:$0xff] }
  0x5e   : > { %v221_v49 = vld [vmem:[%s4174_s10] sm:$0xff]  ;;  %v3449_v51 = vpack.c.bf16 %v250_v46, %v249_v45  ;;  %v3481_v53 = vpack.c.bf16 %v471_v48, %v469_v47  ;;  %v470_v54 = vld [vmem:[#allocation2 + $0x588] sm:$0xff]  ;;  %v251_v55 = vld [vmem:[#allocation2 + $0x600] sm:$0xff] }
  0x5f   : > { %3440 = vmatpush3.bf16.msra.mxu0 %v3437_v22  ;;  %3472 = vmatpush1.bf16.msra.mxu1 %v3471_v31  ;;  %v252_v56 = vld [vmem:[#allocation2 + $0x680] sm:$0xff]  ;;  %v473_v57 = vld [vmem:[#allocation2 + $0x610] sm:$0xff]  ;;  %v3483_v59 = vpack.c.bf16 %v470_v54, %v468_v52  ;;  %v472_v61 = vld [vmem:[#allocation2 + $0x608] sm:$0xff] }
  0x60   : > { %3442 = vmatprep.subr.bf16.mxu0 %v3441_v32  ;;  %3474 = vmatprep.subr.bf16.mxu1 %v3473_v34  ;;  %v475_v58 = vld [vmem:[#allocation2 + $0x690] sm:$0xff]  ;;  %v3453_v60 = vpack.c.bf16 %v252_v56, %v251_v55  ;;  %v474_v63 = vld [vmem:[#allocation2 + $0x688] sm:$0xff]  ;;  %v253_v1 = vld [vmem:[#allocation2 + $0x700] sm:$0xff] }
  0x61   : > { %3225 = vmatprep.mubr.f32.mxu0 %v221_v49  ;;  %v3485_v62 = vpack.c.bf16 %v475_v58, %v473_v57  ;;  %v254_v2 = vld [vmem:[#allocation2 + $0x780] sm:$0xff]  ;;  %v477_v3 = vld [vmem:[#allocation2 + $0x710] sm:$0xff]  ;;  %v3487_v5 = vpack.c.bf16 %v474_v63, %v472_v61  ;;  %v476_v7 = vld [vmem:[#allocation2 + $0x708] sm:$0xff] }
  0x62   : > { %v479_v4 = vld [vmem:[#allocation2 + $0x790] sm:$0xff]  ;;  %v3457_v6 = vpack.c.bf16 %v254_v2, %v253_v1  ;;  %v478_v9 = vld [vmem:[#allocation2 + $0x788] sm:$0xff]  ;;  %v709_v10 = vld [vmem:[#allocation2 + $0x18] sm:$0xff] }
  0x63   : > { %3444 = vmatpush3.bf16.msra.mxu0 %v3441_v32  ;;  %3476 = vmatpush1.bf16.msra.mxu1 %v3475_v40  ;;  %v3489_v8 = vpack.c.bf16 %v479_v4, %v477_v3  ;;  %v710_v11 = vld [vmem:[#allocation2 + $0x98] sm:$0xff]  ;;  %v3491_v14 = vpack.c.bf16 %v478_v9, %v476_v7  ;;  %v1179_v17 = vld [vmem:[#allocation2 + $0x30] sm:$0xff]  ;;  %v223_v26 = vld [vmem:[%s4174_s10 + $0x10] sm:$0xff] }
  0x64   : > { %3446 = vmatprep.subr.bf16.mxu0 %v3445_v41  ;;  %3478 = vmatprep.subr.bf16.mxu1 %v3477_v43  ;;  %v1180_v12 = vld [vmem:[#allocation2 + $0x38] sm:$0xff]  ;;  %v3493_v15 = vpack.c.bf16 %v710_v11, %v709_v10  ;;  %v1183_v18 = vld [vmem:[#allocation2 + $0xb0] sm:$0xff]  ;;  %v224_v33 = vld [vmem:[%s4174_s10 + $0x18] sm:$0xff] }
  0x65   : > { %v1184_v13 = vld [vmem:[#allocation2 + $0xb8] sm:$0xff]  ;;  %v3559_v25 = vpack.c.bf16 %v1183_v18, %v1179_v17  ;;  %v1187_v28 = vld [vmem:[#allocation2 + $0x130] sm:$0xff]  ;;  %v2858_v48 = vld [vmem:[%s4174_s10 + $0x11] sm:$0xff] }
  0x66   : > { %v3557_v16 = vpack.c.bf16 %v1184_v13, %v1180_v12  ;;  %v1188_v19 = vld [vmem:[#allocation2 + $0x138] sm:$0xff]  ;;  %v1191_v29 = vld [vmem:[#allocation2 + $0x1b0] sm:$0xff]  ;;  %v227_v49 = vld [vmem:[%s4174_s10 + $0x30] sm:$0xff] }
  0x67   : > { %3448 = vmatpush3.bf16.msra.mxu0 %v3445_v41  ;;  %3480 = vmatpush1.bf16.msra.mxu1 %v3479_v50  ;;  %v1192_v20 = vld [vmem:[#allocation2 + $0x1b8] sm:$0xff]  ;;  %v225_v37 = vld [vmem:[%s4174_s10 + $0x20] sm:$0xff]  ;;  %v3563_v38 = vpack.c.bf16 %v1191_v29, %v1187_v28  ;;  %v228_v57 = vld [vmem:[%s4174_s10 + $0x38] sm:$0xff] }
  0x68   : > { %3450 = vmatprep.subr.bf16.mxu0 %v3449_v51  ;;  %3482 = vmatprep.subr.bf16.mxu1 %v3481_v53  ;;  %v222_v21 = vld [vmem:[%s4174_s10 + $0x8] sm:$0xff]  ;;  %v3561_v27 = vpack.c.bf16 %v1192_v20, %v1188_v19  ;;  %v1195_v40 = vld [vmem:[#allocation2 + $0x230] sm:$0xff]  ;;  %v231_v10 = vld [vmem:[%s4174_s10 + $0x50] sm:$0xff] }
  0x69   : > { %v711_v22 = vld [vmem:[#allocation2 + $0x118] sm:$0xff]  ;;  %v1199_v41 = vld [vmem:[#allocation2 + $0x2b0] sm:$0xff]  ;;  %v232_v18 = vld [vmem:[%s4174_s10 + $0x58] sm:$0xff] }
  0x6a   : > { %v712_v23 = vld [vmem:[#allocation2 + $0x198] sm:$0xff]  ;;  %v3567_v50 = vpack.c.bf16 %v1199_v41, %v1195_v40  ;;  %v1203_v52 = vld [vmem:[#allocation2 + $0x330] sm:$0xff] }
  0x6b   : > { %3452 = vmatpush3.bf16.msra.mxu0 %v3449_v51  ;;  %3484 = vmatpush1.bf16.msra.mxu1 %v3483_v59  ;;  %v2856_v24 = vld [vmem:[%s4174_s10 + $0x1] sm:$0xff]  ;;  %v3497_v30 = vpack.c.bf16 %v712_v23, %v711_v22  ;;  %v2857_v36 = vld [vmem:[%s4174_s10 + $0x9] sm:$0xff]  ;;  %v2863_v41 = vld [vmem:[%s4174_s10 + $0x39] sm:$0xff] }
  0x6c   : > { %3454 = vmatprep.subr.bf16.mxu0 %v3453_v60  ;;  %3486 = vmatprep.subr.bf16.mxu1 %v3485_v62  ;;  %v1196_v31 = vld [vmem:[#allocation2 + $0x238] sm:$0xff]  ;;  %v1207_v53 = vld [vmem:[#allocation2 + $0x3b0] sm:$0xff] }
  0x6d   : > { %v1200_v32 = vld [vmem:[#allocation2 + $0x2b8] sm:$0xff]  ;;  %v229_v61 = vld [vmem:[%s4174_s10 + $0x40] sm:$0xff]  ;;  %v3571_v62 = vpack.c.bf16 %v1207_v53, %v1203_v52  ;;  %v918_v53 = vld [vmem:[#allocation2 + $0x20] sm:$0xff] }
  0x6e   : > { %v713_v34 = vld [vmem:[#allocation2 + $0x218] sm:$0xff]  ;;  %v3565_v39 = vpack.c.bf16 %v1200_v32, %v1196_v31  ;;  %v1211_v1 = vld [vmem:[#allocation2 + $0x430] sm:$0xff] }
  0x6f   : > { %3456 = vmatpush3.bf16.msra.mxu0 %v3453_v60  ;;  %3488 = vmatpush1.bf16.msra.mxu1 %v3487_v5  ;;  %v714_v35 = vld [vmem:[#allocation2 + $0x298] sm:$0xff]  ;;  %v2859_v60 = vld [vmem:[%s4174_s10 + $0x19] sm:$0xff] }
  0x70   : > { %3458 = vmatprep.subr.bf16.mxu0 %v3457_v6  ;;  %3490 = vmatprep.subr.bf16.mxu1 %v3489_v8  ;;  %v3501_v42 = vpack.c.bf16 %v714_v35, %v713_v34  ;;  %v1204_v43 = vld [vmem:[#allocation2 + $0x338] sm:$0xff]  ;;  %v1215_v2 = vld [vmem:[#allocation2 + $0x4b0] sm:$0xff]  ;;  %v235_v34 = vld [vmem:[%s4174_s10 + $0x70] sm:$0xff] }
  0x71   : > { %v1208_v44 = vld [vmem:[#allocation2 + $0x3b8] sm:$0xff]  ;;  %v3575_v11 = vpack.c.bf16 %v1215_v2, %v1211_v1  ;;  %v1219_v13 = vld [vmem:[#allocation2 + $0x530] sm:$0xff]  ;;  %v927_v1 = vld [vmem:[#allocation2 + $0x228] sm:$0xff] }
  0x72   : > { %v226_v45 = vld [vmem:[%s4174_s10 + $0x28] sm:$0xff]  ;;  %v3569_v51 = vpack.c.bf16 %v1208_v44, %v1204_v43  ;;  %v233_v22 = vld [vmem:[%s4174_s10 + $0x60] sm:$0xff]  ;;  %v921_v43 = vld [vmem:[#allocation2 + $0xa8] sm:$0xff] }
  0x73   : > { %3460 = vmatpush3.bf16.msra.mxu0 %v3457_v6  ;;  %3492 = vmatpush1.bf16.msra.mxu1 %v3491_v14  ;;  %v715_v46 = vld [vmem:[#allocation2 + $0x318] sm:$0xff]  ;;  %v1223_v14 = vld [vmem:[#allocation2 + $0x5b0] sm:$0xff]  ;;  %v929_v2 = vld [vmem:[#allocation2 + $0x2a8] sm:$0xff] }
  0x74   : > { %3494 = vmatprep.subr.bf16.mxu0 %v3493_v15  ;;  %3558 = vmatprep.subr.bf16.mxu1 %v3557_v16  ;;  %v716_v47 = vld [vmem:[#allocation2 + $0x398] sm:$0xff]  ;;  %v3579_v23 = vpack.c.bf16 %v1223_v14, %v1219_v13  ;;  %v237_v44 = vld [vmem:[%s4174_s10 + $0x80] sm:$0xff]  ;;  %v4235_v14 = vld [vmem:[%s4174_s10 + $0x32] sm:$0xff] }
  0x75   : > { %v3505_v54 = vpack.c.bf16 %v716_v47, %v715_v46  ;;  %v1212_v55 = vld [vmem:[#allocation2 + $0x438] sm:$0xff]  ;;  %v2867_v13 = vld [vmem:[%s4174_s10 + $0x59] sm:$0xff] }
  0x76   : > { %3226 = vmatmul.mubr.f32.vlgmr.msra.gmra.mrb[0].mxu0 %v222_v21  ;;  %545 = vmatmul.mubr.f32.vlgmr.msra.gmra.mrb[0].mxu1 %v2856_v24  ;;  %v1216_v56 = vld [vmem:[#allocation2 + $0x4b8] sm:$0xff] }
  0x77   : > { %3228 = vmatprep.mubr.f32.mxu0 %v223_v26  ;;  %3560 = vmatpush1.bf16.msra.mxu1 %v3559_v25  ;;  %v717_v58 = vld [vmem:[#allocation2 + $0x418] sm:$0xff]  ;;  %v3573_v63 = vpack.c.bf16 %v1216_v56, %v1212_v55  ;;  %v1227_v25 = vld [vmem:[#allocation2 + $0x630] sm:$0xff]  ;;  %v923_v55 = vld [vmem:[#allocation2 + $0x128] sm:$0xff] }
  0x78   : > { %550 = vmatprep.mubr.f32.mxu1 %v3997_v0  ;;  %3496 = vmatpush3.bf16.msra.mxu0 %v3493_v15  ;;  %v718_v59 = vld [vmem:[#allocation2 + $0x498] sm:$0xff]  ;;  %v1231_v26 = vld [vmem:[#allocation2 + $0x6b0] sm:$0xff]  ;;  %v925_v56 = vld [vmem:[#allocation2 + $0x1a8] sm:$0xff] }
  0x79   : > { %3562 = vmatprep.subr.bf16.mxu1 %v3561_v27  ;;  %3498 = vmatprep.subr.bf16.mxu0 %v3497_v30  ;;  %v3509_v3 = vpack.c.bf16 %v718_v59, %v717_v58  ;;  %v1220_v4 = vld [vmem:[#allocation2 + $0x538] sm:$0xff]  ;;  %v3583_v35 = vpack.c.bf16 %v1231_v26, %v1227_v25  ;;  %v4216_v59 = vld [vmem:[%s4174_s10 + $0x12] sm:$0xff] }
  0x7a   : > { %3229 = vmatmul.mubr.f32.gmra.mrb[2].mxu0 %v224_v33  ;;  %551 = vmatmul.mubr.f32.gmra.mrb[2].mxu1 %v2857_v36  ;;  %v1224_v5 = vld [vmem:[#allocation2 + $0x5b8] sm:$0xff]  ;;  %v2862_v33 = vld [vmem:[%s4174_s10 + $0x31] sm:$0xff] }
  0x7b   : > { %3231 = vmatprep.mubr.f32.mxu0 %v225_v37  ;;  %556 = vmatprep.mubr.f32.mxu1 %v3997_v0  ;;  %v230_v6 = vld [vmem:[%s4174_s10 + $0x48] sm:$0xff]  ;;  %v3577_v12 = vpack.c.bf16 %v1224_v5, %v1220_v4  ;;  %v1235_v37 = vld [vmem:[#allocation2 + $0x730] sm:$0xff]  ;;  %v2866_v4 = vld [vmem:[%s4174_s10 + $0x51] sm:$0xff] }
  0x7c   : > { %3564 = vmatpush1.bf16.msra.mxu1 %v3563_v38  ;;  %3500 = vmatpush3.bf16.msra.mxu0 %v3497_v30  ;;  %v719_v7 = vld [vmem:[#allocation2 + $0x518] sm:$0xff]  ;;  %v1239_v38 = vld [vmem:[#allocation2 + $0x7b0] sm:$0xff]  ;;  %v934_v26 = vld [vmem:[#allocation2 + $0x420] sm:$0xff] }
  0x7d   : > { %3566 = vmatprep.subr.bf16.mxu1 %v3565_v39  ;;  %3502 = vmatprep.subr.bf16.mxu0 %v3501_v42  ;;  %v720_v8 = vld [vmem:[#allocation2 + $0x598] sm:$0xff]  ;;  %v236_v39 = vld [vmem:[%s4174_s10 + $0x78] sm:$0xff] }
  0x7e   : > { %3232 = vmatmul.mubr.f32.gmra.mrb[4].mxu0 %v226_v45  ;;  %557 = vmatmul.mubr.f32.gmra.mrb[4].mxu1 %v2858_v48  ;;  %v2860_v9 = vld [vmem:[%s4174_s10 + $0x21] sm:$0xff]  ;;  %v3513_v15 = vpack.c.bf16 %v720_v8, %v719_v7  ;;  %v2861_v21 = vld [vmem:[%s4174_s10 + $0x29] sm:$0xff]  ;;  %v3587_v45 = vpack.c.bf16 %v1239_v38, %v1235_v37  ;;  %v3533_v7 = vpack.c.bf16 %v929_v2, %v927_v1  ;;  %v943_v37 = vld [vmem:[#allocation2 + $0x628] sm:$0xff] }
  0x7f   : > { %3234 = vmatprep.mubr.f32.mxu0 %v227_v49  ;;  %562 = vmatprep.mubr.f32.mxu1 %v3997_v0  ;;  %v1228_v16 = vld [vmem:[#allocation2 + $0x638] sm:$0xff]  ;;  %v926_v8 = vld [vmem:[#allocation2 + $0x220] sm:$0xff]  ;;  %v945_v38 = vld [vmem:[#allocation2 + $0x6a8] sm:$0xff] }
  0x80   : > { %3568 = vmatpush1.bf16.msra.mxu1 %v3567_v50  ;;  %3504 = vmatpush3.bf16.msra.mxu0 %v3501_v42  ;;  %v1232_v17 = vld [vmem:[#allocation2 + $0x6b8] sm:$0xff]  ;;  %v919_v42 = vld [vmem:[#allocation2 + $0x28] sm:$0xff]  ;;  %v1681_v2 = vld [vmem:[#allocation2 + $0x50] sm:$0xff] }
  0x81   : > { %3570 = vmatprep.subr.bf16.mxu1 %v3569_v51  ;;  %3506 = vmatprep.subr.bf16.mxu0 %v3505_v54  ;;  %v721_v19 = vld [vmem:[#allocation2 + $0x618] sm:$0xff]  ;;  %v3581_v24 = vpack.c.bf16 %v1232_v17, %v1228_v16  ;;  %v3525_v49 = vpack.c.bf16 %v921_v43, %v919_v42  ;;  %v930_v17 = vld [vmem:[#allocation2 + $0x320] sm:$0xff]  ;;  %v3549_v43 = vpack.c.bf16 %v945_v38, %v943_v37 }
  0x82   : > { %3235 = vmatmul.mubr.f32.gmra.mrb[6].mxu0 %v228_v57  ;;  %563 = vmatmul.mubr.f32.gmra.mrb[6].mxu1 %v2859_v60  ;;  %v722_v20 = vld [vmem:[#allocation2 + $0x698] sm:$0xff]  ;;  %v1201_v38 = vld [vmem:[#allocation2 + $0x2c0] sm:$0xff] }
  0x83   : > { %3237 = vmatprep.mubr.f32.mxu0 %v229_v61  ;;  %568 = vmatprep.mubr.f32.mxu1 %v3997_v0  ;;  %v3517_v27 = vpack.c.bf16 %v722_v20, %v721_v19  ;;  %v1236_v28 = vld [vmem:[#allocation2 + $0x738] sm:$0xff]  ;;  %v3529_v61 = vpack.c.bf16 %v925_v56, %v923_v55  ;;  %v935_v19 = vld [vmem:[#allocation2 + $0x428] sm:$0xff] }
  0x84   : > { %3572 = vmatpush1.bf16.msra.mxu1 %v3571_v62  ;;  %3508 = vmatpush3.bf16.msra.mxu0 %v3505_v54  ;;  %v1240_v29 = vld [vmem:[#allocation2 + $0x7b8] sm:$0xff]  ;;  %v920_v54 = vld [vmem:[#allocation2 + $0xa0] sm:$0xff]  ;;  %v937_v20 = vld [vmem:[#allocation2 + $0x4a8] sm:$0xff] }
  0x85   : > { %3574 = vmatprep.subr.bf16.mxu1 %v3573_v63  ;;  %3510 = vmatprep.subr.bf16.mxu0 %v3509_v3  ;;  %v234_v30 = vld [vmem:[%s4174_s10 + $0x68] sm:$0xff]  ;;  %v3585_v36 = vpack.c.bf16 %v1240_v29, %v1236_v28  ;;  %v3527_v60 = vpack.c.bf16 %v920_v54, %v918_v53  ;;  %v922_v62 = vld [vmem:[#allocation2 + $0x120] sm:$0xff]  ;;  %v3541_v25 = vpack.c.bf16 %v937_v20, %v935_v19  ;;  %v939_v28 = vld [vmem:[#allocation2 + $0x528] sm:$0xff] }
  0x86   : > { %3238 = vmatmul.mubr.f32.gmra.mrb[8].mxu0 %v230_v6  ;;  %569 = vmatmul.mubr.f32.gmra.mrb[8].mxu1 %v2860_v9  ;;  %v723_v31 = vld [vmem:[#allocation2 + $0x718] sm:$0xff]  ;;  %v924_v63 = vld [vmem:[#allocation2 + $0x1a0] sm:$0xff]  ;;  %v941_v29 = vld [vmem:[#allocation2 + $0x5a8] sm:$0xff] }
  0x87   : > { %3240 = vmatprep.mubr.f32.mxu0 %v231_v10  ;;  %574 = vmatprep.mubr.f32.mxu1 %v3997_v0  ;;  %v724_v32 = vld [vmem:[#allocation2 + $0x798] sm:$0xff]  ;;  %v3531_v6 = vpack.c.bf16 %v924_v63, %v922_v62  ;;  %v928_v9 = vld [vmem:[#allocation2 + $0x2a0] sm:$0xff]  ;;  %v931_v10 = vld [vmem:[#allocation2 + $0x328] sm:$0xff] }
  0x88   : > { %3576 = vmatpush1.bf16.msra.mxu1 %v3575_v11  ;;  %3512 = vmatpush3.bf16.msra.mxu0 %v3509_v3  ;;  %v3521_v40 = vpack.c.bf16 %v724_v32, %v723_v31  ;;  %v1682_v46 = vld [vmem:[#allocation2 + $0x58] sm:$0xff]  ;;  %v4220_v3 = vld [vmem:[%s4174_s10 + $0x1a] sm:$0xff]  ;;  %v4255_v32 = vld [vmem:[%s4174_s10 + $0x52] sm:$0xff] }
  0x89   : > { %3578 = vmatprep.subr.bf16.mxu1 %v3577_v12  ;;  %3514 = vmatprep.subr.bf16.mxu0 %v3513_v15  ;;  %v1684_v47 = vld [vmem:[#allocation2 + $0xd8] sm:$0xff]  ;;  %v933_v11 = vld [vmem:[#allocation2 + $0x3a8] sm:$0xff]  ;;  %v946_v53 = vld [vmem:[#allocation2 + $0x720] sm:$0xff] }
  0x8a   : > { %3241 = vmatmul.mubr.f32.gmra.mrb[10].mxu0 %v232_v18  ;;  %575 = vmatmul.mubr.f32.gmra.mrb[10].mxu1 %v2861_v21  ;;  %v3621_v48 = vpack.c.bf16 %v1684_v47, %v1682_v46  ;;  %v238_v50 = vld [vmem:[%s4174_s10 + $0x88] sm:$0xff]  ;;  %v3537_v16 = vpack.c.bf16 %v933_v11, %v931_v10  ;;  %v932_v18 = vld [vmem:[#allocation2 + $0x3a0] sm:$0xff]  ;;  %v4240_v21 = vld [vmem:[%s4174_s10 + $0x3a] sm:$0xff] }
  0x8b   : > { %3243 = vmatprep.mubr.f32.mxu0 %v233_v22  ;;  %580 = vmatprep.mubr.f32.mxu1 %v3997_v0  ;;  %v2864_v51 = vld [vmem:[%s4174_s10 + $0x41] sm:$0xff]  ;;  %v2875_v57 = vld [vmem:[%s4174_s10 + $0xa] sm:$0xff]  ;;  %v947_v46 = vld [vmem:[#allocation2 + $0x728] sm:$0xff] }
  0x8c   : > { %3580 = vmatpush1.bf16.msra.mxu1 %v3579_v23  ;;  %3516 = vmatpush3.bf16.msra.mxu0 %v3513_v15  ;;  %v2874_v52 = vld [vmem:[%s4174_s10 + $0x2] sm:$0xff]  ;;  %v4230_v12 = vld [vmem:[%s4174_s10 + $0x2a] sm:$0xff]  ;;  %v3535_v15 = vpack.c.bf16 %v928_v9, %v926_v8  ;;  %v949_v47 = vld [vmem:[#allocation2 + $0x7a8] sm:$0xff] }
  0x8d   : > { %3582 = vmatprep.subr.bf16.mxu1 %v3581_v24  ;;  %3518 = vmatprep.subr.bf16.mxu0 %v3517_v27  ;;  %v2865_v58 = vld [vmem:[%s4174_s10 + $0x49] sm:$0xff]  ;;  %v2868_v22 = vld [vmem:[%s4174_s10 + $0x61] sm:$0xff]  ;;  %v3539_v24 = vpack.c.bf16 %v932_v18, %v930_v17  ;;  %v1182_v55 = vld [vmem:[#allocation2 + $0x48] sm:$0xff] }
  0x8e   : > { %3244 = vmatmul.mubr.f32.gmra.mrb[12].mxu0 %v234_v30  ;;  %581 = vmatmul.mubr.f32.gmra.mrb[12].mxu1 %v2862_v33  ;;  %v4225_v5 = vld [vmem:[%s4174_s10 + $0x22] sm:$0xff]  ;;  %v4250_v30 = vld [vmem:[%s4174_s10 + $0x4a] sm:$0xff]  ;;  %v1186_v56 = vld [vmem:[#allocation2 + $0xc8] sm:$0xff] }
  0x8f   : > { %3246 = vmatprep.mubr.f32.mxu0 %v235_v34  ;;  %586 = vmatprep.mubr.f32.mxu1 %v3997_v0  ;;  %v4245_v23 = vld [vmem:[%s4174_s10 + $0x42] sm:$0xff]  ;;  %v3545_v34 = vpack.c.bf16 %v941_v29, %v939_v28  ;;  %v948_v54 = vld [vmem:[#allocation2 + $0x7a0] sm:$0xff]  ;;  %v3589_v62 = vpack.c.bf16 %v1186_v56, %v1182_v55  ;;  %v1190_v10 = vld [vmem:[#allocation2 + $0x148] sm:$0xff] }
  0x90   : > { %3584 = vmatpush1.bf16.msra.mxu1 %v3583_v35  ;;  %3520 = vmatpush3.bf16.msra.mxu0 %v3517_v27  ;;  %v936_v27 = vld [vmem:[#allocation2 + $0x4a0] sm:$0xff]  ;;  %v1686_v8 = vld [vmem:[#allocation2 + $0x158] sm:$0xff]  ;;  %v1194_v11 = vld [vmem:[#allocation2 + $0x1c8] sm:$0xff] }
  0x91   : > { %3586 = vmatprep.subr.bf16.mxu1 %v3585_v36  ;;  %3522 = vmatprep.subr.bf16.mxu0 %v3521_v40  ;;  %v2869_v31 = vld [vmem:[%s4174_s10 + $0x69] sm:$0xff]  ;;  %v3543_v33 = vpack.c.bf16 %v936_v27, %v934_v26  ;;  %v1685_v18 = vld [vmem:[#allocation2 + $0x150] sm:$0xff]  ;;  %v1198_v27 = vld [vmem:[#allocation2 + $0x248] sm:$0xff] }
  0x92   : > { %3247 = vmatmul.mubr.f32.gmra.mrb[14].mxu0 %v236_v39  ;;  %587 = vmatmul.mubr.f32.gmra.mrb[14].mxu1 %v2863_v41  ;;  %v938_v35 = vld [vmem:[#allocation2 + $0x520] sm:$0xff]  ;;  %v4260_v39 = vld [vmem:[%s4174_s10 + $0x5a] sm:$0xff]  ;;  %v4265_v41 = vld [vmem:[%s4174_s10 + $0x62] sm:$0xff] }
  0x93   : > { %3249 = vmatprep.mubr.f32.mxu0 %v237_v44  ;;  %592 = vmatprep.mubr.f32.mxu1 %v3997_v0  ;;  %v940_v36 = vld [vmem:[#allocation2 + $0x5a0] sm:$0xff]  ;;  %v1688_v9 = vld [vmem:[#allocation2 + $0x1d8] sm:$0xff]  ;;  %v1687_v19 = vld [vmem:[#allocation2 + $0x1d0] sm:$0xff] }
  0x94   : > { %3588 = vmatpush1.bf16.msra.mxu1 %v3587_v45  ;;  %3524 = vmatpush3.bf16.msra.mxu0 %v3521_v40  ;;  %v2870_v40 = vld [vmem:[%s4174_s10 + $0x71] sm:$0xff]  ;;  %v3547_v42 = vpack.c.bf16 %v940_v36, %v938_v35  ;;  %v2873_v1 = vld [vmem:[%s4174_s10 + $0x89] sm:$0xff]  ;;  %v3625_v17 = vpack.c.bf16 %v1688_v9, %v1686_v8  ;;  %v4305_v29 = vld [vmem:[%s4174_s10 + $0x1b] sm:$0xff] }
  0x95   : > { %3622 = vmatprep.subr.bf16.mxu1 %v3621_v48  ;;  %3526 = vmatprep.subr.bf16.mxu0 %v3525_v49  ;;  %v942_v44 = vld [vmem:[#allocation2 + $0x620] sm:$0xff]  ;;  %v2871_v49 = vld [vmem:[%s4174_s10 + $0x79] sm:$0xff]  ;;  %v1692_v26 = vld [vmem:[#allocation2 + $0x2d8] sm:$0xff] }
  0x96   : > { %3250 = vmatmul.mubr.f32.gmra.mrb[16].mxu0 %v238_v50  ;;  %593 = vmatmul.mubr.f32.gmra.mrb[16].mxu1 %v2864_v51  ;;  %v944_v45 = vld [vmem:[#allocation2 + $0x6a0] sm:$0xff]  ;;  %v1202_v28 = vld [vmem:[#allocation2 + $0x2c8] sm:$0xff]  ;;  %v1691_v35 = vld [vmem:[#allocation2 + $0x2d0] sm:$0xff] }
  0x97   : > { %3284 = vmatprep.mubr.f32.mxu0 %v2874_v52  ;;  %598 = vmatprep.mubr.f32.mxu1 %v3997_v0  ;;  %v4270_v48 = vld [vmem:[%s4174_s10 + $0x6a] sm:$0xff]  ;;  %v4275_v50 = vld [vmem:[%s4174_s10 + $0x72] sm:$0xff]  ;;  %v3551_v51 = vpack.c.bf16 %v944_v45, %v942_v44  ;;  %v3553_v52 = vpack.c.bf16 %v949_v47, %v947_v46  ;;  %v3597_v37 = vpack.c.bf16 %v1202_v28, %v1198_v27 }
  0x98   : > { %v4290_v63 = vld [vmem:[%s4174_s10 + $0x8a] sm:$0xff]  ;;  %v1210_v44 = vld [vmem:[#allocation2 + $0x3c8] sm:$0xff] }
  0x99   : > { %v1189_v20 = vld [vmem:[#allocation2 + $0x140] sm:$0xff]  ;;  %v4312_v45 = vld [vmem:[%s4174_s10 + $0x23] sm:$0xff] }
  0x9a   : > { %3285 = vmatmul.mubr.f32.vlgmr.msra.gmra.mrb[18].mxu0 %v2875_v57  ;;  %599 = vmatmul.mubr.f32.gmra.mrb[18].mxu1 %v2865_v58  ;;  %v4280_v57 = vld [vmem:[%s4174_s10 + $0x7a] sm:$0xff]  ;;  %v1197_v36 = vld [vmem:[#allocation2 + $0x240] sm:$0xff]  ;;  %v1698_v55 = vld [vmem:[#allocation2 + $0x458] sm:$0xff] }
  0x9b   : > { %3287 = vmatprep.mubr.f32.mxu0 %v4216_v59  ;;  %604 = vmatprep.mubr.f32.mxu1 %v3997_v0  ;;  %v2872_v58 = vld [vmem:[%s4174_s10 + $0x81] sm:$0xff]  ;;  %v1217_v9 = vld [vmem:[#allocation2 + $0x4c0] sm:$0xff] }
  0x9c   : > { %3528 = vmatpush1.bf16.msra.mxu0 %v3527_v60  ;;  %v4285_v60 = vld [vmem:[%s4174_s10 + $0x82] sm:$0xff] }
  0x9d   : > { %3530 = vmatprep.subr.bf16.mxu0 %v3529_v61  ;;  %v3555_v61 = vpack.c.bf16 %v948_v54, %v946_v53  ;;  %v1209_v54 = vld [vmem:[#allocation2 + $0x3c0] sm:$0xff]  ;;  %v1700_v56 = vld [vmem:[#allocation2 + $0x4d8] sm:$0xff] }
  0x9e   : > { %3288 = vmatmul.mubr.f32.gmra.mrb[20].mxu0 %v4220_v3  ;;  %605 = vmatmul.mubr.f32.gmra.mrb[20].mxu1 %v2866_v4  ;;  %v1683_v4 = vld [vmem:[#allocation2 + $0xd0] sm:$0xff]  ;;  %v1706_v27 = vld [vmem:[#allocation2 + $0x658] sm:$0xff] }
  0x9f   : > { %3290 = vmatprep.mubr.f32.mxu0 %v4225_v5  ;;  %610 = vmatprep.mubr.f32.mxu1 %v3997_v0  ;;  %v1708_v28 = vld [vmem:[#allocation2 + $0x6d8] sm:$0xff] }
  0xa0   : > { %3532 = vmatpush1.bf16.msra.mxu0 %v3531_v6  ;;  %v1181_v6 = vld [vmem:[#allocation2 + $0x40] sm:$0xff] }
  0xa1   : > { %3534 = vmatprep.subr.bf16.mxu0 %v3533_v7  ;;  %v1185_v7 = vld [vmem:[#allocation2 + $0xc0] sm:$0xff] }
  0xa2   : > { %3291 = vmatmul.mubr.f32.gmra.mrb[22].mxu0 %v4230_v12  ;;  %611 = vmatmul.mubr.f32.gmra.mrb[22].mxu1 %v2867_v13  ;;  %v4298_v13 = vld [vmem:[%s4174_s10 + $0x13] sm:$0xff] }
  0xa3   : > { %3293 = vmatprep.mubr.f32.mxu0 %v4235_v14  ;;  %616 = vmatprep.mubr.f32.mxu1 %v3997_v0 }
  0xa4   : > { %3536 = vmatpush1.bf16.msra.mxu0 %v3535_v15  ;;  %v3623_v15 = vpack.c.bf16 %v1683_v4, %v1681_v2  ;;  %v3637_v2 = vpack.c.bf16 %v1700_v56, %v1698_v55  ;;  %v1697_v4 = vld [vmem:[#allocation2 + $0x450] sm:$0xff]  ;;  %v1241_v56 = vld [vmem:[#allocation2 + $0x7c0] sm:$0xff] }
  0xa5   : > { %3538 = vmatprep.subr.bf16.mxu0 %v3537_v16  ;;  %v3591_v16 = vpack.c.bf16 %v1185_v7, %v1181_v6  ;;  %v1699_v6 = vld [vmem:[#allocation2 + $0x4d0] sm:$0xff]  ;;  %v1213_v7 = vld [vmem:[#allocation2 + $0x440] sm:$0xff] }
  0xa6   : > { %3294 = vmatmul.mubr.f32.gmra.mrb[24].mxu0 %v4240_v21  ;;  %617 = vmatmul.mubr.f32.gmra.mrb[24].mxu1 %v2868_v22  ;;  %v3593_v22 = vpack.c.bf16 %v1194_v11, %v1190_v10  ;;  %v1702_v10 = vld [vmem:[#allocation2 + $0x558] sm:$0xff] }
  0xa7   : > { %3296 = vmatprep.mubr.f32.mxu0 %v4245_v23  ;;  %622 = vmatprep.mubr.f32.mxu1 %v3997_v0  ;;  %v1704_v11 = vld [vmem:[#allocation2 + $0x5d8] sm:$0xff] }
  0xa8   : > { %3540 = vmatpush1.bf16.msra.mxu0 %v3539_v24  ;;  %v1193_v24 = vld [vmem:[#allocation2 + $0x1c0] sm:$0xff] }
  0xa9   : > { %3542 = vmatprep.subr.bf16.mxu0 %v3541_v25  ;;  %v1690_v25 = vld [vmem:[#allocation2 + $0x258] sm:$0xff] }
  0xaa   : > { %3297 = vmatmul.mubr.f32.gmra.mrb[26].mxu0 %v4250_v30  ;;  %623 = vmatmul.mubr.f32.gmra.mrb[26].mxu1 %v2869_v31  ;;  %v3627_v31 = vpack.c.bf16 %v1687_v19, %v1685_v18  ;;  %v3639_v18 = vpack.c.bf16 %v1699_v6, %v1697_v4  ;;  %v3641_v19 = vpack.c.bf16 %v1704_v11, %v1702_v10  ;;  %v4414_v10 = vld [vmem:[%s4174_s10 + $0x93] sm:$0xff]  ;;  %v4421_v11 = vld [vmem:[%s4174_s10 + $0x9b] sm:$0xff] }
  0xab   : > { %3299 = vmatprep.mubr.f32.mxu0 %v4255_v32  ;;  %628 = vmatprep.mubr.f32.mxu1 %v3997_v0 }
  0xac   : > { %3544 = vmatpush1.bf16.msra.mxu0 %v3543_v33  ;;  %v3595_v33 = vpack.c.bf16 %v1193_v24, %v1189_v20  ;;  %v1701_v20 = vld [vmem:[#allocation2 + $0x550] sm:$0xff]  ;;  %v1221_v24 = vld [vmem:[#allocation2 + $0x540] sm:$0xff] }
  0xad   : > { %3546 = vmatprep.subr.bf16.mxu0 %v3545_v34  ;;  %v1689_v34 = vld [vmem:[#allocation2 + $0x250] sm:$0xff] }
  0xae   : > { %3300 = vmatmul.mubr.f32.gmra.mrb[28].mxu0 %v4260_v39  ;;  %629 = vmatmul.mubr.f32.gmra.mrb[28].mxu1 %v2870_v40  ;;  %v1694_v40 = vld [vmem:[#allocation2 + $0x358] sm:$0xff]  ;;  %v3631_v46 = vpack.c.bf16 %v1691_v35, %v1689_v34  ;;  %v3645_v35 = vpack.c.bf16 %v1708_v28, %v1706_v27  ;;  %v2160_v28 = vld [vmem:[#allocation2 + $0x270] sm:$0xff] }
  0xaf   : > { %3302 = vmatprep.mubr.f32.mxu0 %v4265_v41  ;;  %634 = vmatprep.mubr.f32.mxu1 %v3997_v0 }
  0xb0   : > { %3548 = vmatpush1.bf16.msra.mxu0 %v3547_v42  ;;  %v1696_v42 = vld [vmem:[#allocation2 + $0x3d8] sm:$0xff] }
  0xb1   : > { %3550 = vmatprep.subr.bf16.mxu0 %v3549_v43  ;;  %v1206_v43 = vld [vmem:[#allocation2 + $0x348] sm:$0xff]  ;;  %v3633_v47 = vpack.c.bf16 %v1696_v42, %v1694_v40  ;;  %v1233_v42 = vld [vmem:[#allocation2 + $0x6c0] sm:$0xff] }
  0xb2   : > { %3303 = vmatmul.mubr.f32.gmra.mrb[30].mxu0 %v4270_v48  ;;  %635 = vmatmul.mubr.f32.gmra.mrb[30].mxu1 %v2871_v49  ;;  %v1693_v49 = vld [vmem:[#allocation2 + $0x350] sm:$0xff]  ;;  %v3601_v53 = vpack.c.bf16 %v1210_v44, %v1206_v43  ;;  %v1710_v43 = vld [vmem:[#allocation2 + $0x758] sm:$0xff] }
  0xb3   : > { %3305 = vmatprep.mubr.f32.mxu0 %v4275_v50  ;;  %640 = vmatprep.mubr.f32.mxu1 %v3997_v0  ;;  %v1712_v44 = vld [vmem:[#allocation2 + $0x7d8] sm:$0xff] }
  0xb4   : > { %3552 = vmatpush1.bf16.msra.mxu0 %v3551_v51  ;;  %v1695_v51 = vld [vmem:[#allocation2 + $0x3d0] sm:$0xff] }
  0xb5   : > { %3554 = vmatprep.subr.bf16.mxu0 %v3553_v52  ;;  %v1205_v52 = vld [vmem:[#allocation2 + $0x340] sm:$0xff] }
  0xb6   : > { %3306 = vmatmul.mubr.f32.gmra.mrb[32].mxu0 %v4280_v57  ;;  %641 = vmatmul.mubr.f32.gmra.mrb[32].mxu1 %v2872_v58  ;;  %v1214_v58 = vld [vmem:[#allocation2 + $0x448] sm:$0xff] }
  0xb7   : > { %3308 = vmatprep.mubr.f32.mxu0 %v4285_v60  ;;  %646 = vmatprep.mubr.f32.mxu1 %v3997_v0 }
  0xb8   : > { %3556 = vmatpush1.bf16.msra.mxu0 %v3555_v61  ;;  %v1218_v61 = vld [vmem:[#allocation2 + $0x4c8] sm:$0xff] }
  0xb9   : > { %3590 = vmatprep.subr.bf16.mxu0 %v3589_v62  ;;  %v4319_v62 = vld [vmem:[%s4174_s10 + $0x2b] sm:$0xff]  ;;  %v3605_v8 = vpack.c.bf16 %v1218_v61, %v1214_v58  ;;  %v2152_v58 = vld [vmem:[#allocation2 + $0x70] sm:$0xff] }
  0xba   : > { %3309 = vmatmul.mubr.f32.gmra.mrb[34].mxu0 %v4290_v63  ;;  %647 = vmatmul.mubr.f32.gmra.mrb[34].mxu1 %v2873_v1  ;;  %v3635_v1 = vpack.c.bf16 %v1695_v51, %v1693_v49  ;;  %v3649_v51 = vpack.c.bf16 %v1712_v44, %v1710_v43  ;;  %v2154_v61 = vld [vmem:[#allocation2 + $0xf0] sm:$0xff]  ;;  %v1948_v43 = vld [vmem:[#allocation2 + $0x360] sm:$0xff] }
  0xbb   : > { %1014 = vmatprep.mubr.f32.mxu0 %v3997_v0  ;;  %1307 = vmatprep.mubr.f32.mxu1 %v3997_v0  ;;  %v3685_v6 = vpack.c.bf16 %v2154_v61, %v2152_v58  ;;  %v1949_v44 = vld [vmem:[#allocation2 + $0x3e0] sm:$0xff]  ;;  %v2167_v61 = vld [vmem:[#allocation2 + $0x468] sm:$0xff] }
  0xbe   : > { %1015 = vmatmul.mubr.f32.vlgmr.msra.gmra.mrb[36].mxu0 %v4216_v59  ;;  %1308 = vmatmul.mubr.f32.vlgmr.msra.gmra.mrb[36].mxu1 %v4298_v13  ;;  %v3629_v59 = vpack.c.bf16 %v1692_v26, %v1690_v25  ;;  %v1225_v26 = vld [vmem:[#allocation2 + $0x5c0] sm:$0xff] }
  0xbf   : > { %1020 = vmatprep.mubr.f32.mxu0 %v3997_v0  ;;  %3624 = vmatpush1.bf16.msra.mxu1 %v3623_v15  ;;  %v1222_v15 = vld [vmem:[#allocation2 + $0x548] sm:$0xff] }
  0xc0   : > { %1313 = vmatprep.mubr.f32.mxu1 %v3997_v0  ;;  %3592 = vmatpush1.bf16.msra.mxu0 %v3591_v16  ;;  %v1226_v16 = vld [vmem:[#allocation2 + $0x5c8] sm:$0xff] }
  0xc1   : > { %3626 = vmatprep.subr.bf16.mxu1 %v3625_v17  ;;  %3594 = vmatprep.subr.bf16.mxu0 %v3593_v22  ;;  %v4326_v17 = vld [vmem:[%s4174_s10 + $0x33] sm:$0xff]  ;;  %v1703_v22 = vld [vmem:[#allocation2 + $0x5d0] sm:$0xff]  ;;  %v3609_v25 = vpack.c.bf16 %v1226_v16, %v1222_v15 }
  0xc2   : > { %1021 = vmatmul.mubr.f32.gmra.mrb[38].mxu0 %v4220_v3  ;;  %1314 = vmatmul.mubr.f32.gmra.mrb[38].mxu1 %v4305_v29  ;;  %v3599_v3 = vpack.c.bf16 %v1201_v38, %v1197_v36  ;;  %v3643_v34 = vpack.c.bf16 %v1703_v22, %v1701_v20  ;;  %v1705_v36 = vld [vmem:[#allocation2 + $0x650] sm:$0xff]  ;;  %v1229_v38 = vld [vmem:[#allocation2 + $0x640] sm:$0xff]  ;;  %v2153_v15 = vld [vmem:[#allocation2 + $0xe8] sm:$0xff] }
  0xc3   : > { %1026 = vmatprep.mubr.f32.mxu0 %v3997_v0  ;;  %1319 = vmatprep.mubr.f32.mxu1 %v3997_v0  ;;  %v2156_v16 = vld [vmem:[#allocation2 + $0x170] sm:$0xff]  ;;  %v2928_v20 = vld [vmem:[%s4174_s10 + $0x14] sm:$0xff] }
  0xc4   : > { %3628 = vmatpush1.bf16.msra.mxu1 %v3627_v31  ;;  %3596 = vmatpush1.bf16.msra.mxu0 %v3595_v33  ;;  %v1230_v31 = vld [vmem:[#allocation2 + $0x648] sm:$0xff] }
  0xc5   : > { %3630 = vmatprep.subr.bf16.mxu1 %v3629_v59  ;;  %3598 = vmatprep.subr.bf16.mxu0 %v3597_v37  ;;  %v1234_v33 = vld [vmem:[#allocation2 + $0x6c8] sm:$0xff]  ;;  %v1707_v37 = vld [vmem:[#allocation2 + $0x6d0] sm:$0xff] }
  0xc6   : > { %1027 = vmatmul.mubr.f32.gmra.mrb[40].mxu0 %v4225_v5  ;;  %1320 = vmatmul.mubr.f32.gmra.mrb[40].mxu1 %v4312_v45  ;;  %v3603_v5 = vpack.c.bf16 %v1209_v54, %v1205_v52  ;;  %v4333_v59 = vld [vmem:[%s4174_s10 + $0x3b] sm:$0xff]  ;;  %v3613_v40 = vpack.c.bf16 %v1234_v33, %v1230_v31  ;;  %v3647_v49 = vpack.c.bf16 %v1707_v37, %v1705_v36  ;;  %v1237_v54 = vld [vmem:[#allocation2 + $0x740] sm:$0xff] }
  0xc7   : > { %1032 = vmatprep.mubr.f32.mxu0 %v3997_v0  ;;  %1325 = vmatprep.mubr.f32.mxu1 %v3997_v0  ;;  %v1709_v52 = vld [vmem:[#allocation2 + $0x750] sm:$0xff]  ;;  %v1946_v33 = vld [vmem:[#allocation2 + $0x260] sm:$0xff]  ;;  %v2159_v37 = vld [vmem:[#allocation2 + $0x268] sm:$0xff] }
  0xc8   : > { %3632 = vmatpush1.bf16.msra.mxu1 %v3631_v46  ;;  %3600 = vmatpush1.bf16.msra.mxu0 %v3599_v3  ;;  %v1238_v46 = vld [vmem:[#allocation2 + $0x748] sm:$0xff]  ;;  %v2162_v31 = vld [vmem:[#allocation2 + $0x2f0] sm:$0xff] }
  0xc9   : > { %3634 = vmatprep.subr.bf16.mxu1 %v3633_v47  ;;  %3602 = vmatprep.subr.bf16.mxu0 %v3601_v53  ;;  %v1242_v3 = vld [vmem:[#allocation2 + $0x7c8] sm:$0xff]  ;;  %v4340_v47 = vld [vmem:[%s4174_s10 + $0x43] sm:$0xff]  ;;  %v3693_v36 = vpack.c.bf16 %v2162_v31, %v2160_v28 }
  0xca   : > { %1033 = vmatmul.mubr.f32.gmra.mrb[42].mxu0 %v4230_v12  ;;  %1326 = vmatmul.mubr.f32.gmra.mrb[42].mxu1 %v4319_v62  ;;  %v3607_v12 = vpack.c.bf16 %v1217_v9, %v1213_v7  ;;  %v1711_v53 = vld [vmem:[#allocation2 + $0x7d0] sm:$0xff]  ;;  %v3617_v55 = vpack.c.bf16 %v1242_v3, %v1238_v46  ;;  %v4378_v9 = vld [vmem:[%s4174_s10 + $0x6b] sm:$0xff] }
  0xcb   : > { %1038 = vmatprep.mubr.f32.mxu0 %v3997_v0  ;;  %1331 = vmatprep.mubr.f32.mxu1 %v3997_v0  ;;  %v3651_v4 = vpack.c.bf16 %v1711_v53, %v1709_v52  ;;  %v4436_v46 = vld [vmem:[%s4174_s10 + $0x24] sm:$0xff] }
  0xcc   : > { %3636 = vmatpush1.bf16.msra.mxu1 %v3635_v1  ;;  %3604 = vmatpush1.bf16.msra.mxu0 %v3603_v5  ;;  %v1942_v1 = vld [vmem:[#allocation2 + $0x60] sm:$0xff]  ;;  %v2168_v52 = vld [vmem:[#allocation2 + $0x470] sm:$0xff] }
  0xcd   : > { %3638 = vmatprep.subr.bf16.mxu1 %v3637_v2  ;;  %3606 = vmatprep.subr.bf16.mxu0 %v3605_v8  ;;  %v1943_v5 = vld [vmem:[#allocation2 + $0xe0] sm:$0xff]  ;;  %v2170_v53 = vld [vmem:[#allocation2 + $0x4f0] sm:$0xff] }
  0xce   : > { %1039 = vmatmul.mubr.f32.gmra.mrb[44].mxu0 %v4235_v14  ;;  %1332 = vmatmul.mubr.f32.gmra.mrb[44].mxu1 %v4326_v17  ;;  %v3611_v14 = vpack.c.bf16 %v1225_v26, %v1221_v24  ;;  %v4347_v2 = vld [vmem:[%s4174_s10 + $0x4b] sm:$0xff]  ;;  %v4350_v7 = vpack.c.bf16 %v1943_v5, %v1942_v1  ;;  %v4356_v8 = vld [vmem:[%s4174_s10 + $0x53] sm:$0xff]  ;;  %v2180_v28 = vld [vmem:[#allocation2 + $0x770] sm:$0xff] }
  0xcf   : > { %1044 = vmatprep.mubr.f32.mxu0 %v3997_v0  ;;  %1337 = vmatprep.mubr.f32.mxu1 %v3997_v0  ;;  %v2157_v26 = vld [vmem:[#allocation2 + $0x1e8] sm:$0xff]  ;;  %v2182_v31 = vld [vmem:[#allocation2 + $0x7f0] sm:$0xff] }
  0xd0   : > { %3640 = vmatpush1.bf16.msra.mxu1 %v3639_v18  ;;  %3608 = vmatpush1.bf16.msra.mxu0 %v3607_v12  ;;  %v2158_v18 = vld [vmem:[#allocation2 + $0x1f0] sm:$0xff]  ;;  %v1944_v12 = vld [vmem:[#allocation2 + $0x160] sm:$0xff]  ;;  %v2169_v1 = vld [vmem:[#allocation2 + $0x4e8] sm:$0xff] }
  0xd1   : > { %3642 = vmatprep.subr.bf16.mxu1 %v3641_v19  ;;  %3610 = vmatprep.subr.bf16.mxu0 %v3609_v25  ;;  %v1945_v19 = vld [vmem:[#allocation2 + $0x1e0] sm:$0xff]  ;;  %v3689_v24 = vpack.c.bf16 %v2158_v18, %v2156_v16  ;;  %v2155_v25 = vld [vmem:[#allocation2 + $0x168] sm:$0xff]  ;;  %v2176_v18 = vld [vmem:[#allocation2 + $0x670] sm:$0xff] }
  0xd2   : > { %1045 = vmatmul.mubr.f32.gmra.mrb[46].mxu0 %v4240_v21  ;;  %1338 = vmatmul.mubr.f32.gmra.mrb[46].mxu1 %v4333_v59  ;;  %v3615_v21 = vpack.c.bf16 %v1233_v42, %v1229_v38  ;;  %v3657_v27 = vpack.c.bf16 %v1945_v19, %v1944_v12  ;;  %v2166_v42 = vld [vmem:[#allocation2 + $0x3f0] sm:$0xff]  ;;  %v1954_v19 = vld [vmem:[#allocation2 + $0x660] sm:$0xff] }
  0xd3   : > { %1050 = vmatprep.mubr.f32.mxu0 %v3997_v0  ;;  %1343 = vmatprep.mubr.f32.mxu1 %v3997_v0  ;;  %v2178_v12 = vld [vmem:[#allocation2 + $0x6f0] sm:$0xff] }
  0xd4   : > { %3644 = vmatpush1.bf16.msra.mxu1 %v3643_v34  ;;  %3612 = vmatpush1.bf16.msra.mxu0 %v3611_v14  ;;  %v1947_v34 = vld [vmem:[#allocation2 + $0x2e0] sm:$0xff]  ;;  %v2929_v14 = vld [vmem:[%s4174_s10 + $0x1c] sm:$0xff] }
  0xd5   : > { %3646 = vmatprep.subr.bf16.mxu1 %v3645_v35  ;;  %3614 = vmatprep.subr.bf16.mxu0 %v3613_v40  ;;  %v3691_v35 = vpack.c.bf16 %v2157_v26, %v2155_v25  ;;  %v3661_v38 = vpack.c.bf16 %v1947_v34, %v1946_v33  ;;  %v2164_v40 = vld [vmem:[#allocation2 + $0x370] sm:$0xff]  ;;  %v2175_v25 = vld [vmem:[#allocation2 + $0x668] sm:$0xff]  ;;  %v1956_v33 = vld [vmem:[#allocation2 + $0x760] sm:$0xff] }
  0xd6   : > { %1051 = vmatmul.mubr.f32.gmra.mrb[48].mxu0 %v4245_v23  ;;  %1344 = vmatmul.mubr.f32.gmra.mrb[48].mxu1 %v4340_v47  ;;  %v3619_v23 = vpack.c.bf16 %v1241_v56, %v1237_v54  ;;  %v1950_v54 = vld [vmem:[#allocation2 + $0x460] sm:$0xff]  ;;  %v2177_v26 = vld [vmem:[#allocation2 + $0x6e8] sm:$0xff] }
  0xd7   : > { %1056 = vmatprep.mubr.f32.mxu0 %v3997_v0  ;;  %1349 = vmatprep.mubr.f32.mxu1 %v3997_v0  ;;  %v4443_v56 = vld [vmem:[%s4174_s10 + $0x2c] sm:$0xff] }
  0xd8   : > { %3648 = vmatpush1.bf16.msra.mxu1 %v3647_v49  ;;  %3616 = vmatpush1.bf16.msra.mxu0 %v3615_v21  ;;  %v3697_v49 = vpack.c.bf16 %v2166_v42, %v2164_v40  ;;  %v2165_v21 = vld [vmem:[#allocation2 + $0x3e8] sm:$0xff]  ;;  %v1957_v34 = vld [vmem:[#allocation2 + $0x7e0] sm:$0xff]  ;;  %v2413_v40 = vld [vmem:[#allocation2 + $0xf8] sm:$0xff] }
  0xd9   : > { %3650 = vmatprep.subr.bf16.mxu1 %v3649_v51  ;;  %3618 = vmatprep.subr.bf16.mxu0 %v3617_v55  ;;  %v3665_v51 = vpack.c.bf16 %v1949_v44, %v1948_v43  ;;  %v1951_v55 = vld [vmem:[#allocation2 + $0x4e0] sm:$0xff] }
  0xda   : > { %1057 = vmatmul.mubr.f32.gmra.mrb[50].mxu0 %v4250_v30  ;;  %1350 = vmatmul.mubr.f32.gmra.mrb[50].mxu1 %v4347_v2  ;;  %v4364_v30 = vld [vmem:[%s4174_s10 + $0x5b] sm:$0xff]  ;;  %v3669_v5 = vpack.c.bf16 %v1951_v55, %v1950_v54  ;;  %v4471_v42 = vld [vmem:[%s4174_s10 + $0x4c] sm:$0xff] }
  0xdb   : > { %1062 = vmatprep.mubr.f32.mxu0 %v3997_v0  ;;  %1355 = vmatprep.mubr.f32.mxu1 %v3997_v0  ;;  %v4480_v44 = vld [vmem:[%s4174_s10 + $0x54] sm:$0xff]  ;;  %v2964_v55 = vld [vmem:[%s4174_s10 + $0x25] sm:$0xff] }
  0xdc   : > { %3652 = vmatpush1.bf16.msra.mxu1 %v3651_v4  ;;  %3620 = vmatpush1.bf16.msra.mxu0 %v3619_v23  ;;  %v2172_v4 = vld [vmem:[#allocation2 + $0x570] sm:$0xff] }
  0xdd   : > { %3686 = vmatprep.subr.bf16.mxu1 %v3685_v6  ;;  %3654 = vmatprep.subr.bf16.mxu0 %v4350_v7  ;;  %v2174_v23 = vld [vmem:[#allocation2 + $0x5f0] sm:$0xff]  ;;  %v1952_v6 = vld [vmem:[#allocation2 + $0x560] sm:$0xff] }
  0xde   : > { %1063 = vmatmul.mubr.f32.gmra.mrb[52].mxu0 %v4255_v32  ;;  %1356 = vmatmul.mubr.f32.gmra.mrb[52].mxu1 %v4356_v8  ;;  %v4371_v32 = vld [vmem:[%s4174_s10 + $0x63] sm:$0xff] }
  0xdf   : > { %1068 = vmatprep.mubr.f32.mxu0 %v3997_v0  ;;  %1361 = vmatprep.mubr.f32.mxu1 %v3997_v0 }
  0xe2   : > { %1069 = vmatmul.mubr.f32.gmra.mrb[54].mxu0 %v4260_v39  ;;  %1362 = vmatmul.mubr.f32.gmra.mrb[54].mxu1 %v4364_v30  ;;  %v4385_v39 = vld [vmem:[%s4174_s10 + $0x73] sm:$0xff] }
  0xe3   : > { %1074 = vmatprep.mubr.f32.mxu0 %v3997_v0  ;;  %1367 = vmatprep.mubr.f32.mxu1 %v3997_v0 }
  0xe6   : > { %1075 = vmatmul.mubr.f32.gmra.mrb[56].mxu0 %v4265_v41  ;;  %1368 = vmatmul.mubr.f32.gmra.mrb[56].mxu1 %v4371_v32  ;;  %v4392_v41 = vld [vmem:[%s4174_s10 + $0x7b] sm:$0xff] }
  0xe7   : > { %1080 = vmatprep.mubr.f32.mxu0 %v3997_v0  ;;  %1373 = vmatprep.mubr.f32.mxu1 %v3997_v0 }
  0xea   : > { %1081 = vmatmul.mubr.f32.gmra.mrb[58].mxu0 %v4270_v48  ;;  %1374 = vmatmul.mubr.f32.gmra.mrb[58].mxu1 %v4378_v9  ;;  %v4399_v48 = vld [vmem:[%s4174_s10 + $0x83] sm:$0xff] }
  0xeb   : > { %1086 = vmatprep.mubr.f32.mxu0 %v3997_v0  ;;  %1379 = vmatprep.mubr.f32.mxu1 %v3997_v0 }
  0xee   : > { %1087 = vmatmul.mubr.f32.gmra.mrb[60].mxu0 %v4275_v50  ;;  %1380 = vmatmul.mubr.f32.gmra.mrb[60].mxu1 %v4385_v39  ;;  %v4406_v50 = vld [vmem:[%s4174_s10 + $0x8b] sm:$0xff] }
  0xef   : > { %1092 = vmatprep.mubr.f32.mxu0 %v3997_v0  ;;  %1385 = vmatprep.mubr.f32.mxu1 %v3997_v0 }
  0xf2   : > { %1093 = vmatmul.mubr.f32.gmra.mrb[62].mxu0 %v4280_v57  ;;  %1386 = vmatmul.mubr.f32.gmra.mrb[62].mxu1 %v4392_v41  ;;  %v2908_v57 = vld [vmem:[%s4174_s10 + $0x92] sm:$0xff] }
  0xf3   : > { %1098 = vmatprep.mubr.f32.mxu0 %v3997_v0  ;;  %1391 = vmatprep.mubr.f32.mxu1 %v3997_v0 }
  0xf6   : > { %1099 = vmatmul.mubr.f32.gmra.mrb[64].mxu0 %v4285_v60  ;;  %1392 = vmatmul.mubr.f32.gmra.mrb[64].mxu1 %v4399_v48  ;;  %v2909_v60 = vld [vmem:[%s4174_s10 + $0x9a] sm:$0xff] }
  0xf7   : > { %1104 = vmatprep.mubr.f32.mxu0 %v3997_v0  ;;  %1397 = vmatprep.mubr.f32.mxu1 %v3997_v0 }
  0xfa   : > { %1105 = vmatmul.mubr.f32.gmra.mrb[66].mxu0 %v4290_v63  ;;  %1398 = vmatmul.mubr.f32.gmra.mrb[66].mxu1 %v4406_v50  ;;  %v2151_v63 = vld [vmem:[#allocation2 + $0x68] sm:$0xff] }
  0xfb   : > { %1110 = vmatprep.mubr.f32.mxu0 %v3997_v0  ;;  %1403 = vmatprep.mubr.f32.mxu1 %v3997_v0  ;;  %v3687_v22 = vpack.c.bf16 %v2153_v15, %v2151_v63  ;;  %v2171_v63 = vld [vmem:[#allocation2 + $0x568] sm:$0xff] }
  0xfc   : > { %v2173_v15 = vld [vmem:[#allocation2 + $0x5e8] sm:$0xff] }
  0xfe   : > { %1111 = vmatmul.mubr.f32.gmra.mrb[68].mxu0 %v2908_v57  ;;  %1404 = vmatmul.mubr.f32.gmra.mrb[68].mxu1 %v4414_v10  ;;  %v4450_v57 = vld [vmem:[%s4174_s10 + $0x34] sm:$0xff] }
  0xff   : > { %1116 = vmatprep.mubr.f32.mxu0 %v3997_v0  ;;  %1409 = vmatprep.mubr.f32.mxu1 %v3997_v0 }
 0x102   : > { %1117 = vmatmul.mubr.f32.gmra.mrb[70].mxu0 %v2909_v60  ;;  %1410 = vmatmul.mubr.f32.gmra.mrb[70].mxu1 %v4421_v11  ;;  %v3703_v60 = vpack.c.bf16 %v2169_v1, %v2167_v61 }
 0x103   : > { %1480 = vmatprep.mubr.f32.mxu0 %v3997_v0  ;;  %1777 = vmatprep.mubr.f32.mxu1 %v3997_v0 }
 0x106   : > { %1481 = vmatmul.mubr.f32.vlgmr.msra.gmra.mrb[72].mxu0 %v4298_v13  ;;  %1778 = vmatmul.mubr.f32.vlgmr.msra.gmra.mrb[72].mxu1 %v2928_v20  ;;  %v2161_v13 = vld [vmem:[#allocation2 + $0x2e8] sm:$0xff]  ;;  %v1955_v20 = vld [vmem:[#allocation2 + $0x6e0] sm:$0xff] }
 0x107   : > { %1486 = vmatprep.mubr.f32.mxu0 %v3997_v0  ;;  %3688 = vmatpush1.bf16.msra.mxu1 %v3687_v22  ;;  %v3695_v3 = vpack.c.bf16 %v2161_v13, %v2159_v37  ;;  %v4457_v22 = vld [vmem:[%s4174_s10 + $0x3c] sm:$0xff]  ;;  %v3681_v13 = vpack.c.bf16 %v1957_v34, %v1956_v33 }
 0x108   : > { %1783 = vmatprep.mubr.f32.mxu1 %v3997_v0  ;;  %3656 = vmatpush3.bf16.msra.mxu0 %v4350_v7  ;;  %v1953_v7 = vld [vmem:[#allocation2 + $0x5e0] sm:$0xff]  ;;  %v2181_v37 = vld [vmem:[#allocation2 + $0x7e8] sm:$0xff] }
 0x109   : > { %3690 = vmatprep.subr.bf16.mxu1 %v3689_v24  ;;  %3658 = vmatprep.subr.bf16.mxu0 %v3657_v27  ;;  %v3673_v16 = vpack.c.bf16 %v1953_v7, %v1952_v6  ;;  %v3707_v24 = vpack.c.bf16 %v2173_v15, %v2171_v63  ;;  %v2965_v7 = vld [vmem:[%s4174_s10 + $0x2d] sm:$0xff] }
 0x10a   : > { %1487 = vmatmul.mubr.f32.gmra.mrb[74].mxu0 %v4305_v29  ;;  %1784 = vmatmul.mubr.f32.gmra.mrb[74].mxu1 %v2929_v14  ;;  %v2163_v29 = vld [vmem:[#allocation2 + $0x368] sm:$0xff]  ;;  %v4464_v14 = vld [vmem:[%s4174_s10 + $0x44] sm:$0xff] }
 0x10b   : > { %1492 = vmatprep.mubr.f32.mxu0 %v3997_v0  ;;  %1789 = vmatprep.mubr.f32.mxu1 %v3997_v0  ;;  %v3699_v58 = vpack.c.bf16 %v2165_v21, %v2163_v29  ;;  %v2418_v15 = vld [vmem:[#allocation2 + $0x378] sm:$0xff] }
 0x10c   : > { %3692 = vmatpush1.bf16.msra.mxu1 %v3691_v35  ;;  %3660 = vmatpush3.bf16.msra.mxu0 %v3657_v27  ;;  %v3677_v27 = vpack.c.bf16 %v1955_v20, %v1954_v19  ;;  %v3711_v35 = vpack.c.bf16 %v2177_v26, %v2175_v25  ;;  %v2420_v25 = vld [vmem:[#allocation2 + $0x478] sm:$0xff] }
 0x10d   : > { %3694 = vmatprep.subr.bf16.mxu1 %v3693_v36  ;;  %3662 = vmatprep.subr.bf16.mxu0 %v3661_v38  ;;  %v2179_v36 = vld [vmem:[#allocation2 + $0x768] sm:$0xff]  ;;  %v2421_v26 = vld [vmem:[#allocation2 + $0x4f8] sm:$0xff] }
 0x10e   : > { %1493 = vmatmul.mubr.f32.gmra.mrb[76].mxu0 %v4312_v45  ;;  %1790 = vmatmul.mubr.f32.gmra.mrb[76].mxu1 %v4436_v46  ;;  %v3701_v45 = vpack.c.bf16 %v2170_v53, %v2168_v52  ;;  %v3715_v43 = vpack.c.bf16 %v2181_v37, %v2179_v36  ;;  %v2415_v52 = vld [vmem:[#allocation2 + $0x1f8] sm:$0xff] }
 0x10f   : > { %1498 = vmatprep.mubr.f32.mxu0 %v3997_v0  ;;  %1795 = vmatprep.mubr.f32.mxu1 %v3997_v0  ;;  %v2422_v36 = vld [vmem:[#allocation2 + $0x578] sm:$0xff] }
 0x110   : > { %3696 = vmatpush1.bf16.msra.mxu1 %v3695_v3  ;;  %3664 = vmatpush3.bf16.msra.mxu0 %v3661_v38  ;;  %v2412_v38 = vld [vmem:[#allocation2 + $0x78] sm:$0xff] }
 0x111   : > { %3698 = vmatprep.subr.bf16.mxu1 %v3697_v49  ;;  %3666 = vmatprep.subr.bf16.mxu0 %v3665_v51  ;;  %v4502_v3 = vld [vmem:[%s4174_s10 + $0x6c] sm:$0xff] }
 0x112   : > { %1499 = vmatmul.mubr.f32.gmra.mrb[78].mxu0 %v4319_v62  ;;  %1796 = vmatmul.mubr.f32.gmra.mrb[78].mxu1 %v4443_v56  ;;  %v3705_v62 = vpack.c.bf16 %v2174_v23, %v2172_v4  ;;  %v2417_v4 = vld [vmem:[#allocation2 + $0x2f8] sm:$0xff] }
 0x113   : > { %1504 = vmatprep.mubr.f32.mxu0 %v3997_v0  ;;  %1801 = vmatprep.mubr.f32.mxu1 %v3997_v0  ;;  %v2423_v37 = vld [vmem:[#allocation2 + $0x5f8] sm:$0xff] }
 0x114   : > { %3700 = vmatpush1.bf16.msra.mxu1 %v3699_v58  ;;  %3668 = vmatpush3.bf16.msra.mxu0 %v3665_v51  ;;  %v2414_v51 = vld [vmem:[#allocation2 + $0x178] sm:$0xff] }
 0x115   : > { %3702 = vmatprep.subr.bf16.mxu1 %v3701_v45  ;;  %3670 = vmatprep.subr.bf16.mxu0 %v3669_v5  ;;  %v3721_v45 = vpack.c.bf16 %v2415_v52, %v2414_v51  ;;  %v2969_v51 = vld [vmem:[%s4174_s10 + $0x4d] sm:$0xff] }
 0x116   : > { %1505 = vmatmul.mubr.f32.gmra.mrb[80].mxu0 %v4326_v17  ;;  %1802 = vmatmul.mubr.f32.gmra.mrb[80].mxu1 %v4450_v57  ;;  %v3709_v17 = vpack.c.bf16 %v2178_v12, %v2176_v18 }
 0x117   : > { %1510 = vmatprep.mubr.f32.mxu0 %v3997_v0  ;;  %1807 = vmatprep.mubr.f32.mxu1 %v3997_v0 }
 0x118   : > { %3704 = vmatpush1.bf16.msra.mxu1 %v3703_v60  ;;  %3672 = vmatpush3.bf16.msra.mxu0 %v3669_v5  ;;  %v2416_v5 = vld [vmem:[#allocation2 + $0x278] sm:$0xff] }
 0x119   : > { %3706 = vmatprep.subr.bf16.mxu1 %v3705_v62  ;;  %3674 = vmatprep.subr.bf16.mxu0 %v3673_v16 }
 0x11a   : > { %1511 = vmatmul.mubr.f32.gmra.mrb[82].mxu0 %v4333_v59  ;;  %1808 = vmatmul.mubr.f32.gmra.mrb[82].mxu1 %v4457_v22  ;;  %v3713_v59 = vpack.c.bf16 %v2182_v31, %v2180_v28  ;;  %v2967_v31 = vld [vmem:[%s4174_s10 + $0x3d] sm:$0xff] }
 0x11b   : > { %1516 = vmatprep.mubr.f32.mxu0 %v3997_v0  ;;  %1813 = vmatprep.mubr.f32.mxu1 %v3997_v0 }
 0x11c   : > { %3708 = vmatpush1.bf16.msra.mxu1 %v3707_v24  ;;  %3676 = vmatpush3.bf16.msra.mxu0 %v3673_v16  ;;  %v2419_v16 = vld [vmem:[#allocation2 + $0x3f8] sm:$0xff] }
 0x11d   : > { %3710 = vmatprep.subr.bf16.mxu1 %v3709_v17  ;;  %3678 = vmatprep.subr.bf16.mxu0 %v3677_v27 }
 0x11e   : > { %1517 = vmatmul.mubr.f32.gmra.mrb[84].mxu0 %v4340_v47  ;;  %1814 = vmatmul.mubr.f32.gmra.mrb[84].mxu1 %v4464_v14  ;;  %v4474_v47 = vpack.c.bf16 %v2413_v40, %v2412_v38  ;;  %v2968_v40 = vld [vmem:[%s4174_s10 + $0x45] sm:$0xff] }
 0x11f   : > { %1522 = vmatprep.mubr.f32.mxu0 %v3997_v0  ;;  %1819 = vmatprep.mubr.f32.mxu1 %v3997_v0 }
 0x120   : > { %3712 = vmatpush1.bf16.msra.mxu1 %v3711_v35  ;;  %3680 = vmatpush3.bf16.msra.mxu0 %v3677_v27 }
 0x121   : > { %3714 = vmatprep.subr.bf16.mxu1 %v3713_v59  ;;  %3682 = vmatprep.subr.bf16.mxu0 %v3681_v13 }
 0x122   : > { %1523 = vmatmul.mubr.f32.gmra.mrb[86].mxu0 %v4347_v2  ;;  %1820 = vmatmul.mubr.f32.gmra.mrb[86].mxu1 %v4471_v42  ;;  %v4488_v2 = vld [vmem:[%s4174_s10 + $0x5c] sm:$0xff] }
 0x123   : > { %1528 = vmatprep.mubr.f32.mxu0 %v3997_v0  ;;  %1825 = vmatprep.mubr.f32.mxu1 %v3997_v0 }
 0x124   : > { %3716 = vmatpush1.bf16.msra.mxu1 %v3715_v43  ;;  %3684 = vmatpush3.bf16.msra.mxu0 %v3681_v13 }
 0x125   : > { %3718 = vmatprep.subr.bf16.mxu0 %v4474_v47 }
 0x126   : > { %1529 = vmatmul.mubr.f32.gmra.mrb[88].mxu0 %v4356_v8  ;;  %1826 = vmatmul.mubr.f32.gmra.mrb[88].mxu1 %v4480_v44  ;;  %v4495_v8 = vld [vmem:[%s4174_s10 + $0x64] sm:$0xff] }
 0x127   : > { %1534 = vmatprep.mubr.f32.mxu0 %v3997_v0  ;;  %1831 = vmatprep.mubr.f32.mxu1 %v3997_v0 }
 0x12a   : > { %1535 = vmatmul.mubr.f32.gmra.mrb[90].mxu0 %v4364_v30  ;;  %1832 = vmatmul.mubr.f32.gmra.mrb[90].mxu1 %v4488_v2  ;;  %v4509_v30 = vld [vmem:[%s4174_s10 + $0x74] sm:$0xff] }
 0x12b   : > { %1540 = vmatprep.mubr.f32.mxu0 %v3997_v0  ;;  %1837 = vmatprep.mubr.f32.mxu1 %v3997_v0 }
 0x12e   : > { %1541 = vmatmul.mubr.f32.gmra.mrb[92].mxu0 %v4371_v32  ;;  %1838 = vmatmul.mubr.f32.gmra.mrb[92].mxu1 %v4495_v8  ;;  %v4516_v32 = vld [vmem:[%s4174_s10 + $0x7c] sm:$0xff] }
 0x12f   : > { %1546 = vmatprep.mubr.f32.mxu0 %v3997_v0  ;;  %1843 = vmatprep.mubr.f32.mxu1 %v3997_v0 }
 0x132   : > { %1547 = vmatmul.mubr.f32.gmra.mrb[94].mxu0 %v4378_v9  ;;  %1844 = vmatmul.mubr.f32.gmra.mrb[94].mxu1 %v4502_v3  ;;  %v4523_v9 = vld [vmem:[%s4174_s10 + $0x84] sm:$0xff] }
 0x133   : > { %1552 = vmatprep.mubr.f32.mxu0 %v3997_v0  ;;  %1849 = vmatprep.mubr.f32.mxu1 %v3997_v0 }
 0x136   : > { %1553 = vmatmul.mubr.f32.gmra.mrb[96].mxu0 %v4385_v39  ;;  %1850 = vmatmul.mubr.f32.gmra.mrb[96].mxu1 %v4509_v30  ;;  %v4530_v39 = vld [vmem:[%s4174_s10 + $0x8c] sm:$0xff] }
 0x137   : > { %1558 = vmatprep.mubr.f32.mxu0 %v3997_v0  ;;  %1855 = vmatprep.mubr.f32.mxu1 %v3997_v0 }
 0x13a   : > { %1559 = vmatmul.mubr.f32.gmra.mrb[98].mxu0 %v4392_v41  ;;  %1856 = vmatmul.mubr.f32.gmra.mrb[98].mxu1 %v4516_v32  ;;  %v4537_v41 = vld [vmem:[%s4174_s10 + $0x94] sm:$0xff] }
 0x13b   : > { %1564 = vmatprep.mubr.f32.mxu0 %v3997_v0  ;;  %1861 = vmatprep.mubr.f32.mxu1 %v3997_v0 }
 0x13e   : > { %1565 = vmatmul.mubr.f32.gmra.mrb[100].mxu0 %v4399_v48  ;;  %1862 = vmatmul.mubr.f32.gmra.mrb[100].mxu1 %v4523_v9  ;;  %v4542_v48 = vld [vmem:[#allocation5] ss:$0 sm:$0xff] }
 0x13f   : > { %1570 = vmatprep.mubr.f32.mxu0 %v3997_v0  ;;  %1867 = vmatprep.mubr.f32.mxu1 %v3997_v0 }
 0x142   : > { %1571 = vmatmul.mubr.f32.gmra.mrb[102].mxu0 %v4406_v50  ;;  %1868 = vmatmul.mubr.f32.gmra.mrb[102].mxu1 %v4530_v39  ;;  %v4546_v50 = vld [vmem:[%s4174_s10 + $0x9c] sm:$0xff] }
 0x143   : > { %1576 = vmatprep.mubr.f32.mxu0 %v3997_v0  ;;  %1873 = vmatprep.mubr.f32.mxu1 %v3997_v0 }
 0x146   : > { %1577 = vmatmul.mubr.f32.gmra.mrb[104].mxu0 %v4414_v10  ;;  %1874 = vmatmul.mubr.f32.gmra.mrb[104].mxu1 %v4537_v41 }
 0x147   : > { %1582 = vmatprep.mubr.f32.mxu0 %v3997_v0  ;;  %1879 = vmatprep.mubr.f32.mxu1 %v3997_v0 }
 0x149   : > { %v3227_v49 = vpop.f32.mrb[0].mxu0  ;;  %v546_v29 = vpop.f32.mrb[0].mxu1 }
 0x14a   : > { %v321_v21 = vpop.f32.mrb[1].mxu0  ;;  %1583 = vmatmul.mubr.f32.gmra.mrb[106].mxu0 %v4421_v11  ;;  %v411_v10 = vadd.f32 %v3227_v49, %v4542_v48  ;;  %v4551_v54 = vpop.f32.mrb[1].mxu1  ;;  %1880 = vmatmul.mubr.f32.gmra.mrb[106].mxu1 %v4546_v50  ;;  %v2424_v49 = vld [vmem:[#allocation2 + $0x678] sm:$0xff] }
 0x14b   : > { %v410_v53 = vadd.f32 %v4542_v48, %v321_v21  ;;  %3343 = vmatprep.mubr.f32.mxu0 %v4436_v46  ;;  %2247 = vmatprep.mubr.f32.mxu1 %v3997_v0 }
 0x14d   : > { %v3230_v58 = vpop.f32.mrb[2].mxu0  ;;  %v4557_v61 = vadd.f32 %v546_v29, %v410_v53  ;;  %v552_v11 = vpop.f32.mrb[2].mxu1  ;;  %v2425_v29 = vld [vmem:[#allocation2 + $0x6f8] sm:$0xff] }
 0x14e   : > { %3344 = vmatmul.mubr.f32.vlgmr.msra.gmra.mrb[108].mxu0 %v4443_v56  ;;  %v331_v1 = vpop.f32.mrb[3].mxu0  ;;  %v4560_v23 = vadd.f32 %v552_v11, %v411_v10  ;;  %v4562_v6 = vpop.f32.mrb[3].mxu1  ;;  %2248 = vmatmul.mubr.f32.vlgmr.msra.gmra.mrb[108].mxu1 %v2964_v55  ;;  %v3725_v56 = vpack.c.bf16 %v2417_v4, %v2416_v5  ;;  %v413_v19 = vadd.f32 %v3230_v58, %v4542_v48  ;;  %v2426_v58 = vld [vmem:[#allocation2 + $0x778] sm:$0xff] }
 0x14f   : > { %v412_v46 = vadd.f32 %v4542_v48, %v331_v1  ;;  %3346 = vmatprep.mubr.f32.mxu0 %v4450_v57  ;;  %2253 = vmatprep.mubr.f32.mxu1 %v3997_v0  ;;  %v2966_v57 = vld [vmem:[%s4174_s10 + $0x35] sm:$0xff] }
 0x150   : > { %3720 = vmatpush3.bf16.msra.mxu0 %v4474_v47  ;;  %v3737_v47 = vpack.c.bf16 %v2423_v37, %v2422_v36  ;;  %v2970_v1 = vld [vmem:[%s4174_s10 + $0x55] sm:$0xff] }
 0x151   : > { %v3233_v60 = vpop.f32.mrb[4].mxu0  ;;  %3722 = vmatprep.subr.bf16.mxu0 %v3721_v45  ;;  %v558_v62 = vpop.f32.mrb[4].mxu1  ;;  %v2984_v36 = vld [vmem:[%s4174_s10 + $0x36] sm:$0xff] }
 0x152   : > { %3347 = vmatmul.mubr.f32.gmra.mrb[110].mxu0 %v4457_v22  ;;  %v341_v63 = vpop.f32.mrb[5].mxu0  ;;  %v4570_v18 = vadd.f32 %v558_v62, %v412_v46  ;;  %v4572_v12 = vpop.f32.mrb[5].mxu1  ;;  %2254 = vmatmul.mubr.f32.gmra.mrb[110].mxu1 %v2965_v7  ;;  %v3729_v22 = vpack.c.bf16 %v2419_v16, %v2418_v15  ;;  %v2962_v62 = vld [vmem:[%s4174_s10 + $0xa4] sm:$0xff] }
 0x153   : > { %3349 = vmatprep.mubr.f32.mxu0 %v4464_v14  ;;  %2259 = vmatprep.mubr.f32.mxu1 %v3997_v0  ;;  %v414_v33 = vadd.f32 %v4542_v48, %v341_v63  ;;  %v3733_v14 = vpack.c.bf16 %v2421_v26, %v2420_v25  ;;  %v673_v37 = vadd.f32 %v4542_v48, %v4572_v12 }
 0x154   : > { %3724 = vmatpush3.bf16.msra.mxu0 %v3721_v45  ;;  %v2427_v45 = vld [vmem:[#allocation2 + $0x7f8] sm:$0xff] }
 0x155   : > { %v4578_v20 = vpop.f32.mrb[6].mxu0  ;;  %3726 = vmatprep.subr.bf16.mxu0 %v3725_v56  ;;  %v564_v24 = vpop.f32.mrb[6].mxu1  ;;  %v3745_v4 = vpack.c.bf16 %v2427_v45, %v2426_v58 }
 0x156   : > { %3350 = vmatmul.mubr.f32.gmra.mrb[112].mxu0 %v4471_v42  ;;  %v351_v17 = vpop.f32.mrb[7].mxu0  ;;  %v4581_v27 = vadd.f32 %v564_v24, %v413_v19  ;;  %v4583_v28 = vpop.f32.mrb[7].mxu1  ;;  %2260 = vmatmul.mubr.f32.gmra.mrb[112].mxu1 %v2966_v57  ;;  %v415_v42 = vadd.f32 %v3233_v60, %v4542_v48  ;;  %v2963_v19 = vld [vmem:[%s4174_s10 + $0xac] sm:$0xff] }
 0x157   : > { %3352 = vmatprep.mubr.f32.mxu0 %v4480_v44  ;;  %2265 = vmatprep.mubr.f32.mxu1 %v3997_v0  ;;  %v416_v52 = vadd.f32 %v4542_v48, %v351_v17  ;;  %v2982_v24 = vld [vmem:[%s4174_s10 + $0x26] sm:$0xff] }
 0x158   : > { %3728 = vmatpush3.bf16.msra.mxu0 %v3725_v56  ;;  %v2971_v56 = vld [vmem:[%s4174_s10 + $0x5d] sm:$0xff] }
 0x159   : > { %v4589_v34 = vpop.f32.mrb[8].mxu0  ;;  %3730 = vmatprep.subr.bf16.mxu0 %v3729_v22  ;;  %v570_v35 = vpop.f32.mrb[8].mxu1 }
 0x15a   : > { %3353 = vmatmul.mubr.f32.gmra.mrb[114].mxu0 %v4488_v2  ;;  %v361_v59 = vpop.f32.mrb[9].mxu0  ;;  %v4592_v13 = vadd.f32 %v570_v35, %v414_v33  ;;  %v4594_v38 = vpop.f32.mrb[9].mxu1  ;;  %2266 = vmatmul.mubr.f32.gmra.mrb[114].mxu1 %v2967_v31  ;;  %v419_v17 = vadd.f32 %v4589_v34, %v4542_v48  ;;  %v2973_v34 = vld [vmem:[%s4174_s10 + $0x6d] sm:$0xff] }
 0x15b   : > { %3355 = vmatprep.mubr.f32.mxu0 %v4495_v8  ;;  %2271 = vmatprep.mubr.f32.mxu1 %v3997_v0  ;;  %v418_v63 = vadd.f32 %v4542_v48, %v361_v59  ;;  %v2983_v59 = vld [vmem:[%s4174_s10 + $0x2e] sm:$0xff] }
 0x15c   : > { %3732 = vmatpush3.bf16.msra.mxu0 %v3729_v22  ;;  %v2972_v22 = vld [vmem:[%s4174_s10 + $0x65] sm:$0xff] }
 0x15d   : > { %v4600_v43 = vpop.f32.mrb[10].mxu0  ;;  %3734 = vmatprep.subr.bf16.mxu0 %v3733_v14  ;;  %v576_v44 = vpop.f32.mrb[10].mxu1 }
 0x15e   : > { %3356 = vmatmul.mubr.f32.gmra.mrb[116].mxu0 %v4502_v3  ;;  %v4603_v2 = vpop.f32.mrb[11].mxu0  ;;  %v4605_v21 = vadd.f32 %v576_v44, %v415_v42  ;;  %v4607_v8 = vpop.f32.mrb[11].mxu1  ;;  %2272 = vmatmul.mubr.f32.gmra.mrb[116].mxu1 %v2968_v40  ;;  %v3741_v3 = vpack.c.bf16 %v2425_v29, %v2424_v49  ;;  %v421_v58 = vadd.f32 %v4600_v43, %v4542_v48  ;;  %v2975_v43 = vld [vmem:[%s4174_s10 + $0x7d] sm:$0xff] }
 0x15f   : > { %3358 = vmatprep.mubr.f32.mxu0 %v4509_v30  ;;  %2277 = vmatprep.mubr.f32.mxu1 %v3997_v0  ;;  %v420_v40 = vadd.f32 %v4542_v48, %v4603_v2  ;;  %v676_v12 = vadd.f32 %v4542_v48, %v4607_v8  ;;  %v2974_v2 = vld [vmem:[%s4174_s10 + $0x75] sm:$0xff] }
 0x160   : > { %3736 = vmatpush3.bf16.msra.mxu0 %v3733_v14 }
 0x161   : > { %v4613_v10 = vpop.f32.mrb[12].mxu0  ;;  %3738 = vmatprep.subr.bf16.mxu0 %v3737_v47  ;;  %v582_v53 = vpop.f32.mrb[12].mxu1 }
 0x162   : > { %3359 = vmatmul.mubr.f32.gmra.mrb[118].mxu0 %v4516_v32  ;;  %v4616_v55 = vpop.f32.mrb[13].mxu0  ;;  %v4618_v11 = vadd.f32 %v582_v53, %v416_v52  ;;  %v4620_v30 = vpop.f32.mrb[13].mxu1  ;;  %2278 = vmatmul.mubr.f32.gmra.mrb[118].mxu1 %v2969_v51  ;;  %v417_v32 = vadd.f32 %v4578_v20, %v4542_v48  ;;  %v672_v20 = vadd.f32 %v4542_v48, %v4562_v6  ;;  %v2985_v52 = vld [vmem:[%s4174_s10 + $0x3e] sm:$0xff] }
 0x163   : > { %3361 = vmatprep.mubr.f32.mxu0 %v4523_v9  ;;  %2283 = vmatprep.mubr.f32.mxu1 %v3997_v0  ;;  %v675_v53 = vadd.f32 %v4542_v48, %v4594_v38 }
 0x164   : > { %3740 = vmatpush3.bf16.msra.mxu0 %v3737_v47 }
 0x165   : > { %v4627_v5 = vpop.f32.mrb[14].mxu0  ;;  %3742 = vmatprep.subr.bf16.mxu0 %v3741_v3  ;;  %v588_v46 = vpop.f32.mrb[14].mxu1 }
 0x166   : > { %3362 = vmatmul.mubr.f32.gmra.mrb[120].mxu0 %v4530_v39  ;;  %v4630_v7 = vpop.f32.mrb[15].mxu0  ;;  %v4632_v60 = vadd.f32 %v588_v46, %v417_v32  ;;  %v4634_v9 = vpop.f32.mrb[15].mxu1  ;;  %2284 = vmatmul.mubr.f32.gmra.mrb[120].mxu1 %v2970_v1 }
 0x167   : > { %3364 = vmatprep.mubr.f32.mxu0 %v4537_v41  ;;  %2289 = vmatprep.mubr.f32.mxu1 %v3997_v0  ;;  %v678_v38 = vadd.f32 %v4542_v48, %v4634_v9 }
 0x168   : > { %3744 = vmatpush3.bf16.msra.mxu0 %v3741_v3  ;;  %v2986_v3 = vld [vmem:[%s4174_s10 + $0x46] sm:$0xff] }
 0x169   : > { %v4641_v39 = vpop.f32.mrb[16].mxu0  ;;  %3746 = vmatprep.subr.bf16.mxu0 %v3745_v4  ;;  %v594_v15 = vpop.f32.mrb[16].mxu1 }
 0x16a   : > { %3365 = vmatmul.mubr.f32.gmra.mrb[122].mxu0 %v4546_v50  ;;  %v4644_v16 = vpop.f32.mrb[17].mxu0  ;;  %v4646_v57 = vadd.f32 %v594_v15, %v418_v63  ;;  %v4648_v41 = vpop.f32.mrb[17].mxu1  ;;  %2290 = vmatmul.mubr.f32.gmra.mrb[122].mxu1 %v2971_v56  ;;  %v671_v50 = vadd.f32 %v4542_v48, %v4551_v54  ;;  %v674_v54 = vadd.f32 %v4542_v48, %v4583_v28  ;;  %v2988_v63 = vld [vmem:[%s4174_s10 + $0x56] sm:$0xff] }
 0x16b   : > { %3367 = vmatprep.mubr.f32.mxu0 %v2962_v62  ;;  %2295 = vmatprep.mubr.f32.mxu1 %v3997_v0  ;;  %v2987_v62 = vld [vmem:[%s4174_s10 + $0x4e] sm:$0xff]  ;;  %v677_v15 = vadd.f32 %v4542_v48, %v4620_v30 }
 0x16c   : > { %3748 = vmatpush3.bf16.msra.mxu0 %v3745_v4 }
 0x16d   : > { %v3286_v25 = vpop.f32.mrb[18].mxu0  ;;  %v600_v26 = vpop.f32.mrb[18].mxu1 }
 0x16e   : > { %v4660_v31 = vadd.f32 %v3286_v25, %v672_v20  ;;  %v791_v33 = vpop.f32.mrb[19].mxu0  ;;  %3368 = vmatmul.mubr.f32.gmra.mrb[124].mxu0 %v2963_v19  ;;  %v4662_v6 = vadd.f32 %v600_v26, %v419_v17  ;;  %v602_v14 = vpop.f32.mrb[19].mxu1  ;;  %2296 = vmatmul.mubr.f32.gmra.mrb[124].mxu1 %v2972_v22  ;;  %v422_v19 = vadd.f32 %v4542_v48, %v4616_v55  ;;  %v2989_v26 = vld [vmem:[%s4174_s10 + $0x5e] sm:$0xff] }
 0x16f   : > { %v4664_v35 = vadd.f32 %v791_v33, %v671_v50  ;;  %3402 = vmatprep.mubr.f32.mxu0 %v2982_v24  ;;  %2301 = vmatprep.mubr.f32.mxu1 %v3997_v0  ;;  %v680_v30 = vadd.f32 %v4542_v48, %v602_v14  ;;  %v2976_v55 = vld [vmem:[%s4174_s10 + $0x85] sm:$0xff] }
 0x170   : > { %v2990_v33 = vld [vmem:[%s4174_s10 + $0x66] sm:$0xff] }
 0x171   : > { %v3289_v42 = vpop.f32.mrb[20].mxu0  ;;  %v606_v47 = vpop.f32.mrb[20].mxu1 }
 0x172   : > { %v4676_v44 = vadd.f32 %v3289_v42, %v674_v54  ;;  %v801_v49 = vpop.f32.mrb[21].mxu0  ;;  %3403 = vmatmul.mubr.f32.vlgmr.msra.gmra.mrb[126].mxu0 %v2983_v59  ;;  %v4678_v28 = vadd.f32 %v606_v47, %v420_v40  ;;  %v608_v29 = vpop.f32.mrb[21].mxu1  ;;  %2302 = vmatmul.mubr.f32.gmra.mrb[126].mxu1 %v2973_v34  ;;  %v423_v59 = vadd.f32 %v4613_v10, %v4542_v48 }
 0x173   : > { %v4680_v51 = vadd.f32 %v801_v49, %v673_v37  ;;  %3405 = vmatprep.mubr.f32.mxu0 %v2984_v36  ;;  %2307 = vmatprep.mubr.f32.mxu1 %v3997_v0  ;;  %v679_v54 = vadd.f32 %v4542_v48, %v4648_v41  ;;  %v2991_v49 = vld [vmem:[%s4174_s10 + $0x6e] sm:$0xff] }
 0x174   : > { %v2977_v41 = vld [vmem:[%s4174_s10 + $0x8d] sm:$0xff] }
 0x175   : > { %v3292_v45 = vpop.f32.mrb[22].mxu0  ;;  %v612_v1 = vpop.f32.mrb[22].mxu1 }
 0x176   : > { %v4692_v32 = vadd.f32 %v3292_v45, %v676_v12  ;;  %v811_v4 = vpop.f32.mrb[23].mxu0  ;;  %3406 = vmatmul.mubr.f32.gmra.mrb[128].mxu0 %v2985_v52  ;;  %v4694_v8 = vadd.f32 %v612_v1, %v421_v58  ;;  %v614_v46 = vpop.f32.mrb[23].mxu1  ;;  %2308 = vmatmul.mubr.f32.gmra.mrb[128].mxu1 %v2974_v2  ;;  %v2992_v52 = vld [vmem:[%s4174_s10 + $0x76] sm:$0xff]  ;;  %v424_v12 = vadd.f32 %v4542_v48, %v4630_v7 }
 0x177   : > { %v4696_v56 = vadd.f32 %v811_v4, %v675_v53  ;;  %3408 = vmatprep.mubr.f32.mxu0 %v2986_v3  ;;  %2313 = vmatprep.mubr.f32.mxu1 %v3997_v0  ;;  %v682_v10 = vadd.f32 %v4542_v48, %v614_v46  ;;  %v681_v2 = vadd.f32 %v4542_v48, %v608_v29  ;;  %v2978_v7 = vld [vmem:[%s4174_s10 + $0x95] sm:$0xff]  ;;  %v2994_v29 = vld [vmem:[%s4174_s10 + $0x86] sm:$0xff] }
 0x179   : > { %v3295_v20 = vpop.f32.mrb[24].mxu0  ;;  %v618_v22 = vpop.f32.mrb[24].mxu1 }
 0x17a   : > { %v4708_v24 = vadd.f32 %v3295_v20, %v678_v38  ;;  %v821_v50 = vpop.f32.mrb[25].mxu0  ;;  %3409 = vmatmul.mubr.f32.gmra.mrb[130].mxu0 %v2987_v62  ;;  %v4710_v9 = vadd.f32 %v618_v22, %v422_v19  ;;  %v620_v17 = vpop.f32.mrb[25].mxu1  ;;  %2314 = vmatmul.mubr.f32.gmra.mrb[130].mxu1 %v2975_v43  ;;  %v2993_v62 = vld [vmem:[%s4174_s10 + $0x7e] sm:$0xff]  ;;  %v425_v43 = vadd.f32 %v4627_v5, %v4542_v48 }
 0x17b   : > { %v4712_v25 = vadd.f32 %v821_v50, %v677_v15  ;;  %3411 = vmatprep.mubr.f32.mxu0 %v2988_v63  ;;  %2319 = vmatprep.mubr.f32.mxu1 %v3997_v0  ;;  %v683_v63 = vadd.f32 %v4542_v48, %v620_v17  ;;  %v2979_v5 = vld [vmem:[%s4174_s10 + $0x9d] sm:$0xff] }
 0x17c   : > { %v2996_v17 = vld [vmem:[%s4174_s10 + $0x96] sm:$0xff] }
 0x17d   : > { %v3298_v34 = vpop.f32.mrb[26].mxu0  ;;  %v624_v36 = vpop.f32.mrb[26].mxu1 }
 0x17e   : > { %v4723_v37 = vadd.f32 %v3298_v34, %v680_v30  ;;  %v831_v40 = vpop.f32.mrb[27].mxu0  ;;  %3412 = vmatmul.mubr.f32.gmra.mrb[132].mxu0 %v2989_v26  ;;  %v4725_v14 = vadd.f32 %v624_v36, %v423_v59  ;;  %v626_v42 = vpop.f32.mrb[27].mxu1  ;;  %2320 = vmatmul.mubr.f32.gmra.mrb[132].mxu1 %v2976_v55  ;;  %v2995_v55 = vld [vmem:[%s4174_s10 + $0x8e] sm:$0xff]  ;;  %v426_v59 = vadd.f32 %v4542_v48, %v4644_v16  ;;  %v2980_v16 = vld [vmem:[%s4174_s10 + $0xa5] sm:$0xff] }
 0x17f   : > { %v4727_v47 = vadd.f32 %v831_v40, %v679_v54  ;;  %3414 = vmatprep.mubr.f32.mxu0 %v2990_v33  ;;  %2325 = vmatprep.mubr.f32.mxu1 %v3997_v0  ;;  %v684_v38 = vadd.f32 %v4542_v48, %v626_v42 }
 0x181   : > { %v3301_v3 = vpop.f32.mrb[28].mxu0  ;;  %v630_v53 = vpop.f32.mrb[28].mxu1 }
 0x182   : > { %v4737_v58 = vadd.f32 %v3301_v3, %v682_v10  ;;  %v841_v45 = vpop.f32.mrb[29].mxu0  ;;  %3415 = vmatmul.mubr.f32.gmra.mrb[134].mxu0 %v2991_v49  ;;  %v4739_v1 = vadd.f32 %v630_v53, %v424_v12  ;;  %v632_v4 = vpop.f32.mrb[29].mxu1  ;;  %2326 = vmatmul.mubr.f32.gmra.mrb[134].mxu1 %v2977_v41  ;;  %v2998_v12 = vld [vmem:[%s4174_s10 + $0xa6] sm:$0xff] }
 0x183   : > { %v4741_v46 = vadd.f32 %v841_v45, %v681_v2  ;;  %3417 = vmatprep.mubr.f32.mxu0 %v2992_v52  ;;  %2331 = vmatprep.mubr.f32.mxu1 %v3997_v0  ;;  %v685_v54 = vadd.f32 %v4542_v48, %v632_v4  ;;  %v2997_v52 = vld [vmem:[%s4174_s10 + $0x9e] sm:$0xff]  ;;  %v427_v2 = vadd.f32 %v4641_v39, %v4542_v48  ;;  %v2981_v39 = vld [vmem:[%s4174_s10 + $0xad] sm:$0xff] }
 0x185   : > { %v3304_v15 = vpop.f32.mrb[30].mxu0  ;;  %v636_v19 = vpop.f32.mrb[30].mxu1 }
 0x186   : > { %v4751_v20 = vadd.f32 %v3304_v15, %v684_v38  ;;  %v851_v22 = vpop.f32.mrb[31].mxu0  ;;  %3418 = vmatmul.mubr.f32.gmra.mrb[136].mxu0 %v2993_v62  ;;  %v4753_v50 = vadd.f32 %v636_v19, %v425_v43  ;;  %v638_v26 = vpop.f32.mrb[31].mxu1  ;;  %2332 = vmatmul.mubr.f32.gmra.mrb[136].mxu1 %v2978_v7 }
 0x187   : > { %v4755_v30 = vadd.f32 %v851_v22, %v683_v63  ;;  %3420 = vmatprep.mubr.f32.mxu0 %v2994_v29  ;;  %v686_v33 = vadd.f32 %v4542_v48, %v638_v26  ;;  %2337 = vmatprep.mubr.f32.mxu1 %v3997_v0  ;;  %v2999_v29 = vld [vmem:[%s4174_s10 + $0xae] sm:$0xff] }
 0x189   : > { %v3307_v34 = vpop.f32.mrb[32].mxu0  ;;  %v642_v36 = vpop.f32.mrb[32].mxu1 }
 0x18a   : > { %v4765_v40 = vadd.f32 %v3307_v34, %v686_v33  ;;  %v861_v42 = vpop.f32.mrb[33].mxu0  ;;  %3421 = vmatmul.mubr.f32.gmra.mrb[138].mxu0 %v2995_v55  ;;  %v4767_v49 = vadd.f32 %v642_v36, %v426_v59  ;;  %v644_v10 = vpop.f32.mrb[33].mxu1  ;;  %2338 = vmatmul.mubr.f32.gmra.mrb[138].mxu1 %v2979_v5 }
 0x18b   : > { %v4769_v41 = vadd.f32 %v861_v42, %v685_v54  ;;  %3423 = vmatprep.mubr.f32.mxu0 %v2996_v17  ;;  %2343 = vmatprep.mubr.f32.mxu1 %v3997_v0  ;;  %v687_v3 = vadd.f32 %v4542_v48, %v644_v10 }
 0x18d   : > { %v3310_v53 = vpop.f32.mrb[34].mxu0  ;;  %v648_v45 = vpop.f32.mrb[34].mxu1 }
 0x18e   : > { %v871_v4 = vpop.f32.mrb[35].mxu0  ;;  %3424 = vmatmul.mubr.f32.gmra.mrb[140].mxu0 %v2997_v52  ;;  %v4779_v62 = vadd.f32 %v648_v45, %v427_v2  ;;  %v650_v38 = vpop.f32.mrb[35].mxu1  ;;  %2344 = vmatmul.mubr.f32.gmra.mrb[140].mxu1 %v2980_v16 }
 0x18f   : > { %v4781_v7 = vadd.f32 %v871_v4, %v687_v3  ;;  %3426 = vmatprep.mubr.f32.mxu0 %v2998_v12  ;;  %v688_v43 = vadd.f32 %v4542_v48, %v650_v38  ;;  %2349 = vmatprep.mubr.f32.mxu1 %v3997_v0 }
 0x191   : > { %v1016_v63 = vpop.f32.mrb[36].mxu0  ;;  %v1309_v19 = vpop.f32.mrb[36].mxu1  ;;  %v4792_v26 = vadd.f32 %v3310_v53, %v688_v43 }
 0x192   : > { %v1123_v15 = vadd.f32 %v1016_v63, %v4557_v61  ;;  %3427 = vmatmul.mubr.f32.gmra.mrb[142].mxu0 %v2999_v29  ;;  %v4790_v22 = vpop.f32.mrb[37].mxu0  ;;  %v1311_v55 = vpop.f32.mrb[37].mxu1  ;;  %2350 = vmatmul.mubr.f32.gmra.mrb[142].mxu1 %v2981_v39 }
 0x193   : > { %v4795_v5 = vadd.f32 %v1311_v55, %v4664_v35 }
 0x194   : > { %v1589_v33 = vadd.f32 %v1309_v19, %v1123_v15 }
 0x195   : > { %v1022_v17 = vpop.f32.mrb[38].mxu0  ;;  %v1315_v61 = vpop.f32.mrb[38].mxu1 }
 0x196   : > { %2601 = vst [vmem:[%s4797_s21] sm:$0xff] %v1589_v33  ;;  %v1124_v0 = vadd.f32 %v1022_v17, %v4560_v23  ;;  %v4801_v59 = vpop.f32.mrb[39].mxu0  ;;  %v1317_v54 = vpop.f32.mrb[39].mxu1 }
 0x197   : > { %v4804_v36 = vadd.f32 %v1317_v54, %v4660_v31 }
 0x198   : > { %v1590_v34 = vadd.f32 %v1315_v61, %v1124_v0 }
 0x199   : > { %v1028_v42 = vpop.f32.mrb[40].mxu0  ;;  %v1321_v10 = vpop.f32.mrb[40].mxu1 }
 0x19a   : > { %2602 = vst [vmem:[%s4797_s21 + $0x8] sm:$0xff] %v1590_v34  ;;  %v1125_v35 = vadd.f32 %v1028_v42, %v4570_v18  ;;  %v4808_v52 = vpop.f32.mrb[41].mxu0  ;;  %v1323_v16 = vpop.f32.mrb[41].mxu1 }
 0x19b   : > { %v4811_v23 = vadd.f32 %v1323_v16, %v4680_v51 }
 0x19c   : > { %v1591_v12 = vadd.f32 %v1321_v10, %v1125_v35 }
 0x19d   : > { %v1034_v2 = vpop.f32.mrb[42].mxu0  ;;  %v1327_v31 = vpop.f32.mrb[42].mxu1 }
 0x19e   : > { %2603 = vst [vmem:[%s4797_s21 + $0x10] sm:$0xff] %v1591_v12  ;;  %v1126_v3 = vadd.f32 %v1034_v2, %v4581_v27  ;;  %v4815_v53 = vpop.f32.mrb[43].mxu0  ;;  %v1329_v45 = vpop.f32.mrb[43].mxu1 }
 0x19f   : > { %v4818_v18 = vadd.f32 %v1329_v45, %v4676_v44 }
 0x1a0   : > { %v1592_v4 = vadd.f32 %v1327_v31, %v1126_v3 }
 0x1a1   : > { %v1040_v38 = vpop.f32.mrb[44].mxu0  ;;  %v1333_v51 = vpop.f32.mrb[44].mxu1 }
 0x1a2   : > { %2604 = vst [vmem:[%s4797_s21 + $0x18] sm:$0xff] %v1592_v4  ;;  %v1127_v29 = vadd.f32 %v1040_v38, %v4592_v13  ;;  %v4822_v43 = vpop.f32.mrb[45].mxu0  ;;  %v1335_v39 = vpop.f32.mrb[45].mxu1 }
 0x1a3   : > { %v4825_v27 = vadd.f32 %v1335_v39, %v4696_v56 }
 0x1a4   : > { %v1593_v63 = vadd.f32 %v1333_v51, %v1127_v29 }
 0x1a5   : > { %v1046_v15 = vpop.f32.mrb[46].mxu0  ;;  %v1339_v44 = vpop.f32.mrb[46].mxu1 }
 0x1a6   : > { %2605 = vst [vmem:[%s4797_s21 + $0x20] sm:$0xff] %v1593_v63  ;;  %v1128_v19 = vadd.f32 %v1046_v15, %v4605_v21  ;;  %v4829_v55 = vpop.f32.mrb[47].mxu0  ;;  %v1341_v33 = vpop.f32.mrb[47].mxu1 }
 0x1a7   : > { %v4832_v13 = vadd.f32 %v1341_v33, %v4692_v32 }
 0x1a8   : > { %v1594_v17 = vadd.f32 %v1339_v44, %v1128_v19 }
 0x1a9   : > { %v1052_v0 = vpop.f32.mrb[48].mxu0  ;;  %v1345_v56 = vpop.f32.mrb[48].mxu1 }
 0x1aa   : > { %2606 = vst [vmem:[%s4797_s21 + $0x28] sm:$0xff] %v1594_v17  ;;  %v1129_v61 = vadd.f32 %v1052_v0, %v4618_v11  ;;  %v4836_v54 = vpop.f32.mrb[49].mxu0  ;;  %v1347_v34 = vpop.f32.mrb[49].mxu1 }
 0x1ab   : > { %v4839_v21 = vadd.f32 %v1347_v34, %v4712_v25 }
 0x1ac   : > { %v1595_v42 = vadd.f32 %v1345_v56, %v1129_v61 }
 0x1ad   : > { %v1058_v35 = vpop.f32.mrb[50].mxu0  ;;  %v1351_v32 = vpop.f32.mrb[50].mxu1 }
 0x1ae   : > { %2607 = vst [vmem:[%s4797_s21 + $0x30] sm:$0xff] %v1595_v42  ;;  %v1130_v10 = vadd.f32 %v1058_v35, %v4632_v60  ;;  %v4843_v16 = vpop.f32.mrb[51].mxu0  ;;  %v1353_v12 = vpop.f32.mrb[51].mxu1 }
 0x1af   : > { %v4846_v11 = vadd.f32 %v1353_v12, %v4708_v24 }
 0x1b0   : > { %v1596_v2 = vadd.f32 %v1351_v32, %v1130_v10 }
 0x1b1   : > { %v1064_v3 = vpop.f32.mrb[52].mxu0  ;;  %v1357_v25 = vpop.f32.mrb[52].mxu1 }
 0x1b2   : > { %2608 = vst [vmem:[%s4797_s21 + $0x38] sm:$0xff] %v1596_v2  ;;  %v1131_v31 = vadd.f32 %v1064_v3, %v4646_v57  ;;  %v4850_v45 = vpop.f32.mrb[53].mxu0  ;;  %v1359_v4 = vpop.f32.mrb[53].mxu1 }
 0x1b3   : > { %v4853_v60 = vadd.f32 %v1359_v4, %v4727_v47 }
 0x1b4   : > { %v1597_v38 = vadd.f32 %v1357_v25, %v1131_v31 }
 0x1b5   : > { %v1070_v29 = vpop.f32.mrb[54].mxu0  ;;  %v1363_v24 = vpop.f32.mrb[54].mxu1 }
 0x1b6   : > { %2609 = vst [vmem:[%s4797_s21 + $0x40] sm:$0xff] %v1597_v38  ;;  %v1132_v51 = vadd.f32 %v1070_v29, %v4662_v6  ;;  %v4857_v39 = vpop.f32.mrb[55].mxu0  ;;  %v1365_v63 = vpop.f32.mrb[55].mxu1 }
 0x1b7   : > { %v4860_v57 = vadd.f32 %v1365_v63, %v4723_v37 }
 0x1b8   : > { %v1598_v15 = vadd.f32 %v1363_v24, %v1132_v51 }
 0x1b9   : > { %v1076_v19 = vpop.f32.mrb[56].mxu0  ;;  %v1369_v47 = vpop.f32.mrb[56].mxu1 }
 0x1ba   : > { %2610 = vst [vmem:[%s4797_s21 + $0x48] sm:$0xff] %v1598_v15  ;;  %v1133_v44 = vadd.f32 %v1076_v19, %v4678_v28  ;;  %v4864_v33 = vpop.f32.mrb[57].mxu0  ;;  %v1371_v17 = vpop.f32.mrb[57].mxu1 }
 0x1bb   : > { %v4867_v6 = vadd.f32 %v1371_v17, %v4741_v46 }
 0x1bc   : > { %v1599_v0 = vadd.f32 %v1369_v47, %v1133_v44 }
 0x1bd   : > { %v1082_v61 = vpop.f32.mrb[58].mxu0  ;;  %v1375_v37 = vpop.f32.mrb[58].mxu1 }
 0x1be   : > { %2611 = vst [vmem:[%s4797_s21 + $0x50] sm:$0xff] %v1599_v0  ;;  %v1134_v56 = vadd.f32 %v1082_v61, %v4694_v8  ;;  %v4871_v34 = vpop.f32.mrb[59].mxu0  ;;  %v1377_v42 = vpop.f32.mrb[59].mxu1 }
 0x1bf   : > { %v4874_v28 = vadd.f32 %v1377_v42, %v4737_v58 }
 0x1c0   : > { %v1600_v35 = vadd.f32 %v1375_v37, %v1134_v56 }
 0x1c1   : > { %v1088_v10 = vpop.f32.mrb[60].mxu0  ;;  %v1381_v46 = vpop.f32.mrb[60].mxu1 }
 0x1c2   : > { %2612 = vst [vmem:[%s4797_s21 + $0x58] sm:$0xff] %v1600_v35  ;;  %v1135_v32 = vadd.f32 %v1088_v10, %v4710_v9  ;;  %v4878_v12 = vpop.f32.mrb[61].mxu0  ;;  %v1383_v2 = vpop.f32.mrb[61].mxu1 }
 0x1c3   : > { %v4881_v8 = vadd.f32 %v1383_v2, %v4755_v30 }
 0x1c4   : > { %v1601_v3 = vadd.f32 %v1381_v46, %v1135_v32 }
 0x1c5   : > { %v1094_v31 = vpop.f32.mrb[62].mxu0  ;;  %v1387_v58 = vpop.f32.mrb[62].mxu1 }
 0x1c6   : > { %2613 = vst [vmem:[%s4797_s21 + $0x60] sm:$0xff] %v1601_v3  ;;  %v1136_v25 = vadd.f32 %v1094_v31, %v4725_v14  ;;  %v4885_v4 = vpop.f32.mrb[63].mxu0  ;;  %v1389_v38 = vpop.f32.mrb[63].mxu1 }
 0x1c7   : > { %v4888_v9 = vadd.f32 %v1389_v38, %v4751_v20 }
 0x1c8   : > { %v1602_v29 = vadd.f32 %v1387_v58, %v1136_v25 }
 0x1c9   : > { %v1100_v51 = vpop.f32.mrb[64].mxu0  ;;  %v1393_v30 = vpop.f32.mrb[64].mxu1 }
 0x1ca   : > { %2614 = vst [vmem:[%s4797_s21 + $0x68] sm:$0xff] %v1602_v29  ;;  %v1137_v24 = vadd.f32 %v1100_v51, %v4739_v1  ;;  %v4892_v63 = vpop.f32.mrb[65].mxu0  ;;  %v1395_v15 = vpop.f32.mrb[65].mxu1 }
 0x1cb   : > { %v4895_v14 = vadd.f32 %v1395_v15, %v4769_v41 }
 0x1cc   : > { %v1603_v19 = vadd.f32 %v1393_v30, %v1137_v24  ;;  %v1142_v30 = vadd.f32 %v4542_v48, %v4801_v59 }
 0x1cd   : > { %v1106_v44 = vpop.f32.mrb[66].mxu0  ;;  %v1399_v20 = vpop.f32.mrb[66].mxu1 }
 0x1ce   : > { %2615 = vst [vmem:[%s4797_s21 + $0x70] sm:$0xff] %v1603_v19  ;;  %v1138_v47 = vadd.f32 %v1106_v44, %v4753_v50  ;;  %v4899_v17 = vpop.f32.mrb[67].mxu0  ;;  %v1401_v0 = vpop.f32.mrb[67].mxu1 }
 0x1cf   : > { %v4902_v1 = vadd.f32 %v1401_v0, %v4765_v40  ;;  %v1143_v0 = vadd.f32 %v4542_v48, %v4808_v52 }
 0x1d0   : > { %v1604_v61 = vadd.f32 %v1399_v20, %v1138_v47 }
 0x1d1   : > { %v1112_v56 = vpop.f32.mrb[68].mxu0  ;;  %v1405_v41 = vpop.f32.mrb[68].mxu1 }
 0x1d2   : > { %2616 = vst [vmem:[%s4797_s21 + $0x78] sm:$0xff] %v1604_v61  ;;  %v1139_v37 = vadd.f32 %v1112_v56, %v4767_v49  ;;  %v4906_v42 = vpop.f32.mrb[69].mxu0  ;;  %v1407_v35 = vpop.f32.mrb[69].mxu1  ;;  %v1141_v49 = vadd.f32 %v4542_v48, %v4790_v22 }
 0x1d3   : > { %v4909_v50 = vadd.f32 %v1407_v35, %v4781_v7 }
 0x1d4   : > { %v1605_v10 = vadd.f32 %v1405_v41, %v1139_v37 }
 0x1d5   : > { %v1118_v32 = vpop.f32.mrb[70].mxu0  ;;  %v1411_v40 = vpop.f32.mrb[70].mxu1 }
 0x1d6   : > { %2617 = vst [vmem:[%s4797_s21 + $0x80] sm:$0xff] %v1605_v10  ;;  %v1140_v46 = vadd.f32 %v1118_v32, %v4779_v62  ;;  %v4913_v2 = vpop.f32.mrb[71].mxu0  ;;  %v1413_v3 = vpop.f32.mrb[71].mxu1  ;;  %v1144_v32 = vadd.f32 %v4542_v48, %v4815_v53 }
 0x1d7   : > { %v4918_v25 = vadd.f32 %v1413_v3, %v4792_v26 }
 0x1d8   : > { %v1606_v31 = vadd.f32 %v1411_v40, %v1140_v46 }
 0x1d9   : > { %v1482_v58 = vpop.f32.mrb[72].mxu0  ;;  %v1779_v38 = vpop.f32.mrb[72].mxu1 }
 0x1da   : > { %2618 = vst [vmem:[%s4797_s21 + $0x88] sm:$0xff] %v1606_v31  ;;  %v4921_v7 = vadd.f32 %v1482_v58, %v1141_v49  ;;  %v1484_v29 = vpop.f32.mrb[73].mxu0  ;;  %v1886_v62 = vadd.f32 %v1779_v38, %v4795_v5  ;;  %v1781_v24 = vpop.f32.mrb[73].mxu1  ;;  %v1145_v38 = vadd.f32 %v4542_v48, %v4822_v43 }
 0x1db   : > { %v1643_v51 = vadd.f32 %v4542_v48, %v1484_v29 }
 0x1dc   : > { %3000 = vst [vmem:[%s4797_s21 + $0x90] sm:$0xff] %v1886_v62 }
 0x1dd   : > { %v4928_v22 = vadd.f32 %v1781_v24, %v1643_v51  ;;  %v1488_v26 = vpop.f32.mrb[74].mxu0  ;;  %v1785_v19 = vpop.f32.mrb[74].mxu1 }
 0x1de   : > { %v4930_v15 = vadd.f32 %v1488_v26, %v1142_v30  ;;  %v1490_v44 = vpop.f32.mrb[75].mxu0  ;;  %v1887_v47 = vadd.f32 %v1785_v19, %v4804_v36  ;;  %v1787_v5 = vpop.f32.mrb[75].mxu1  ;;  %v1146_v19 = vadd.f32 %v4542_v48, %v4829_v55 }
 0x1df   : > { %v1644_v20 = vadd.f32 %v4542_v48, %v1490_v44 }
 0x1e0   : > { %3001 = vst [vmem:[%s4797_s21 + $0x98] sm:$0xff] %v1887_v47 }
 0x1e1   : > { %v4937_v61 = vadd.f32 %v1787_v5, %v1644_v20  ;;  %v1494_v59 = vpop.f32.mrb[76].mxu0  ;;  %v1791_v37 = vpop.f32.mrb[76].mxu1 }
 0x1e2   : > { %v4939_v56 = vadd.f32 %v1494_v59, %v1143_v0  ;;  %v1496_v41 = vpop.f32.mrb[77].mxu0  ;;  %v1888_v35 = vadd.f32 %v1791_v37, %v4811_v23  ;;  %v1793_v36 = vpop.f32.mrb[77].mxu1  ;;  %v1147_v37 = vadd.f32 %v4542_v48, %v4836_v54 }
 0x1e3   : > { %v1645_v10 = vadd.f32 %v4542_v48, %v1496_v41 }
 0x1e4   : > { %3002 = vst [vmem:[%s4797_s21 + $0xa0] sm:$0xff] %v1888_v35 }
 0x1e5   : > { %v4946_v46 = vadd.f32 %v1793_v36, %v1645_v10  ;;  %v1500_v52 = vpop.f32.mrb[78].mxu0  ;;  %v1797_v3 = vpop.f32.mrb[78].mxu1 }
 0x1e6   : > { %v4948_v40 = vadd.f32 %v1500_v52, %v1144_v32  ;;  %v1502_v49 = vpop.f32.mrb[79].mxu0  ;;  %v1889_v31 = vadd.f32 %v1797_v3, %v4818_v18  ;;  %v1799_v23 = vpop.f32.mrb[79].mxu1  ;;  %v1148_v3 = vadd.f32 %v4542_v48, %v4843_v16 }
 0x1e7   : > { %v1646_v58 = vadd.f32 %v4542_v48, %v1502_v49 }
 0x1e8   : > { %3003 = vst [vmem:[%s4797_s21 + $0xa8] sm:$0xff] %v1889_v31 }
 0x1e9   : > { %v4955_v29 = vadd.f32 %v1799_v23, %v1646_v58  ;;  %v1506_v53 = vpop.f32.mrb[80].mxu0  ;;  %v1803_v51 = vpop.f32.mrb[80].mxu1 }
 0x1ea   : > { %v4957_v62 = vadd.f32 %v1506_v53, %v1145_v38  ;;  %v1508_v24 = vpop.f32.mrb[81].mxu0  ;;  %v1890_v30 = vadd.f32 %v1803_v51, %v4825_v27  ;;  %v1805_v18 = vpop.f32.mrb[81].mxu1  ;;  %v4987_v53 = vld [vmem:[#allocation5] ss:$0 sm:$0xff] }
 0x1eb   : > { %v1647_v26 = vadd.f32 %v4542_v48, %v1508_v24  ;;  %v1149_v24 = vadd.f32 %v4987_v53, %v4850_v45 }
 0x1ec   : > { %3004 = vst [vmem:[%s4797_s21 + $0xb0] sm:$0xff] %v1890_v30 }
 0x1ed   : > { %v4964_v44 = vadd.f32 %v1805_v18, %v1647_v26  ;;  %v1512_v43 = vpop.f32.mrb[82].mxu0  ;;  %v1809_v20 = vpop.f32.mrb[82].mxu1 }
 0x1ee   : > { %v4966_v47 = vadd.f32 %v1512_v43, %v1146_v19  ;;  %v1514_v5 = vpop.f32.mrb[83].mxu0  ;;  %v1891_v0 = vadd.f32 %v1809_v20, %v4832_v13  ;;  %v1811_v27 = vpop.f32.mrb[83].mxu1  ;;  %v1150_v20 = vadd.f32 %v4987_v53, %v4857_v39 }
 0x1ef   : > { %v1648_v59 = vadd.f32 %v4542_v48, %v1514_v5 }
 0x1f0   : > { %3005 = vst [vmem:[%s4797_s21 + $0xb8] sm:$0xff] %v1891_v0 }
 0x1f1   : > { %v4973_v41 = vadd.f32 %v1811_v27, %v1648_v59  ;;  %v1518_v55 = vpop.f32.mrb[84].mxu0  ;;  %v1815_v10 = vpop.f32.mrb[84].mxu1 }
 0x1f2   : > { %v4975_v35 = vadd.f32 %v1518_v55, %v1147_v37  ;;  %v1520_v36 = vpop.f32.mrb[85].mxu0  ;;  %v1892_v32 = vadd.f32 %v1815_v10, %v4839_v21  ;;  %v1817_v13 = vpop.f32.mrb[85].mxu1  ;;  %v1151_v10 = vadd.f32 %v4987_v53, %v4864_v33 }
 0x1f3   : > { %v1649_v52 = vadd.f32 %v4542_v48, %v1520_v36 }
 0x1f4   : > { %3006 = vst [vmem:[%s4797_s21 + $0xc0] sm:$0xff] %v1892_v32 }
 0x1f5   : > { %v4982_v49 = vadd.f32 %v1817_v13, %v1649_v52  ;;  %v1524_v54 = vpop.f32.mrb[86].mxu0  ;;  %v1821_v58 = vpop.f32.mrb[86].mxu1 }
 0x1f6   : > { %v4984_v31 = vadd.f32 %v1524_v54, %v1148_v3  ;;  %v1526_v23 = vpop.f32.mrb[87].mxu0  ;;  %v1893_v38 = vadd.f32 %v1821_v58, %v4846_v11  ;;  %v1823_v51 = vpop.f32.mrb[87].mxu1  ;;  %v1152_v58 = vadd.f32 %v4987_v53, %v4871_v34 }
 0x1f7   : > { %v1650_v21 = vadd.f32 %v4987_v53, %v1526_v23 }
 0x1f8   : > { %3007 = vst [vmem:[%s4797_s21 + $0xc8] sm:$0xff] %v1893_v38 }
 0x1f9   : > { %v4993_v48 = vadd.f32 %v1823_v51, %v1650_v21  ;;  %v1530_v16 = vpop.f32.mrb[88].mxu0  ;;  %v1827_v26 = vpop.f32.mrb[88].mxu1 }
 0x1fa   : > { %v4995_v30 = vadd.f32 %v1530_v16, %v1149_v24  ;;  %v1532_v18 = vpop.f32.mrb[89].mxu0  ;;  %v1894_v19 = vadd.f32 %v1827_v26, %v4853_v60  ;;  %v1829_v43 = vpop.f32.mrb[89].mxu1  ;;  %v1153_v26 = vadd.f32 %v4987_v53, %v4878_v12 }
 0x1fb   : > { %v1651_v11 = vadd.f32 %v4987_v53, %v1532_v18 }
 0x1fc   : > { %3008 = vst [vmem:[%s4797_s21 + $0xd0] sm:$0xff] %v1894_v19 }
 0x1fd   : > { %v5002_v5 = vadd.f32 %v1829_v43, %v1651_v11  ;;  %v1536_v45 = vpop.f32.mrb[90].mxu0  ;;  %v1833_v59 = vpop.f32.mrb[90].mxu1 }
 0x1fe   : > { %v5004_v0 = vadd.f32 %v1536_v45, %v1150_v20  ;;  %v1538_v27 = vpop.f32.mrb[91].mxu0  ;;  %v1895_v37 = vadd.f32 %v1833_v59, %v4860_v57  ;;  %v1835_v60 = vpop.f32.mrb[91].mxu1  ;;  %v1154_v59 = vadd.f32 %v4987_v53, %v4885_v4 }
 0x1ff   : > { %v1652_v55 = vadd.f32 %v4987_v53, %v1538_v27 }
 0x200   : > { %3009 = vst [vmem:[%s4797_s21 + $0xd8] sm:$0xff] %v1895_v37 }
 0x201   : > { %v5011_v36 = vadd.f32 %v1835_v60, %v1652_v55  ;;  %v1542_v39 = vpop.f32.mrb[92].mxu0  ;;  %v1839_v52 = vpop.f32.mrb[92].mxu1 }
 0x202   : > { %v5013_v32 = vadd.f32 %v1542_v39, %v1151_v10  ;;  %v1544_v13 = vpop.f32.mrb[93].mxu0  ;;  %v1896_v3 = vadd.f32 %v1839_v52, %v4867_v6  ;;  %v1841_v57 = vpop.f32.mrb[93].mxu1  ;;  %v1155_v52 = vadd.f32 %v4987_v53, %v4892_v63 }
 0x203   : > { %v1653_v54 = vadd.f32 %v4987_v53, %v1544_v13 }
 0x204   : > { %3010 = vst [vmem:[%s4797_s21 + $0xe0] sm:$0xff] %v1896_v3 }
 0x205   : > { %v5020_v23 = vadd.f32 %v1841_v57, %v1653_v54  ;;  %v1548_v33 = vpop.f32.mrb[94].mxu0  ;;  %v1845_v21 = vpop.f32.mrb[94].mxu1 }
 0x206   : > { %v5022_v38 = vadd.f32 %v1548_v33, %v1152_v58  ;;  %v1550_v51 = vpop.f32.mrb[95].mxu0  ;;  %v1897_v24 = vadd.f32 %v1845_v21, %v4874_v28  ;;  %v1847_v6 = vpop.f32.mrb[95].mxu1  ;;  %v1156_v21 = vadd.f32 %v4987_v53, %v4899_v17 }
 0x207   : > { %v1654_v16 = vadd.f32 %v4987_v53, %v1550_v51 }
 0x208   : > { %3011 = vst [vmem:[%s4797_s21 + $0xe8] sm:$0xff] %v1897_v24 }
 0x209   : > { %v5029_v18 = vadd.f32 %v1847_v6, %v1654_v16  ;;  %v1554_v34 = vpop.f32.mrb[96].mxu0  ;;  %v1851_v11 = vpop.f32.mrb[96].mxu1 }
 0x20a   : > { %v5031_v19 = vadd.f32 %v1554_v34, %v1153_v26  ;;  %v1556_v43 = vpop.f32.mrb[97].mxu0  ;;  %v1898_v20 = vadd.f32 %v1851_v11, %v4881_v8  ;;  %v1853_v28 = vpop.f32.mrb[97].mxu1  ;;  %v1157_v11 = vadd.f32 %v4987_v53, %v4906_v42 }
 0x20b   : > { %v1655_v45 = vadd.f32 %v4987_v53, %v1556_v43 }
 0x20c   : > { %3012 = vst [vmem:[%s4797_s21 + $0xf0] sm:$0xff] %v1898_v20 }
 0x20d   : > { %v5038_v27 = vadd.f32 %v1853_v28, %v1655_v45  ;;  %v1560_v12 = vpop.f32.mrb[98].mxu0  ;;  %v1857_v55 = vpop.f32.mrb[98].mxu1 }
 0x20e   : > { %v5040_v37 = vadd.f32 %v1560_v12, %v1154_v59  ;;  %v1562_v60 = vpop.f32.mrb[99].mxu0  ;;  %v1899_v10 = vadd.f32 %v1857_v55, %v4888_v9  ;;  %v1859_v8 = vpop.f32.mrb[99].mxu1  ;;  %v1158_v55 = vadd.f32 %v4987_v53, %v4913_v2 }
 0x20f   : > { %v1656_v39 = vadd.f32 %v4987_v53, %v1562_v60 }
 0x210   : > { %3013 = vst [vmem:[%s4797_s21 + $0xf8] sm:$0xff] %v1899_v10 }
 0x211   : > { %v5047_v13 = vadd.f32 %v1859_v8, %v1656_v39  ;;  %v1566_v4 = vpop.f32.mrb[100].mxu0  ;;  %v1863_v54 = vpop.f32.mrb[100].mxu1 }
 0x212   : > { %v5049_v3 = vadd.f32 %v1566_v4, %v1155_v52  ;;  %v1568_v57 = vpop.f32.mrb[101].mxu0  ;;  %v1900_v58 = vadd.f32 %v1863_v54, %v4895_v14  ;;  %v1865_v9 = vpop.f32.mrb[101].mxu1 }
 0x213   : > { %v1657_v33 = vadd.f32 %v4987_v53, %v1568_v57 }
 0x214   : > { %3014 = vst [vmem:[%s4797_s21 + $0x100] sm:$0xff] %v1900_v58 }
 0x215   : > { %v5056_v51 = vadd.f32 %v1865_v9, %v1657_v33  ;;  %v1572_v63 = vpop.f32.mrb[102].mxu0  ;;  %v1869_v16 = vpop.f32.mrb[102].mxu1 }
 0x216   : > { %v5058_v24 = vadd.f32 %v1572_v63, %v1156_v21  ;;  %v1574_v6 = vpop.f32.mrb[103].mxu0  ;;  %v1901_v26 = vadd.f32 %v1869_v16, %v4902_v1  ;;  %v1871_v14 = vpop.f32.mrb[103].mxu1 }
 0x217   : > { %v1658_v34 = vadd.f32 %v4987_v53, %v1574_v6 }
 0x218   : > { %3015 = vst [vmem:[%s4797_s21 + $0x108] sm:$0xff] %v1901_v26 }
 0x219   : > { %v5065_v43 = vadd.f32 %v1871_v14, %v1658_v34  ;;  %v1578_v17 = vpop.f32.mrb[104].mxu0  ;;  %v1875_v45 = vpop.f32.mrb[104].mxu1 }
 0x21a   : > { %v5067_v20 = vadd.f32 %v1578_v17, %v1157_v11  ;;  %v1580_v28 = vpop.f32.mrb[105].mxu0  ;;  %v1902_v59 = vadd.f32 %v1875_v45, %v4909_v50  ;;  %v1877_v1 = vpop.f32.mrb[105].mxu1 }
 0x21b   : > { %v1659_v12 = vadd.f32 %v4987_v53, %v1580_v28 }
 0x21c   : > { %3016 = vst [vmem:[%s4797_s21 + $0x110] sm:$0xff] %v1902_v59 }
 0x21d   : > { %v5074_v60 = vadd.f32 %v1877_v1, %v1659_v12  ;;  %v1584_v42 = vpop.f32.mrb[106].mxu0  ;;  %v1881_v39 = vpop.f32.mrb[106].mxu1 }
 0x21e   : > { %v5076_v10 = vadd.f32 %v1584_v42, %v1158_v55  ;;  %v1586_v8 = vpop.f32.mrb[107].mxu0  ;;  %v1903_v52 = vadd.f32 %v1881_v39, %v4918_v25  ;;  %v1883_v50 = vpop.f32.mrb[107].mxu1 }
 0x21f   : > { %v1660_v4 = vadd.f32 %v4987_v53, %v1586_v8 }
 0x220   : > { %3017 = vst [vmem:[%s4797_s21 + $0x118] sm:$0xff] %v1903_v52 }
 0x221   : > { %v5081_v54 = vadd.f32 %v1883_v50, %v1660_v4  ;;  %v3345_v57 = vpop.f32.mrb[108].mxu0  ;;  %v2249_v58 = vpop.f32.mrb[108].mxu1 }
 0x222   : > { %v2114_v2 = vadd.f32 %v3345_v57, %v4930_v15  ;;  %v2024_v33 = vpop.f32.mrb[109].mxu0  ;;  %v2251_v21 = vpop.f32.mrb[109].mxu1 }
 0x223   : > { %v2113_v9 = vadd.f32 %v2024_v33, %v4921_v7  ;;  %v5086_v63 = vadd.f32 %v2251_v21, %v4928_v22 }
 0x225   : > { %v2356_v25 = vadd.f32 %v2249_v58, %v2113_v9  ;;  %v3348_v16 = vpop.f32.mrb[110].mxu0  ;;  %v2255_v6 = vpop.f32.mrb[110].mxu1 }
 0x226   : > { %v2116_v53 = vadd.f32 %v3348_v16, %v4948_v40  ;;  %v2034_v26 = vpop.f32.mrb[111].mxu0  ;;  %v2357_v34 = vadd.f32 %v2255_v6, %v2114_v2  ;;  %v2257_v14 = vpop.f32.mrb[111].mxu1 }
 0x227   : > { %3018 = vst [vmem:[%s4797_s21 + $0x120] sm:$0xff] %v2356_v25  ;;  %v2115_v15 = vadd.f32 %v2034_v26, %v4939_v56  ;;  %v5092_v11 = vadd.f32 %v2257_v14, %v4937_v61 }
 0x228   : > { %3019 = vst [vmem:[%s4797_s21 + $0x128] sm:$0xff] %v2357_v34 }
 0x229   : > { %v3351_v7 = vpop.f32.mrb[112].mxu0  ;;  %v2261_v17 = vpop.f32.mrb[112].mxu1 }
 0x22a   : > { %v2118_v22 = vadd.f32 %v3351_v7, %v4966_v47  ;;  %v2044_v45 = vpop.f32.mrb[113].mxu0  ;;  %v2358_v28 = vadd.f32 %v2261_v17, %v2115_v15  ;;  %v2263_v59 = vpop.f32.mrb[113].mxu1 }
 0x22b   : > { %v2117_v40 = vadd.f32 %v2044_v45, %v4957_v62  ;;  %v5098_v12 = vadd.f32 %v2263_v59, %v4946_v46 }
 0x22c   : > { %3020 = vst [vmem:[%s4797_s21 + $0x130] sm:$0xff] %v2358_v28 }
 0x22d   : > { %v3354_v56 = vpop.f32.mrb[114].mxu0  ;;  %v2267_v61 = vpop.f32.mrb[114].mxu1 }
 0x22e   : > { %v2120_v1 = vadd.f32 %v3354_v56, %v4984_v31  ;;  %v2054_v55 = vpop.f32.mrb[115].mxu0  ;;  %v2359_v42 = vadd.f32 %v2267_v61, %v2116_v53  ;;  %v2269_v39 = vpop.f32.mrb[115].mxu1 }
 0x22f   : > { %v2119_v47 = vadd.f32 %v2054_v55, %v4975_v35  ;;  %v2377_v8 = vadd.f32 %v2269_v39, %v4955_v29 }
 0x230   : > { %3021 = vst [vmem:[%s4797_s21 + $0x138] sm:$0xff] %v2359_v42 }
 0x231   : > { %v3357_v52 = vpop.f32.mrb[116].mxu0  ;;  %v2273_v46 = vpop.f32.mrb[116].mxu1 }
 0x232   : > { %v2122_v62 = vadd.f32 %v3357_v52, %v5004_v0  ;;  %v2064_v4 = vpop.f32.mrb[117].mxu0  ;;  %v2360_v50 = vadd.f32 %v2273_v46, %v2117_v40  ;;  %v2275_v31 = vpop.f32.mrb[117].mxu1 }
 0x233   : > { %v2121_v57 = vadd.f32 %v2064_v4, %v4995_v30  ;;  %v5108_v2 = vadd.f32 %v2275_v31, %v4964_v44 }
 0x234   : > { %3022 = vst [vmem:[%s4797_s21 + $0x140] sm:$0xff] %v2360_v50 }
 0x235   : > { %v3360_v58 = vpop.f32.mrb[118].mxu0  ;;  %v2279_v29 = vpop.f32.mrb[118].mxu1 }
 0x236   : > { %v2124_v35 = vadd.f32 %v3360_v58, %v5022_v38  ;;  %v2074_v33 = vpop.f32.mrb[119].mxu0  ;;  %v2361_v9 = vadd.f32 %v2279_v29, %v2118_v22  ;;  %v2281_v21 = vpop.f32.mrb[119].mxu1 }
 0x237   : > { %v2123_v0 = vadd.f32 %v2074_v33, %v5013_v32  ;;  %v2379_v25 = vadd.f32 %v2281_v21, %v4973_v41 }
 0x238   : > { %3023 = vst [vmem:[%s4797_s21 + $0x148] sm:$0xff] %v2361_v9 }
 0x239   : > { %v3363_v16 = vpop.f32.mrb[120].mxu0  ;;  %v2285_v44 = vpop.f32.mrb[120].mxu1 }
 0x23a   : > { %v5116_v30 = vadd.f32 %v3363_v16, %v5040_v37  ;;  %v2084_v53 = vpop.f32.mrb[121].mxu0  ;;  %v2362_v6 = vadd.f32 %v2285_v44, %v2119_v47  ;;  %v2287_v26 = vpop.f32.mrb[121].mxu1 }
 0x23b   : > { %v2125_v38 = vadd.f32 %v2084_v53, %v5031_v19  ;;  %v2380_v34 = vadd.f32 %v2287_v26, %v4982_v49 }
 0x23c   : > { %3024 = vst [vmem:[%s4797_s21 + $0x150] sm:$0xff] %v2362_v6 }
 0x23d   : > { %v3366_v15 = vpop.f32.mrb[122].mxu0  ;;  %v2291_v41 = vpop.f32.mrb[122].mxu1 }
 0x23e   : > { %v5122_v32 = vadd.f32 %v3366_v15, %v5058_v24  ;;  %v2094_v14 = vpop.f32.mrb[123].mxu0  ;;  %v2363_v7 = vadd.f32 %v2291_v41, %v2120_v1  ;;  %v2293_v22 = vpop.f32.mrb[123].mxu1 }
 0x23f   : > { %v5125_v37 = vadd.f32 %v2094_v14, %v5049_v3  ;;  %v2381_v17 = vadd.f32 %v2293_v22, %v4993_v48 }
 0x240   : > { %3025 = vst [vmem:[%s4797_s21 + $0x158] sm:$0xff] %v2363_v7 }
 0x241   : > { %v3369_v19 = vpop.f32.mrb[124].mxu0  ;;  %v2297_v45 = vpop.f32.mrb[124].mxu1 }
 0x242   : > { %v5130_v49 = vadd.f32 %v3369_v19, %v5076_v10  ;;  %v2104_v24 = vpop.f32.mrb[125].mxu0  ;;  %v2364_v28 = vadd.f32 %v2297_v45, %v2121_v57  ;;  %v2299_v59 = vpop.f32.mrb[125].mxu1 }
 0x243   : > { %v5133_v40 = vadd.f32 %v2104_v24, %v5067_v20  ;;  %v2382_v3 = vadd.f32 %v2299_v59, %v5002_v5 }
 0x244   : > { %3026 = vst [vmem:[%s4797_s21 + $0x160] sm:$0xff] %v2364_v28 }
 0x245   : > { %v3404_v56 = vpop.f32.mrb[126].mxu0  ;;  %v2303_v48 = vpop.f32.mrb[126].mxu1 }
 0x246   : > { %v2584_v1 = vadd.f32 %v3404_v56, %v5092_v11  ;;  %v2494_v61 = vpop.f32.mrb[127].mxu0  ;;  %v2365_v10 = vadd.f32 %v2303_v48, %v2122_v62  ;;  %v2305_v55 = vpop.f32.mrb[127].mxu1 }
 0x247   : > { %v2583_v42 = vadd.f32 %v2494_v61, %v5086_v63  ;;  %v2383_v20 = vadd.f32 %v2305_v55, %v5011_v36 }
 0x248   : > { %3037 = vst [vmem:[%s4797_s21 + $0x1b8] sm:$0xff] %v2584_v1  ;;  %3027 = vst [vmem:[%s4797_s21 + $0x168] sm:$0xff] %v2365_v10 }
 0x249   : > { %3036 = vst [vmem:[%s4797_s21 + $0x1b0] sm:$0xff] %v2583_v42  ;;  %v3407_v47 = vpop.f32.mrb[128].mxu0  ;;  %v2309_v5 = vpop.f32.mrb[128].mxu1 }
 0x24a   : > { %v2586_v39 = vadd.f32 %v3407_v47, %v2377_v8  ;;  %v2504_v52 = vpop.f32.mrb[129].mxu0  ;;  %v2366_v46 = vadd.f32 %v2309_v5, %v2123_v0  ;;  %v2311_v11 = vpop.f32.mrb[129].mxu1 }
 0x24b   : > { %v2585_v62 = vadd.f32 %v2504_v52, %v5098_v12  ;;  %v2384_v4 = vadd.f32 %v2311_v11, %v5020_v23 }
 0x24c   : > { %3039 = vst [vmem:[%s4797_s21 + $0x1c8] sm:$0xff] %v2586_v39  ;;  %3028 = vst [vmem:[%s4797_s21 + $0x170] sm:$0xff] %v2366_v46 }
 0x24d   : > { %3038 = vst [vmem:[%s4797_s21 + $0x1c0] sm:$0xff] %v2585_v62  ;;  %v3410_v63 = vpop.f32.mrb[130].mxu0  ;;  %v2315_v36 = vpop.f32.mrb[130].mxu1 }
 0x24e   : > { %v2588_v50 = vadd.f32 %v3410_v63, %v2379_v25  ;;  %v2514_v57 = vpop.f32.mrb[131].mxu0  ;;  %v2367_v31 = vadd.f32 %v2315_v36, %v2124_v35  ;;  %v2317_v8 = vpop.f32.mrb[131].mxu1 }
 0x24f   : > { %v2587_v58 = vadd.f32 %v2514_v57, %v5108_v2  ;;  %v2385_v29 = vadd.f32 %v2317_v8, %v5029_v18 }
 0x250   : > { %3041 = vst [vmem:[%s4797_s21 + $0x1d8] sm:$0xff] %v2588_v50  ;;  %3029 = vst [vmem:[%s4797_s21 + $0x178] sm:$0xff] %v2367_v31 }
 0x251   : > { %3040 = vst [vmem:[%s4797_s21 + $0x1d0] sm:$0xff] %v2587_v58  ;;  %v3413_v12 = vpop.f32.mrb[132].mxu0  ;;  %v2321_v23 = vpop.f32.mrb[132].mxu1 }
 0x252   : > { %v2590_v33 = vadd.f32 %v3413_v12, %v2381_v17  ;;  %v2524_v9 = vpop.f32.mrb[133].mxu0  ;;  %v2368_v0 = vadd.f32 %v2321_v23, %v2125_v38  ;;  %v2323_v21 = vpop.f32.mrb[133].mxu1 }
 0x253   : > { %v2589_v35 = vadd.f32 %v2524_v9, %v2380_v34  ;;  %v2386_v25 = vadd.f32 %v2323_v21, %v5038_v27 }
 0x254   : > { %3043 = vst [vmem:[%s4797_s21 + $0x1e8] sm:$0xff] %v2590_v33  ;;  %3030 = vst [vmem:[%s4797_s21 + $0x180] sm:$0xff] %v2368_v0 }
 0x255   : > { %3042 = vst [vmem:[%s4797_s21 + $0x1e0] sm:$0xff] %v2589_v35  ;;  %v3416_v2 = vpop.f32.mrb[134].mxu0  ;;  %v2327_v16 = vpop.f32.mrb[134].mxu1 }
 0x256   : > { %v2592_v18 = vadd.f32 %v3416_v2, %v2383_v20  ;;  %v2534_v44 = vpop.f32.mrb[135].mxu0  ;;  %v2369_v53 = vadd.f32 %v2327_v16, %v5116_v30  ;;  %v2329_v6 = vpop.f32.mrb[135].mxu1 }
 0x257   : > { %v2591_v38 = vadd.f32 %v2534_v44, %v2382_v3  ;;  %v2387_v26 = vadd.f32 %v2329_v6, %v5047_v13 }
 0x258   : > { %3045 = vst [vmem:[%s4797_s21 + $0x1f8] sm:$0xff] %v2592_v18  ;;  %3031 = vst [vmem:[%s4797_s21 + $0x188] sm:$0xff] %v2369_v53 }
 0x259   : > { %3044 = vst [vmem:[%s4797_s21 + $0x1f0] sm:$0xff] %v2591_v38  ;;  %v3419_v34 = vpop.f32.mrb[136].mxu0  ;;  %v2333_v27 = vpop.f32.mrb[136].mxu1 }
 0x25a   : > { %v2594_v15 = vadd.f32 %v3419_v34, %v2385_v29  ;;  %v2544_v41 = vpop.f32.mrb[137].mxu0  ;;  %v2370_v14 = vadd.f32 %v2333_v27, %v5125_v37  ;;  %v2335_v7 = vpop.f32.mrb[137].mxu1 }
 0x25b   : > { %v2593_v30 = vadd.f32 %v2544_v41, %v2384_v4  ;;  %v2388_v22 = vadd.f32 %v2335_v7, %v5056_v51 }
 0x25c   : > { %3047 = vst [vmem:[%s4797_s21 + $0x208] sm:$0xff] %v2594_v15  ;;  %3032 = vst [vmem:[%s4797_s21 + $0x190] sm:$0xff] %v2370_v14 }
 0x25d   : > { %3046 = vst [vmem:[%s4797_s21 + $0x200] sm:$0xff] %v2593_v30  ;;  %v3422_v17 = vpop.f32.mrb[138].mxu0  ;;  %v2339_v13 = vpop.f32.mrb[138].mxu1 }
 0x25e   : > { %v2596_v19 = vadd.f32 %v3422_v17, %v2387_v26  ;;  %v2554_v45 = vpop.f32.mrb[139].mxu0  ;;  %v2371_v24 = vadd.f32 %v2339_v13, %v5122_v32  ;;  %v2341_v28 = vpop.f32.mrb[139].mxu1 }
 0x25f   : > { %v2595_v37 = vadd.f32 %v2554_v45, %v2386_v25  ;;  %v2389_v59 = vadd.f32 %v2341_v28, %v5065_v43 }
 0x260   : > { %3049 = vst [vmem:[%s4797_s21 + $0x218] sm:$0xff] %v2596_v19  ;;  %3033 = vst [vmem:[%s4797_s21 + $0x198] sm:$0xff] %v2371_v24 }
 0x261   : > { %3048 = vst [vmem:[%s4797_s21 + $0x210] sm:$0xff] %v2595_v37  ;;  %v3425_v3 = vpop.f32.mrb[140].mxu0  ;;  %v2345_v51 = vpop.f32.mrb[140].mxu1 }
 0x262   : > { %v2598_v56 = vadd.f32 %v3425_v3, %v2389_v59  ;;  %v2564_v48 = vpop.f32.mrb[141].mxu0  ;;  %v2372_v1 = vadd.f32 %v2345_v51, %v5133_v40  ;;  %v2347_v61 = vpop.f32.mrb[141].mxu1 }
 0x263   : > { %v2597_v32 = vadd.f32 %v2564_v48, %v2388_v22  ;;  %v2390_v10 = vadd.f32 %v2347_v61, %v5074_v60 }
 0x264   : > { %3051 = vst [vmem:[%s4797_s21 + $0x228] sm:$0xff] %v2598_v56  ;;  %3034 = vst [vmem:[%s4797_s21 + $0x1a0] sm:$0xff] %v2372_v1 }
 0x265   : > { %3050 = vst [vmem:[%s4797_s21 + $0x220] sm:$0xff] %v2597_v32  ;;  %v3428_v43 = vpop.f32.mrb[142].mxu0  ;;  %v2351_v55 = vpop.f32.mrb[142].mxu1 }
 0x266   : > { %v2574_v42 = vpop.f32.mrb[143].mxu0  ;;  %v2373_v20 = vadd.f32 %v2351_v55, %v5130_v49  ;;  %v2353_v47 = vpop.f32.mrb[143].mxu1 }
 0x267   : > { %v2599_v5 = vadd.f32 %v2574_v42, %v2390_v10  ;;  %v2391_v39 = vadd.f32 %v2353_v47, %v5081_v54 }
 0x268   : > { %3035 = vst [vmem:[%s4797_s21 + $0x1a8] sm:$0xff] %v2373_v20 }
 0x269   : > { %3052 = vst [vmem:[%s4797_s21 + $0x230] sm:$0xff] %v2599_v5  ;;  %v2600_v40 = vadd.f32 %v3428_v43, %v2391_v39 }
 0x26b   : > { %3053 = vst [vmem:[%s4797_s21 + $0x238] sm:$0xff] %v2600_v40 }
 0x26c   : > { %s2684_s25 = smul.u32 18, %s3975_s15  ;;  %s2708_s28 = sshll.u32 %s4797_s21, 4  ;;  %s2709_s28 = int_to_ptr.vmem [resolvable:$true] %s2708_s28 }
 0x26d   : > { %s3751_s7 = smul.u32 144, %s3979_s16  ;;  %s3998_s23 = smov 2304  }
 0x26e   : > { %p5253_p2 = scmp.ne.s32.totalorder %s5245_s26, 0  ;;  %s3999_s22 = smov 4608  }
 0x26f   : > { %s2689_s29 = sadd.s32 %s3751_s7, %s2684_s25  ;;  %s4000_s6 = smov 18  }
 0x270   : > { %3760 = sst [smem:[#allocation9]] (%p5253_p2), %s3998_s23  ;;  %s3054_s18 = sshll.u32 %s2689_s29, 7 }
 0x271   : > { %3761 = sst [smem:[#allocation9 + $0x1]] (%p5253_p2), %s3999_s22  ;;  %s2691_s8 = scalar_lea.hbm %s5235_s3, %s3054_s18 }
 0x272   : > { %3762 = sst [smem:[#allocation9 + $0x2]] (%p5253_p2), %s4000_s6  ;;  %s4001_s15 = smov 128  }
 0x273   : > { %3763 = sst [smem:[#allocation9 + $0x3]] (%p5253_p2), %s4001_s15  ;;  %s4002_s16 = smov 8  }
 0x274   : > { %3764 = sst [smem:[#allocation9 + $0x4]] (%p5253_p2), %s4001_s15  ;;  %s4003_s9 = smov [#allocation8]  }
 0x275   : > { %3765 = sst [smem:[#allocation9 + $0x5]] (%p5253_p2), %s4002_s16  ;;  %s4004_s10 = smov 0  }
 0x276   : > { %3766 = dma.general (%p5253_p2), %s2709_s28, 9216, %s2691_s8, %s2677_s24, %s4003_s9, [#allocation9], %s4004_s10, 0  }
 0x277 PF: > { %p3783_p10 = scmp.ge.s32.totalorder %s3991_s19, 2  ;;  %s2736_s11 = sand.u32 1, %s3963_s12  }
 0x278   : > { %p5254_p12 = scmp.ne.s32.totalorder %s5247_s27, 0  ;;  %s2737_s20 = scalar_lea.sflag [#allocation4], %s2736_s11 }
 0x27a   : > { %p3776_p1 = pnand %p3783_p10, %p5254_p12 }
 0x27c   : > { %3958 = dma.done.wait (!%p3776_p1), %s2737_s20, 9216  }
 0x27d   : > { %3960 = vsyncadd (!%p3776_p1), %s2737_s20, 4294958080  ;;  %s18_s19 = sadd.s32 1, %s3991_s19   ;;  %s5255_s16 = sld [smem:[#allocation13_spill]] }
 0x27e   : > { %p15_p4 = scmp.ge.s32.totalorder %s18_s19, 6   ;;  %s5256_s26 = sld [smem:[#allocation14_spill]] }
 0x27f   : > { %s5257_s18 = sld [smem:[#allocation15_spill]]  ;;  %s5258_s12 = smov %s3967_s13 }
 0x280   : > { %s5259_s13 = smov %s3971_s14  ;;  %s5260_s14 = smov %s4104_s5 }
 0x281   : > { %s5261_s15 = smov %s3983_s17  ;;  %17 = sbr.rel (!%p15_p4) target bundleno = 7 (0x7), region = 93 }
 0x284   : > { %s5262_s17 = smov %s5256_s26 }
 0x288   :  { %2742 = vsyncpa [#allocation3], 1 }
 0x289   :  { %2744 = vsyncpa [#allocation3 + $0x1], 1 }
 0x28a   :  { %2745 = vsyncpa [#allocation6], 1 }
 0x28b   :  { %2746 = vsyncpa [#allocation4], 1 }
 0x28c   :  { %2748 = vsyncpa [#allocation4 + $0x1], 1 }

// kernel: tpu_custom_call.1
= control target key start
LH: loop header
LB: loop body
LE: loop exit
PB: predicated region body
PF: predicated region fallthrough
CT: control target
= control target key end

     0   :  { %8 = vsyncpa [#allocation3], 0  ;;  %s5232_s0 = inlined_call_operand.vmem [shape: f32[2,342,128], index: 0, kind: input, shape index: {}]   ;;  %s5233_s1 = inlined_call_operand.hbm [shape: f32[128,2048], index: 1, kind: input, shape index: {}]   ;;  %s5234_s2 = inlined_call_operand.hbm [shape: f32[1,128], index: 2, kind: input, shape index: {}]   ;;  %s5235_s3 = inlined_call_operand.hbm [shape: f32[2,2,2,288,128], index: 3, kind: output, shape index: {}]  }
   0x1   :  { %9 = vsyncpa [#allocation6], 0 }
   0x2   :  { %10 = vsyncpa [#allocation4], 0 }
   0x3   :  { %12 = vsyncpa [#allocation4 + $0x1], 0  ;;  %s4025_s12 = smov 0   ;;  %s4027_s13 = smov 0  }
   0x4   :  { %s4029_s14 = smov 0   ;;  %s4031_s15 = smov 0  }
   0x5   :  { %s4033_s16 = smov 0   ;;  %s4035_s17 = smov 0  }
   0x6   :  { %s4037_s18 = smov 0   ;;  %s4039_s19 = smov 0  }
   0x7 LB: > { %5243 = sst [smem:[#allocation13_spill]] %s3987_s18  ;;  %s2845_s20 = sadd.s32 4294967295, %s3991_s19   ;;  %s3991_s19 = sphi %s4039_s19, %s18_s19   ;;  %s3987_s18 = sphi %s4037_s18, %s5257_s18   ;;  %s3983_s17 = sphi %s4035_s17, %s5262_s17   ;;  %s3979_s16 = sphi %s4033_s16, %s5255_s16   ;;  %s3975_s15 = sphi %s4031_s15, %s5261_s15   ;;  %s3971_s14 = sphi %s4029_s14, %s5260_s14   ;;  %s3967_s13 = sphi %s4027_s13, %s5259_s13   ;;  %s3963_s12 = sphi %s4025_s12, %s5258_s12  }
   0x8   : > { %s2846_s21 = sadd.s32 4294967294, %s3991_s19   ;;  %s27_s22 = sadd.s32 1, %s3983_s17 }
   0x9   : > { %s30_s23 = sadd.s32 1, %s3987_s18  ;;  %p28_p0 = scmp.ge.s32.totalorder %s27_s22, 2 }
   0xa   : > { %s107_s24 = sadd.s32 1, %s3971_s14  ;;  %p117_p1 = scmp.ne.s32.totalorder %s3971_s14, %s3967_s13 }
   0xb   : > { %p118_p2 = scmp.eq.s32.totalorder %s2845_s20, 3  ;;  %s5264_s22 = smov (%p28_p0, %s27_s22), 0 }
   0xc   : > { %5244 = sst [smem:[#allocation14_spill]] %s5264_s22  ;;  %s5266_s23 = smov (!%p28_p0, %s30_s23), %s3987_s18 }
   0xd   : > { %s103_s25 = ssub.s32 %s3983_s17, %s5264_s22  ;;  %p4077_p3 = por %p118_p2, %p117_p1 }
   0xe   : > { %p32_p4 = scmp.ge.s32.totalorder %s5266_s23, 2  ;;  %p123_p5 = scmp.ne.s32.totalorder %s3967_s13, %s3963_s12 }
   0xf   : > { %s5245_s26 = scalar_select %p4077_p3, 1, 0 }
  0x10   : > { %p124_p6 = scmp.eq.s32.totalorder %s2846_s21, 3  ;;  %p2847_p7 = scmp.ge.s32.totalorder %s3991_s19, 1 }
  0x11   : > { %s5268_s23 = smov (%p32_p4, %s5266_s23), 0  ;;  %p131_p9 = scmp.lt.s32.totalorder %s3991_s19, 5 }
  0x12   : > { %5246 = sst [smem:[#allocation15_spill]] %s5268_s23  ;;  %p4086_p8 = por %p124_p6, %p123_p5 }
  0x13   : > { %s102_s28 = ssub.s32 %s3987_s18, %s5268_s23  ;;  %p4093_p10 = pnand %p2847_p7, %p131_p9 }
  0x14   : > { %s5247_s27 = scalar_select %p4086_p8, 1, 0 }
  0x15   : > { %s104_s29 = sor.u32 %s103_s25, %s102_s28  ;;  %p4097_p12 = scmp.eq.s32.totalorder %s2845_s20, 0 }
  0x16   : > { %s5248_s30 = scalar_select %p4093_p10, 1, 0 }
  0x17   : > { %p105_p11 = scmp.eq.s32.totalorder %s104_s29, 0  ;;  %p3768_p13 = pneg %p4093_p10 }
  0x18   : > { %s5249_s4 = scalar_select %p4097_p12, 1, 0 }
  0x19   : > { %s4104_s5 = scalar_select %p105_p11, %s3971_s14, %s107_s24  }
  0x1a   : > { %s3993_s6 = smov [#allocation2]   ;;  %p4108_p0 = pnand %p4097_p12, %p3768_p13 }
  0x1b   : > { %s143_s7 = sshll.u32 %s3993_s6, 4  ;;  %s3861_s11 = scalar_lea.hbm %s5233_s1, 32768  ;;  %s144_s7 = int_to_ptr.vmem [resolvable:$true] %s143_s7 }
  0x1c   : > { %p3862_p1 = scmp.ne.s32.totalorder %s5233_s1, %s3861_s11  ;;  %p3863_p2 = pneg %p4108_p0 }
  0x1d   : > { %p3868_p6 = scmp.lt.u32.totalorder %s3861_s11, %s5233_s1 }
  0x1e   : > { %p3864_p4 = pnand %p3863_p2, %p3862_p1 }
  0x20   : > { %p3865_p5 = pneg %p3864_p4 }
  0x22   : > { %p3870_p7 = pnand %p3868_p6, %p3865_p5 }
  0x24   : > { %3873 = shalt.err (!%p3870_p7)
}
  0x25   : > { %s3874_s28 = scalar_lea.vmem %s144_s7, 32768  ;;  %p3882_p8 = scmp.lt.s32.totalorder %s144_s7, %s144_s7 }
  0x26   : > { %p3875_p9 = scmp.ne.s32.totalorder %s144_s7, %s3874_s28  ;;  %p3883_p3 = scmp.lt.s32.totalorder %s3874_s28, %s3874_s28 }
  0x28   : > { %p3877_p11 = pnand %p3875_p9, %p3863_p2  ;;  %p3884_p12 = por %p3883_p3, %p3882_p8 }
  0x2a   : > { %p3878_p13 = pneg %p3877_p11 }
  0x2c   : > { %p3885_p10 = pnand %p3884_p12, %p3878_p13 }
  0x2e   : > { %3888 = shalt.err (!%p3885_p10)
}
  0x2f   : > { %s3994_s29 = smov 2048   ;;  %s3995_s6 = smov 128  }
  0x30   : > { %3771 = dma.hbm_to_vmem [thread:$0]  (!%p4108_p0), %s5233_s1, 32768, %s144_s7, [#allocation3], %s3994_s29, %s3994_s29, %s3995_s6  }
  0x31   : > { %s3996_s11 = smov [#allocation5]   ;;  %s3889_s25 = scalar_lea.hbm %s5234_s2, 16 }
  0x32   : > { %s157_s20 = sshll.u32 %s3996_s11, 4  ;;  %p3890_p3 = scmp.ne.s32.totalorder %s5234_s2, %s3889_s25  ;;  %s158_s20 = int_to_ptr.vmem [resolvable:$true] %s157_s20 }
  0x33   : > { %p3896_p12 = scmp.lt.u32.totalorder %s3889_s25, %s5234_s2 }
  0x34   : > { %p3892_p8 = pnand %p3890_p3, %p3863_p2 }
  0x36   : > { %p3893_p10 = pneg %p3892_p8 }
  0x38   : > { %p3898_p1 = pnand %p3896_p12, %p3893_p10 }
  0x3a   : > { %3901 = shalt.err (!%p3898_p1)
}
  0x3b   : > { %s3902_s7 = scalar_lea.vmem %s158_s20, 16  ;;  %s3909_s29 = scalar_lea.vmem %s158_s20, 32 }
  0x3c   : > { %p3903_p4 = scmp.ne.s32.totalorder %s158_s20, %s3902_s7  ;;  %p3910_p7 = scmp.lt.s32.totalorder %s158_s20, %s158_s20 }
  0x3d   : > { %p3911_p9 = scmp.lt.s32.totalorder %s3909_s29, %s3902_s7 }
  0x3e   : > { %p3905_p5 = pnand %p3903_p4, %p3863_p2 }
  0x3f   : > { %p3912_p11 = por %p3911_p9, %p3910_p7 }
  0x40   : > { %p3906_p6 = pneg %p3905_p5 }
  0x42   : > { %p3913_p13 = pnand %p3912_p11, %p3906_p6 }
  0x44   : > { %3916 = shalt.err (!%p3913_p13)
}
  0x45   : > { %3774 = dma.hbm_to_vmem [thread:$0]  (!%p4108_p0), %s5234_s2, 16, %s158_s20, [#allocation6]  }
  0x46   : > { %p5251_p3 = scmp.ne.s32.totalorder %s5248_s30, 0 }
  0x47   : > { %p5252_p8 = scmp.ne.s32.totalorder (!%p5251_p3), %s5249_s4, 0 }
  0x48   : > { %178 = sbr.rel (%p5251_p3) target bundleno = 631 (0x277), region = 32 }
  0x4f   : > { %3950 = dma.done.wait (%p5252_p8), [#allocation3], 32768  }
  0x50   : > { %3952 = vsyncadd (%p5252_p8), [#allocation3], 4294934528 }
  0x51   : > { %3954 = dma.done.wait (%p5252_p8), [#allocation6], 16  }
  0x52   : > { %3956 = vsyncadd (%p5252_p8), [#allocation6], 4294967280  ;;  %v3997_v0 = vmov 0.0   ;;  %p206_p0 = scmp.lt.s32.totalorder %s3979_s16, 1  ;;  %v239_v1 = vld [vmem:[#allocation2] sm:$0xff]  ;;  %v449_v3 = vld [vmem:[#allocation2 + $0x10] sm:$0xff] }
  0x53   : > { %544 = vmatprep.mubr.f32.mxu1 %v3997_v0  ;;  %v240_v2 = vld [vmem:[#allocation2 + $0x80] sm:$0xff]  ;;  %v451_v5 = vld [vmem:[#allocation2 + $0x90] sm:$0xff]  ;;  %v448_v6 = vld [vmem:[#allocation2 + $0x8] sm:$0xff]  ;;  %s212_s4 = smul.u32 144, %s3975_s15  ;;  %s203_s11 = sand.u32 1, %s3967_s13  }
  0x54   : > { %v3429_v4 = vpack.c.bf16 %v240_v2, %v239_v1  ;;  %v450_v7 = vld [vmem:[#allocation2 + $0x88] sm:$0xff]  ;;  %v3461_v8 = vpack.c.bf16 %v451_v5, %v449_v3  ;;  %v241_v10 = vld [vmem:[#allocation2 + $0x100] sm:$0xff]  ;;  %v453_v12 = vld [vmem:[#allocation2 + $0x110] sm:$0xff]  ;;  %s4167_s22 = scalar_select %p206_p0, %s3979_s16, 1 }
  0x55   : > { %v3463_v9 = vpack.c.bf16 %v450_v7, %v448_v6  ;;  %v242_v11 = vld [vmem:[#allocation2 + $0x180] sm:$0xff]  ;;  %v455_v14 = vld [vmem:[#allocation2 + $0x190] sm:$0xff]  ;;  %v452_v15 = vld [vmem:[#allocation2 + $0x108] sm:$0xff]  ;;  %s3749_s20 = smul.u32 576, %s203_s11  ;;  %s2677_s24 = scalar_lea.sflag [#allocation4], %s203_s11 }
  0x56   : > { %3430 = vmatprep.subr.bf16.mxu0 %v3429_v4  ;;  %v3433_v13 = vpack.c.bf16 %v242_v11, %v241_v10  ;;  %v454_v16 = vld [vmem:[#allocation2 + $0x188] sm:$0xff]  ;;  %3462 = vmatprep.subr.bf16.mxu1 %v3461_v8  ;;  %v3465_v17 = vpack.c.bf16 %v455_v14, %v453_v12  ;;  %v243_v18 = vld [vmem:[#allocation2 + $0x200] sm:$0xff]  ;;  %v457_v20 = vld [vmem:[#allocation2 + $0x210] sm:$0xff]  ;;  %s3750_s30 = smul.u32 344, %s4167_s22 }
  0x57   : > { %3432 = vmatpush3.bf16.msra.mxu0 %v3429_v4  ;;  %v244_v19 = vld [vmem:[#allocation2 + $0x280] sm:$0xff]  ;;  %3464 = vmatpush1.bf16.msra.mxu1 %v3463_v9  ;;  %v3467_v21 = vpack.c.bf16 %v454_v16, %v452_v15  ;;  %v459_v23 = vld [vmem:[#allocation2 + $0x290] sm:$0xff]  ;;  %v456_v24 = vld [vmem:[#allocation2 + $0x208] sm:$0xff]  ;;  %s4797_s21 = scalar_lea.vmem [#allocation7], %s3749_s20 }
  0x58   : > { %3434 = vmatprep.subr.bf16.mxu0 %v3433_v13  ;;  %v3437_v22 = vpack.c.bf16 %v244_v19, %v243_v18  ;;  %3466 = vmatprep.subr.bf16.mxu1 %v3465_v17  ;;  %v3469_v25 = vpack.c.bf16 %v459_v23, %v457_v20  ;;  %v458_v26 = vld [vmem:[#allocation2 + $0x288] sm:$0xff]  ;;  %v245_v27 = vld [vmem:[#allocation2 + $0x300] sm:$0xff]  ;;  %v461_v29 = vld [vmem:[#allocation2 + $0x310] sm:$0xff]  ;;  %s210_s9 = scalar_lea.vmem %s5232_s0, %s3750_s30 }
  0x59   : > { %v246_v28 = vld [vmem:[#allocation2 + $0x380] sm:$0xff]  ;;  %v463_v30 = vld [vmem:[#allocation2 + $0x390] sm:$0xff]  ;;  %v3471_v31 = vpack.c.bf16 %v458_v26, %v456_v24  ;;  %v460_v33 = vld [vmem:[#allocation2 + $0x308] sm:$0xff]  ;;  %s4174_s10 = scalar_lea.vmem %s210_s9, %s212_s4 }
  0x5a   : > { %v3441_v32 = vpack.c.bf16 %v246_v28, %v245_v27  ;;  %v3473_v34 = vpack.c.bf16 %v463_v30, %v461_v29  ;;  %v462_v35 = vld [vmem:[#allocation2 + $0x388] sm:$0xff]  ;;  %v247_v36 = vld [vmem:[#allocation2 + $0x400] sm:$0xff]  ;;  %v465_v38 = vld [vmem:[#allocation2 + $0x410] sm:$0xff] }
  0x5b   : > { %3436 = vmatpush3.bf16.msra.mxu0 %v3433_v13  ;;  %3468 = vmatpush1.bf16.msra.mxu1 %v3467_v21  ;;  %v248_v37 = vld [vmem:[#allocation2 + $0x480] sm:$0xff]  ;;  %v467_v39 = vld [vmem:[#allocation2 + $0x490] sm:$0xff]  ;;  %v3475_v40 = vpack.c.bf16 %v462_v35, %v460_v33  ;;  %v464_v42 = vld [vmem:[#allocation2 + $0x408] sm:$0xff] }
  0x5c   : > { %3438 = vmatprep.subr.bf16.mxu0 %v3437_v22  ;;  %3470 = vmatprep.subr.bf16.mxu1 %v3469_v25  ;;  %v3445_v41 = vpack.c.bf16 %v248_v37, %v247_v36  ;;  %v3477_v43 = vpack.c.bf16 %v467_v39, %v465_v38  ;;  %v466_v44 = vld [vmem:[#allocation2 + $0x488] sm:$0xff]  ;;  %v249_v45 = vld [vmem:[#allocation2 + $0x500] sm:$0xff]  ;;  %v469_v47 = vld [vmem:[#allocation2 + $0x510] sm:$0xff] }
  0x5d   : > { %v250_v46 = vld [vmem:[#allocation2 + $0x580] sm:$0xff]  ;;  %v471_v48 = vld [vmem:[#allocation2 + $0x590] sm:$0xff]  ;;  %v3479_v50 = vpack.c.bf16 %v466_v44, %v464_v42  ;;  %v468_v52 = vld [vmem:[#allocation2 + $0x508] sm:$0xff] }
  0x5e   : > { %v221_v49 = vld [vmem:[%s4174_s10] sm:$0xff]  ;;  %v3449_v51 = vpack.c.bf16 %v250_v46, %v249_v45  ;;  %v3481_v53 = vpack.c.bf16 %v471_v48, %v469_v47  ;;  %v470_v54 = vld [vmem:[#allocation2 + $0x588] sm:$0xff]  ;;  %v251_v55 = vld [vmem:[#allocation2 + $0x600] sm:$0xff] }
  0x5f   : > { %3440 = vmatpush3.bf16.msra.mxu0 %v3437_v22  ;;  %3472 = vmatpush1.bf16.msra.mxu1 %v3471_v31  ;;  %v252_v56 = vld [vmem:[#allocation2 + $0x680] sm:$0xff]  ;;  %v473_v57 = vld [vmem:[#allocation2 + $0x610] sm:$0xff]  ;;  %v3483_v59 = vpack.c.bf16 %v470_v54, %v468_v52  ;;  %v472_v61 = vld [vmem:[#allocation2 + $0x608] sm:$0xff] }
  0x60   : > { %3442 = vmatprep.subr.bf16.mxu0 %v3441_v32  ;;  %3474 = vmatprep.subr.bf16.mxu1 %v3473_v34  ;;  %v475_v58 = vld [vmem:[#allocation2 + $0x690] sm:$0xff]  ;;  %v3453_v60 = vpack.c.bf16 %v252_v56, %v251_v55  ;;  %v474_v63 = vld [vmem:[#allocation2 + $0x688] sm:$0xff]  ;;  %v253_v1 = vld [vmem:[#allocation2 + $0x700] sm:$0xff] }
  0x61   : > { %3225 = vmatprep.mubr.f32.mxu0 %v221_v49  ;;  %v3485_v62 = vpack.c.bf16 %v475_v58, %v473_v57  ;;  %v254_v2 = vld [vmem:[#allocation2 + $0x780] sm:$0xff]  ;;  %v477_v3 = vld [vmem:[#allocation2 + $0x710] sm:$0xff]  ;;  %v3487_v5 = vpack.c.bf16 %v474_v63, %v472_v61  ;;  %v476_v7 = vld [vmem:[#allocation2 + $0x708] sm:$0xff] }
  0x62   : > { %v479_v4 = vld [vmem:[#allocation2 + $0x790] sm:$0xff]  ;;  %v3457_v6 = vpack.c.bf16 %v254_v2, %v253_v1  ;;  %v478_v9 = vld [vmem:[#allocation2 + $0x788] sm:$0xff]  ;;  %v709_v10 = vld [vmem:[#allocation2 + $0x18] sm:$0xff] }
  0x63   : > { %3444 = vmatpush3.bf16.msra.mxu0 %v3441_v32  ;;  %3476 = vmatpush1.bf16.msra.mxu1 %v3475_v40  ;;  %v3489_v8 = vpack.c.bf16 %v479_v4, %v477_v3  ;;  %v710_v11 = vld [vmem:[#allocation2 + $0x98] sm:$0xff]  ;;  %v3491_v14 = vpack.c.bf16 %v478_v9, %v476_v7  ;;  %v1179_v17 = vld [vmem:[#allocation2 + $0x30] sm:$0xff]  ;;  %v223_v26 = vld [vmem:[%s4174_s10 + $0x10] sm:$0xff] }
  0x64   : > { %3446 = vmatprep.subr.bf16.mxu0 %v3445_v41  ;;  %3478 = vmatprep.subr.bf16.mxu1 %v3477_v43  ;;  %v1180_v12 = vld [vmem:[#allocation2 + $0x38] sm:$0xff]  ;;  %v3493_v15 = vpack.c.bf16 %v710_v11, %v709_v10  ;;  %v1183_v18 = vld [vmem:[#allocation2 + $0xb0] sm:$0xff]  ;;  %v224_v33 = vld [vmem:[%s4174_s10 + $0x18] sm:$0xff] }
  0x65   : > { %v1184_v13 = vld [vmem:[#allocation2 + $0xb8] sm:$0xff]  ;;  %v3559_v25 = vpack.c.bf16 %v1183_v18, %v1179_v17  ;;  %v1187_v28 = vld [vmem:[#allocation2 + $0x130] sm:$0xff]  ;;  %v2858_v48 = vld [vmem:[%s4174_s10 + $0x11] sm:$0xff] }
  0x66   : > { %v3557_v16 = vpack.c.bf16 %v1184_v13, %v1180_v12  ;;  %v1188_v19 = vld [vmem:[#allocation2 + $0x138] sm:$0xff]  ;;  %v1191_v29 = vld [vmem:[#allocation2 + $0x1b0] sm:$0xff]  ;;  %v227_v49 = vld [vmem:[%s4174_s10 + $0x30] sm:$0xff] }
  0x67   : > { %3448 = vmatpush3.bf16.msra.mxu0 %v3445_v41  ;;  %3480 = vmatpush1.bf16.msra.mxu1 %v3479_v50  ;;  %v1192_v20 = vld [vmem:[#allocation2 + $0x1b8] sm:$0xff]  ;;  %v225_v37 = vld [vmem:[%s4174_s10 + $0x20] sm:$0xff]  ;;  %v3563_v38 = vpack.c.bf16 %v1191_v29, %v1187_v28  ;;  %v228_v57 = vld [vmem:[%s4174_s10 + $0x38] sm:$0xff] }
  0x68   : > { %3450 = vmatprep.subr.bf16.mxu0 %v3449_v51  ;;  %3482 = vmatprep.subr.bf16.mxu1 %v3481_v53  ;;  %v222_v21 = vld [vmem:[%s4174_s10 + $0x8] sm:$0xff]  ;;  %v3561_v27 = vpack.c.bf16 %v1192_v20, %v1188_v19  ;;  %v1195_v40 = vld [vmem:[#allocation2 + $0x230] sm:$0xff]  ;;  %v231_v10 = vld [vmem:[%s4174_s10 + $0x50] sm:$0xff] }
  0x69   : > { %v711_v22 = vld [vmem:[#allocation2 + $0x118] sm:$0xff]  ;;  %v1199_v41 = vld [vmem:[#allocation2 + $0x2b0] sm:$0xff]  ;;  %v232_v18 = vld [vmem:[%s4174_s10 + $0x58] sm:$0xff] }
  0x6a   : > { %v712_v23 = vld [vmem:[#allocation2 + $0x198] sm:$0xff]  ;;  %v3567_v50 = vpack.c.bf16 %v1199_v41, %v1195_v40  ;;  %v1203_v52 = vld [vmem:[#allocation2 + $0x330] sm:$0xff] }
  0x6b   : > { %3452 = vmatpush3.bf16.msra.mxu0 %v3449_v51  ;;  %3484 = vmatpush1.bf16.msra.mxu1 %v3483_v59  ;;  %v2856_v24 = vld [vmem:[%s4174_s10 + $0x1] sm:$0xff]  ;;  %v3497_v30 = vpack.c.bf16 %v712_v23, %v711_v22  ;;  %v2857_v36 = vld [vmem:[%s4174_s10 + $0x9] sm:$0xff]  ;;  %v2863_v41 = vld [vmem:[%s4174_s10 + $0x39] sm:$0xff] }
  0x6c   : > { %3454 = vmatprep.subr.bf16.mxu0 %v3453_v60  ;;  %3486 = vmatprep.subr.bf16.mxu1 %v3485_v62  ;;  %v1196_v31 = vld [vmem:[#allocation2 + $0x238] sm:$0xff]  ;;  %v1207_v53 = vld [vmem:[#allocation2 + $0x3b0] sm:$0xff] }
  0x6d   : > { %v1200_v32 = vld [vmem:[#allocation2 + $0x2b8] sm:$0xff]  ;;  %v229_v61 = vld [vmem:[%s4174_s10 + $0x40] sm:$0xff]  ;;  %v3571_v62 = vpack.c.bf16 %v1207_v53, %v1203_v52  ;;  %v918_v53 = vld [vmem:[#allocation2 + $0x20] sm:$0xff] }
  0x6e   : > { %v713_v34 = vld [vmem:[#allocation2 + $0x218] sm:$0xff]  ;;  %v3565_v39 = vpack.c.bf16 %v1200_v32, %v1196_v31  ;;  %v1211_v1 = vld [vmem:[#allocation2 + $0x430] sm:$0xff] }
  0x6f   : > { %3456 = vmatpush3.bf16.msra.mxu0 %v3453_v60  ;;  %3488 = vmatpush1.bf16.msra.mxu1 %v3487_v5  ;;  %v714_v35 = vld [vmem:[#allocation2 + $0x298] sm:$0xff]  ;;  %v2859_v60 = vld [vmem:[%s4174_s10 + $0x19] sm:$0xff] }
  0x70   : > { %3458 = vmatprep.subr.bf16.mxu0 %v3457_v6  ;;  %3490 = vmatprep.subr.bf16.mxu1 %v3489_v8  ;;  %v3501_v42 = vpack.c.bf16 %v714_v35, %v713_v34  ;;  %v1204_v43 = vld [vmem:[#allocation2 + $0x338] sm:$0xff]  ;;  %v1215_v2 = vld [vmem:[#allocation2 + $0x4b0] sm:$0xff]  ;;  %v235_v34 = vld [vmem:[%s4174_s10 + $0x70] sm:$0xff] }
  0x71   : > { %v1208_v44 = vld [vmem:[#allocation2 + $0x3b8] sm:$0xff]  ;;  %v3575_v11 = vpack.c.bf16 %v1215_v2, %v1211_v1  ;;  %v1219_v13 = vld [vmem:[#allocation2 + $0x530] sm:$0xff]  ;;  %v927_v1 = vld [vmem:[#allocation2 + $0x228] sm:$0xff] }
  0x72   : > { %v226_v45 = vld [vmem:[%s4174_s10 + $0x28] sm:$0xff]  ;;  %v3569_v51 = vpack.c.bf16 %v1208_v44, %v1204_v43  ;;  %v233_v22 = vld [vmem:[%s4174_s10 + $0x60] sm:$0xff]  ;;  %v921_v43 = vld [vmem:[#allocation2 + $0xa8] sm:$0xff] }
  0x73   : > { %3460 = vmatpush3.bf16.msra.mxu0 %v3457_v6  ;;  %3492 = vmatpush1.bf16.msra.mxu1 %v3491_v14  ;;  %v715_v46 = vld [vmem:[#allocation2 + $0x318] sm:$0xff]  ;;  %v1223_v14 = vld [vmem:[#allocation2 + $0x5b0] sm:$0xff]  ;;  %v929_v2 = vld [vmem:[#allocation2 + $0x2a8] sm:$0xff] }
  0x74   : > { %3494 = vmatprep.subr.bf16.mxu0 %v3493_v15  ;;  %3558 = vmatprep.subr.bf16.mxu1 %v3557_v16  ;;  %v716_v47 = vld [vmem:[#allocation2 + $0x398] sm:$0xff]  ;;  %v3579_v23 = vpack.c.bf16 %v1223_v14, %v1219_v13  ;;  %v237_v44 = vld [vmem:[%s4174_s10 + $0x80] sm:$0xff]  ;;  %v4235_v14 = vld [vmem:[%s4174_s10 + $0x32] sm:$0xff] }
  0x75   : > { %v3505_v54 = vpack.c.bf16 %v716_v47, %v715_v46  ;;  %v1212_v55 = vld [vmem:[#allocation2 + $0x438] sm:$0xff]  ;;  %v2867_v13 = vld [vmem:[%s4174_s10 + $0x59] sm:$0xff] }
  0x76   : > { %3226 = vmatmul.mubr.f32.vlgmr.msra.gmra.mrb[0].mxu0 %v222_v21  ;;  %545 = vmatmul.mubr.f32.vlgmr.msra.gmra.mrb[0].mxu1 %v2856_v24  ;;  %v1216_v56 = vld [vmem:[#allocation2 + $0x4b8] sm:$0xff] }
  0x77   : > { %3228 = vmatprep.mubr.f32.mxu0 %v223_v26  ;;  %3560 = vmatpush1.bf16.msra.mxu1 %v3559_v25  ;;  %v717_v58 = vld [vmem:[#allocation2 + $0x418] sm:$0xff]  ;;  %v3573_v63 = vpack.c.bf16 %v1216_v56, %v1212_v55  ;;  %v1227_v25 = vld [vmem:[#allocation2 + $0x630] sm:$0xff]  ;;  %v923_v55 = vld [vmem:[#allocation2 + $0x128] sm:$0xff] }
  0x78   : > { %550 = vmatprep.mubr.f32.mxu1 %v3997_v0  ;;  %3496 = vmatpush3.bf16.msra.mxu0 %v3493_v15  ;;  %v718_v59 = vld [vmem:[#allocation2 + $0x498] sm:$0xff]  ;;  %v1231_v26 = vld [vmem:[#allocation2 + $0x6b0] sm:$0xff]  ;;  %v925_v56 = vld [vmem:[#allocation2 + $0x1a8] sm:$0xff] }
  0x79   : > { %3562 = vmatprep.subr.bf16.mxu1 %v3561_v27  ;;  %3498 = vmatprep.subr.bf16.mxu0 %v3497_v30  ;;  %v3509_v3 = vpack.c.bf16 %v718_v59, %v717_v58  ;;  %v1220_v4 = vld [vmem:[#allocation2 + $0x538] sm:$0xff]  ;;  %v3583_v35 = vpack.c.bf16 %v1231_v26, %v1227_v25  ;;  %v4216_v59 = vld [vmem:[%s4174_s10 + $0x12] sm:$0xff] }
  0x7a   : > { %3229 = vmatmul.mubr.f32.gmra.mrb[2].mxu0 %v224_v33  ;;  %551 = vmatmul.mubr.f32.gmra.mrb[2].mxu1 %v2857_v36  ;;  %v1224_v5 = vld [vmem:[#allocation2 + $0x5b8] sm:$0xff]  ;;  %v2862_v33 = vld [vmem:[%s4174_s10 + $0x31] sm:$0xff] }
  0x7b   : > { %3231 = vmatprep.mubr.f32.mxu0 %v225_v37  ;;  %556 = vmatprep.mubr.f32.mxu1 %v3997_v0  ;;  %v230_v6 = vld [vmem:[%s4174_s10 + $0x48] sm:$0xff]  ;;  %v3577_v12 = vpack.c.bf16 %v1224_v5, %v1220_v4  ;;  %v1235_v37 = vld [vmem:[#allocation2 + $0x730] sm:$0xff]  ;;  %v2866_v4 = vld [vmem:[%s4174_s10 + $0x51] sm:$0xff] }
  0x7c   : > { %3564 = vmatpush1.bf16.msra.mxu1 %v3563_v38  ;;  %3500 = vmatpush3.bf16.msra.mxu0 %v3497_v30  ;;  %v719_v7 = vld [vmem:[#allocation2 + $0x518] sm:$0xff]  ;;  %v1239_v38 = vld [vmem:[#allocation2 + $0x7b0] sm:$0xff]  ;;  %v934_v26 = vld [vmem:[#allocation2 + $0x420] sm:$0xff] }
  0x7d   : > { %3566 = vmatprep.subr.bf16.mxu1 %v3565_v39  ;;  %3502 = vmatprep.subr.bf16.mxu0 %v3501_v42  ;;  %v720_v8 = vld [vmem:[#allocation2 + $0x598] sm:$0xff]  ;;  %v236_v39 = vld [vmem:[%s4174_s10 + $0x78] sm:$0xff] }
  0x7e   : > { %3232 = vmatmul.mubr.f32.gmra.mrb[4].mxu0 %v226_v45  ;;  %557 = vmatmul.mubr.f32.gmra.mrb[4].mxu1 %v2858_v48  ;;  %v2860_v9 = vld [vmem:[%s4174_s10 + $0x21] sm:$0xff]  ;;  %v3513_v15 = vpack.c.bf16 %v720_v8, %v719_v7  ;;  %v2861_v21 = vld [vmem:[%s4174_s10 + $0x29] sm:$0xff]  ;;  %v3587_v45 = vpack.c.bf16 %v1239_v38, %v1235_v37  ;;  %v3533_v7 = vpack.c.bf16 %v929_v2, %v927_v1  ;;  %v943_v37 = vld [vmem:[#allocation2 + $0x628] sm:$0xff] }
  0x7f   : > { %3234 = vmatprep.mubr.f32.mxu0 %v227_v49  ;;  %562 = vmatprep.mubr.f32.mxu1 %v3997_v0  ;;  %v1228_v16 = vld [vmem:[#allocation2 + $0x638] sm:$0xff]  ;;  %v926_v8 = vld [vmem:[#allocation2 + $0x220] sm:$0xff]  ;;  %v945_v38 = vld [vmem:[#allocation2 + $0x6a8] sm:$0xff] }
  0x80   : > { %3568 = vmatpush1.bf16.msra.mxu1 %v3567_v50  ;;  %3504 = vmatpush3.bf16.msra.mxu0 %v3501_v42  ;;  %v1232_v17 = vld [vmem:[#allocation2 + $0x6b8] sm:$0xff]  ;;  %v919_v42 = vld [vmem:[#allocation2 + $0x28] sm:$0xff]  ;;  %v1681_v2 = vld [vmem:[#allocation2 + $0x50] sm:$0xff] }
  0x81   : > { %3570 = vmatprep.subr.bf16.mxu1 %v3569_v51  ;;  %3506 = vmatprep.subr.bf16.mxu0 %v3505_v54  ;;  %v721_v19 = vld [vmem:[#allocation2 + $0x618] sm:$0xff]  ;;  %v3581_v24 = vpack.c.bf16 %v1232_v17, %v1228_v16  ;;  %v3525_v49 = vpack.c.bf16 %v921_v43, %v919_v42  ;;  %v930_v17 = vld [vmem:[#allocation2 + $0x320] sm:$0xff]  ;;  %v3549_v43 = vpack.c.bf16 %v945_v38, %v943_v37 }
  0x82   : > { %3235 = vmatmul.mubr.f32.gmra.mrb[6].mxu0 %v228_v57  ;;  %563 = vmatmul.mubr.f32.gmra.mrb[6].mxu1 %v2859_v60  ;;  %v722_v20 = vld [vmem:[#allocation2 + $0x698] sm:$0xff]  ;;  %v1201_v38 = vld [vmem:[#allocation2 + $0x2c0] sm:$0xff] }
  0x83   : > { %3237 = vmatprep.mubr.f32.mxu0 %v229_v61  ;;  %568 = vmatprep.mubr.f32.mxu1 %v3997_v0  ;;  %v3517_v27 = vpack.c.bf16 %v722_v20, %v721_v19  ;;  %v1236_v28 = vld [vmem:[#allocation2 + $0x738] sm:$0xff]  ;;  %v3529_v61 = vpack.c.bf16 %v925_v56, %v923_v55  ;;  %v935_v19 = vld [vmem:[#allocation2 + $0x428] sm:$0xff] }
  0x84   : > { %3572 = vmatpush1.bf16.msra.mxu1 %v3571_v62  ;;  %3508 = vmatpush3.bf16.msra.mxu0 %v3505_v54  ;;  %v1240_v29 = vld [vmem:[#allocation2 + $0x7b8] sm:$0xff]  ;;  %v920_v54 = vld [vmem:[#allocation2 + $0xa0] sm:$0xff]  ;;  %v937_v20 = vld [vmem:[#allocation2 + $0x4a8] sm:$0xff] }
  0x85   : > { %3574 = vmatprep.subr.bf16.mxu1 %v3573_v63  ;;  %3510 = vmatprep.subr.bf16.mxu0 %v3509_v3  ;;  %v234_v30 = vld [vmem:[%s4174_s10 + $0x68] sm:$0xff]  ;;  %v3585_v36 = vpack.c.bf16 %v1240_v29, %v1236_v28  ;;  %v3527_v60 = vpack.c.bf16 %v920_v54, %v918_v53  ;;  %v922_v62 = vld [vmem:[#allocation2 + $0x120] sm:$0xff]  ;;  %v3541_v25 = vpack.c.bf16 %v937_v20, %v935_v19  ;;  %v939_v28 = vld [vmem:[#allocation2 + $0x528] sm:$0xff] }
  0x86   : > { %3238 = vmatmul.mubr.f32.gmra.mrb[8].mxu0 %v230_v6  ;;  %569 = vmatmul.mubr.f32.gmra.mrb[8].mxu1 %v2860_v9  ;;  %v723_v31 = vld [vmem:[#allocation2 + $0x718] sm:$0xff]  ;;  %v924_v63 = vld [vmem:[#allocation2 + $0x1a0] sm:$0xff]  ;;  %v941_v29 = vld [vmem:[#allocation2 + $0x5a8] sm:$0xff] }
  0x87   : > { %3240 = vmatprep.mubr.f32.mxu0 %v231_v10  ;;  %574 = vmatprep.mubr.f32.mxu1 %v3997_v0  ;;  %v724_v32 = vld [vmem:[#allocation2 + $0x798] sm:$0xff]  ;;  %v3531_v6 = vpack.c.bf16 %v924_v63, %v922_v62  ;;  %v928_v9 = vld [vmem:[#allocation2 + $0x2a0] sm:$0xff]  ;;  %v931_v10 = vld [vmem:[#allocation2 + $0x328] sm:$0xff] }
  0x88   : > { %3576 = vmatpush1.bf16.msra.mxu1 %v3575_v11  ;;  %3512 = vmatpush3.bf16.msra.mxu0 %v3509_v3  ;;  %v3521_v40 = vpack.c.bf16 %v724_v32, %v723_v31  ;;  %v1682_v46 = vld [vmem:[#allocation2 + $0x58] sm:$0xff]  ;;  %v4220_v3 = vld [vmem:[%s4174_s10 + $0x1a] sm:$0xff]  ;;  %v4255_v32 = vld [vmem:[%s4174_s10 + $0x52] sm:$0xff] }
  0x89   : > { %3578 = vmatprep.subr.bf16.mxu1 %v3577_v12  ;;  %3514 = vmatprep.subr.bf16.mxu0 %v3513_v15  ;;  %v1684_v47 = vld [vmem:[#allocation2 + $0xd8] sm:$0xff]  ;;  %v933_v11 = vld [vmem:[#allocation2 + $0x3a8] sm:$0xff]  ;;  %v946_v53 = vld [vmem:[#allocation2 + $0x720] sm:$0xff] }
  0x8a   : > { %3241 = vmatmul.mubr.f32.gmra.mrb[10].mxu0 %v232_v18  ;;  %575 = vmatmul.mubr.f32.gmra.mrb[10].mxu1 %v2861_v21  ;;  %v3621_v48 = vpack.c.bf16 %v1684_v47, %v1682_v46  ;;  %v238_v50 = vld [vmem:[%s4174_s10 + $0x88] sm:$0xff]  ;;  %v3537_v16 = vpack.c.bf16 %v933_v11, %v931_v10  ;;  %v932_v18 = vld [vmem:[#allocation2 + $0x3a0] sm:$0xff]  ;;  %v4240_v21 = vld [vmem:[%s4174_s10 + $0x3a] sm:$0xff] }
  0x8b   : > { %3243 = vmatprep.mubr.f32.mxu0 %v233_v22  ;;  %580 = vmatprep.mubr.f32.mxu1 %v3997_v0  ;;  %v2864_v51 = vld [vmem:[%s4174_s10 + $0x41] sm:$0xff]  ;;  %v2875_v57 = vld [vmem:[%s4174_s10 + $0xa] sm:$0xff]  ;;  %v947_v46 = vld [vmem:[#allocation2 + $0x728] sm:$0xff] }
  0x8c   : > { %3580 = vmatpush1.bf16.msra.mxu1 %v3579_v23  ;;  %3516 = vmatpush3.bf16.msra.mxu0 %v3513_v15  ;;  %v2874_v52 = vld [vmem:[%s4174_s10 + $0x2] sm:$0xff]  ;;  %v4230_v12 = vld [vmem:[%s4174_s10 + $0x2a] sm:$0xff]  ;;  %v3535_v15 = vpack.c.bf16 %v928_v9, %v926_v8  ;;  %v949_v47 = vld [vmem:[#allocation2 + $0x7a8] sm:$0xff] }
  0x8d   : > { %3582 = vmatprep.subr.bf16.mxu1 %v3581_v24  ;;  %3518 = vmatprep.subr.bf16.mxu0 %v3517_v27  ;;  %v2865_v58 = vld [vmem:[%s4174_s10 + $0x49] sm:$0xff]  ;;  %v2868_v22 = vld [vmem:[%s4174_s10 + $0x61] sm:$0xff]  ;;  %v3539_v24 = vpack.c.bf16 %v932_v18, %v930_v17  ;;  %v1182_v55 = vld [vmem:[#allocation2 + $0x48] sm:$0xff] }
  0x8e   : > { %3244 = vmatmul.mubr.f32.gmra.mrb[12].mxu0 %v234_v30  ;;  %581 = vmatmul.mubr.f32.gmra.mrb[12].mxu1 %v2862_v33  ;;  %v4225_v5 = vld [vmem:[%s4174_s10 + $0x22] sm:$0xff]  ;;  %v4250_v30 = vld [vmem:[%s4174_s10 + $0x4a] sm:$0xff]  ;;  %v1186_v56 = vld [vmem:[#allocation2 + $0xc8] sm:$0xff] }
  0x8f   : > { %3246 = vmatprep.mubr.f32.mxu0 %v235_v34  ;;  %586 = vmatprep.mubr.f32.mxu1 %v3997_v0  ;;  %v4245_v23 = vld [vmem:[%s4174_s10 + $0x42] sm:$0xff]  ;;  %v3545_v34 = vpack.c.bf16 %v941_v29, %v939_v28  ;;  %v948_v54 = vld [vmem:[#allocation2 + $0x7a0] sm:$0xff]  ;;  %v3589_v62 = vpack.c.bf16 %v1186_v56, %v1182_v55  ;;  %v1190_v10 = vld [vmem:[#allocation2 + $0x148] sm:$0xff] }
  0x90   : > { %3584 = vmatpush1.bf16.msra.mxu1 %v3583_v35  ;;  %3520 = vmatpush3.bf16.msra.mxu0 %v3517_v27  ;;  %v936_v27 = vld [vmem:[#allocation2 + $0x4a0] sm:$0xff]  ;;  %v1686_v8 = vld [vmem:[#allocation2 + $0x158] sm:$0xff]  ;;  %v1194_v11 = vld [vmem:[#allocation2 + $0x1c8] sm:$0xff] }
  0x91   : > { %3586 = vmatprep.subr.bf16.mxu1 %v3585_v36  ;;  %3522 = vmatprep.subr.bf16.mxu0 %v3521_v40  ;;  %v2869_v31 = vld [vmem:[%s4174_s10 + $0x69] sm:$0xff]  ;;  %v3543_v33 = vpack.c.bf16 %v936_v27, %v934_v26  ;;  %v1685_v18 = vld [vmem:[#allocation2 + $0x150] sm:$0xff]  ;;  %v1198_v27 = vld [vmem:[#allocation2 + $0x248] sm:$0xff] }
  0x92   : > { %3247 = vmatmul.mubr.f32.gmra.mrb[14].mxu0 %v236_v39  ;;  %587 = vmatmul.mubr.f32.gmra.mrb[14].mxu1 %v2863_v41  ;;  %v938_v35 = vld [vmem:[#allocation2 + $0x520] sm:$0xff]  ;;  %v4260_v39 = vld [vmem:[%s4174_s10 + $0x5a] sm:$0xff]  ;;  %v4265_v41 = vld [vmem:[%s4174_s10 + $0x62] sm:$0xff] }
  0x93   : > { %3249 = vmatprep.mubr.f32.mxu0 %v237_v44  ;;  %592 = vmatprep.mubr.f32.mxu1 %v3997_v0  ;;  %v940_v36 = vld [vmem:[#allocation2 + $0x5a0] sm:$0xff]  ;;  %v1688_v9 = vld [vmem:[#allocation2 + $0x1d8] sm:$0xff]  ;;  %v1687_v19 = vld [vmem:[#allocation2 + $0x1d0] sm:$0xff] }
  0x94   : > { %3588 = vmatpush1.bf16.msra.mxu1 %v3587_v45  ;;  %3524 = vmatpush3.bf16.msra.mxu0 %v3521_v40  ;;  %v2870_v40 = vld [vmem:[%s4174_s10 + $0x71] sm:$0xff]  ;;  %v3547_v42 = vpack.c.bf16 %v940_v36, %v938_v35  ;;  %v2873_v1 = vld [vmem:[%s4174_s10 + $0x89] sm:$0xff]  ;;  %v3625_v17 = vpack.c.bf16 %v1688_v9, %v1686_v8  ;;  %v4305_v29 = vld [vmem:[%s4174_s10 + $0x1b] sm:$0xff] }
  0x95   : > { %3622 = vmatprep.subr.bf16.mxu1 %v3621_v48  ;;  %3526 = vmatprep.subr.bf16.mxu0 %v3525_v49  ;;  %v942_v44 = vld [vmem:[#allocation2 + $0x620] sm:$0xff]  ;;  %v2871_v49 = vld [vmem:[%s4174_s10 + $0x79] sm:$0xff]  ;;  %v1692_v26 = vld [vmem:[#allocation2 + $0x2d8] sm:$0xff] }
  0x96   : > { %3250 = vmatmul.mubr.f32.gmra.mrb[16].mxu0 %v238_v50  ;;  %593 = vmatmul.mubr.f32.gmra.mrb[16].mxu1 %v2864_v51  ;;  %v944_v45 = vld [vmem:[#allocation2 + $0x6a0] sm:$0xff]  ;;  %v1202_v28 = vld [vmem:[#allocation2 + $0x2c8] sm:$0xff]  ;;  %v1691_v35 = vld [vmem:[#allocation2 + $0x2d0] sm:$0xff] }
  0x97   : > { %3284 = vmatprep.mubr.f32.mxu0 %v2874_v52  ;;  %598 = vmatprep.mubr.f32.mxu1 %v3997_v0  ;;  %v4270_v48 = vld [vmem:[%s4174_s10 + $0x6a] sm:$0xff]  ;;  %v4275_v50 = vld [vmem:[%s4174_s10 + $0x72] sm:$0xff]  ;;  %v3551_v51 = vpack.c.bf16 %v944_v45, %v942_v44  ;;  %v3553_v52 = vpack.c.bf16 %v949_v47, %v947_v46  ;;  %v3597_v37 = vpack.c.bf16 %v1202_v28, %v1198_v27 }
  0x98   : > { %v4290_v63 = vld [vmem:[%s4174_s10 + $0x8a] sm:$0xff]  ;;  %v1210_v44 = vld [vmem:[#allocation2 + $0x3c8] sm:$0xff] }
  0x99   : > { %v1189_v20 = vld [vmem:[#allocation2 + $0x140] sm:$0xff]  ;;  %v4312_v45 = vld [vmem:[%s4174_s10 + $0x23] sm:$0xff] }
  0x9a   : > { %3285 = vmatmul.mubr.f32.vlgmr.msra.gmra.mrb[18].mxu0 %v2875_v57  ;;  %599 = vmatmul.mubr.f32.gmra.mrb[18].mxu1 %v2865_v58  ;;  %v4280_v57 = vld [vmem:[%s4174_s10 + $0x7a] sm:$0xff]  ;;  %v1197_v36 = vld [vmem:[#allocation2 + $0x240] sm:$0xff]  ;;  %v1698_v55 = vld [vmem:[#allocation2 + $0x458] sm:$0xff] }
  0x9b   : > { %3287 = vmatprep.mubr.f32.mxu0 %v4216_v59  ;;  %604 = vmatprep.mubr.f32.mxu1 %v3997_v0  ;;  %v2872_v58 = vld [vmem:[%s4174_s10 + $0x81] sm:$0xff]  ;;  %v1217_v9 = vld [vmem:[#allocation2 + $0x4c0] sm:$0xff] }
  0x9c   : > { %3528 = vmatpush1.bf16.msra.mxu0 %v3527_v60  ;;  %v4285_v60 = vld [vmem:[%s4174_s10 + $0x82] sm:$0xff] }
  0x9d   : > { %3530 = vmatprep.subr.bf16.mxu0 %v3529_v61  ;;  %v3555_v61 = vpack.c.bf16 %v948_v54, %v946_v53  ;;  %v1209_v54 = vld [vmem:[#allocation2 + $0x3c0] sm:$0xff]  ;;  %v1700_v56 = vld [vmem:[#allocation2 + $0x4d8] sm:$0xff] }
  0x9e   : > { %3288 = vmatmul.mubr.f32.gmra.mrb[20].mxu0 %v4220_v3  ;;  %605 = vmatmul.mubr.f32.gmra.mrb[20].mxu1 %v2866_v4  ;;  %v1683_v4 = vld [vmem:[#allocation2 + $0xd0] sm:$0xff]  ;;  %v1706_v27 = vld [vmem:[#allocation2 + $0x658] sm:$0xff] }
  0x9f   : > { %3290 = vmatprep.mubr.f32.mxu0 %v4225_v5  ;;  %610 = vmatprep.mubr.f32.mxu1 %v3997_v0  ;;  %v1708_v28 = vld [vmem:[#allocation2 + $0x6d8] sm:$0xff] }
  0xa0   : > { %3532 = vmatpush1.bf16.msra.mxu0 %v3531_v6  ;;  %v1181_v6 = vld [vmem:[#allocation2 + $0x40] sm:$0xff] }
  0xa1   : > { %3534 = vmatprep.subr.bf16.mxu0 %v3533_v7  ;;  %v1185_v7 = vld [vmem:[#allocation2 + $0xc0] sm:$0xff] }
  0xa2   : > { %3291 = vmatmul.mubr.f32.gmra.mrb[22].mxu0 %v4230_v12  ;;  %611 = vmatmul.mubr.f32.gmra.mrb[22].mxu1 %v2867_v13  ;;  %v4298_v13 = vld [vmem:[%s4174_s10 + $0x13] sm:$0xff] }
  0xa3   : > { %3293 = vmatprep.mubr.f32.mxu0 %v4235_v14  ;;  %616 = vmatprep.mubr.f32.mxu1 %v3997_v0 }
  0xa4   : > { %3536 = vmatpush1.bf16.msra.mxu0 %v3535_v15  ;;  %v3623_v15 = vpack.c.bf16 %v1683_v4, %v1681_v2  ;;  %v3637_v2 = vpack.c.bf16 %v1700_v56, %v1698_v55  ;;  %v1697_v4 = vld [vmem:[#allocation2 + $0x450] sm:$0xff]  ;;  %v1241_v56 = vld [vmem:[#allocation2 + $0x7c0] sm:$0xff] }
  0xa5   : > { %3538 = vmatprep.subr.bf16.mxu0 %v3537_v16  ;;  %v3591_v16 = vpack.c.bf16 %v1185_v7, %v1181_v6  ;;  %v1699_v6 = vld [vmem:[#allocation2 + $0x4d0] sm:$0xff]  ;;  %v1213_v7 = vld [vmem:[#allocation2 + $0x440] sm:$0xff] }
  0xa6   : > { %3294 = vmatmul.mubr.f32.gmra.mrb[24].mxu0 %v4240_v21  ;;  %617 = vmatmul.mubr.f32.gmra.mrb[24].mxu1 %v2868_v22  ;;  %v3593_v22 = vpack.c.bf16 %v1194_v11, %v1190_v10  ;;  %v1702_v10 = vld [vmem:[#allocation2 + $0x558] sm:$0xff] }
  0xa7   : > { %3296 = vmatprep.mubr.f32.mxu0 %v4245_v23  ;;  %622 = vmatprep.mubr.f32.mxu1 %v3997_v0  ;;  %v1704_v11 = vld [vmem:[#allocation2 + $0x5d8] sm:$0xff] }
  0xa8   : > { %3540 = vmatpush1.bf16.msra.mxu0 %v3539_v24  ;;  %v1193_v24 = vld [vmem:[#allocation2 + $0x1c0] sm:$0xff] }
  0xa9   : > { %3542 = vmatprep.subr.bf16.mxu0 %v3541_v25  ;;  %v1690_v25 = vld [vmem:[#allocation2 + $0x258] sm:$0xff] }
  0xaa   : > { %3297 = vmatmul.mubr.f32.gmra.mrb[26].mxu0 %v4250_v30  ;;  %623 = vmatmul.mubr.f32.gmra.mrb[26].mxu1 %v2869_v31  ;;  %v3627_v31 = vpack.c.bf16 %v1687_v19, %v1685_v18  ;;  %v3639_v18 = vpack.c.bf16 %v1699_v6, %v1697_v4  ;;  %v3641_v19 = vpack.c.bf16 %v1704_v11, %v1702_v10  ;;  %v4414_v10 = vld [vmem:[%s4174_s10 + $0x93] sm:$0xff]  ;;  %v4421_v11 = vld [vmem:[%s4174_s10 + $0x9b] sm:$0xff] }
  0xab   : > { %3299 = vmatprep.mubr.f32.mxu0 %v4255_v32  ;;  %628 = vmatprep.mubr.f32.mxu1 %v3997_v0 }
  0xac   : > { %3544 = vmatpush1.bf16.msra.mxu0 %v3543_v33  ;;  %v3595_v33 = vpack.c.bf16 %v1193_v24, %v1189_v20  ;;  %v1701_v20 = vld [vmem:[#allocation2 + $0x550] sm:$0xff]  ;;  %v1221_v24 = vld [vmem:[#allocation2 + $0x540] sm:$0xff] }
  0xad   : > { %3546 = vmatprep.subr.bf16.mxu0 %v3545_v34  ;;  %v1689_v34 = vld [vmem:[#allocation2 + $0x250] sm:$0xff] }
  0xae   : > { %3300 = vmatmul.mubr.f32.gmra.mrb[28].mxu0 %v4260_v39  ;;  %629 = vmatmul.mubr.f32.gmra.mrb[28].mxu1 %v2870_v40  ;;  %v1694_v40 = vld [vmem:[#allocation2 + $0x358] sm:$0xff]  ;;  %v3631_v46 = vpack.c.bf16 %v1691_v35, %v1689_v34  ;;  %v3645_v35 = vpack.c.bf16 %v1708_v28, %v1706_v27  ;;  %v2160_v28 = vld [vmem:[#allocation2 + $0x270] sm:$0xff] }
  0xaf   : > { %3302 = vmatprep.mubr.f32.mxu0 %v4265_v41  ;;  %634 = vmatprep.mubr.f32.mxu1 %v3997_v0 }
  0xb0   : > { %3548 = vmatpush1.bf16.msra.mxu0 %v3547_v42  ;;  %v1696_v42 = vld [vmem:[#allocation2 + $0x3d8] sm:$0xff] }
  0xb1   : > { %3550 = vmatprep.subr.bf16.mxu0 %v3549_v43  ;;  %v1206_v43 = vld [vmem:[#allocation2 + $0x348] sm:$0xff]  ;;  %v3633_v47 = vpack.c.bf16 %v1696_v42, %v1694_v40  ;;  %v1233_v42 = vld [vmem:[#allocation2 + $0x6c0] sm:$0xff] }
  0xb2   : > { %3303 = vmatmul.mubr.f32.gmra.mrb[30].mxu0 %v4270_v48  ;;  %635 = vmatmul.mubr.f32.gmra.mrb[30].mxu1 %v2871_v49  ;;  %v1693_v49 = vld [vmem:[#allocation2 + $0x350] sm:$0xff]  ;;  %v3601_v53 = vpack.c.bf16 %v1210_v44, %v1206_v43  ;;  %v1710_v43 = vld [vmem:[#allocation2 + $0x758] sm:$0xff] }
  0xb3   : > { %3305 = vmatprep.mubr.f32.mxu0 %v4275_v50  ;;  %640 = vmatprep.mubr.f32.mxu1 %v3997_v0  ;;  %v1712_v44 = vld [vmem:[#allocation2 + $0x7d8] sm:$0xff] }
  0xb4   : > { %3552 = vmatpush1.bf16.msra.mxu0 %v3551_v51  ;;  %v1695_v51 = vld [vmem:[#allocation2 + $0x3d0] sm:$0xff] }
  0xb5   : > { %3554 = vmatprep.subr.bf16.mxu0 %v3553_v52  ;;  %v1205_v52 = vld [vmem:[#allocation2 + $0x340] sm:$0xff] }
  0xb6   : > { %3306 = vmatmul.mubr.f32.gmra.mrb[32].mxu0 %v4280_v57  ;;  %641 = vmatmul.mubr.f32.gmra.mrb[32].mxu1 %v2872_v58  ;;  %v1214_v58 = vld [vmem:[#allocation2 + $0x448] sm:$0xff] }
  0xb7   : > { %3308 = vmatprep.mubr.f32.mxu0 %v4285_v60  ;;  %646 = vmatprep.mubr.f32.mxu1 %v3997_v0 }
  0xb8   : > { %3556 = vmatpush1.bf16.msra.mxu0 %v3555_v61  ;;  %v1218_v61 = vld [vmem:[#allocation2 + $0x4c8] sm:$0xff] }
  0xb9   : > { %3590 = vmatprep.subr.bf16.mxu0 %v3589_v62  ;;  %v4319_v62 = vld [vmem:[%s4174_s10 + $0x2b] sm:$0xff]  ;;  %v3605_v8 = vpack.c.bf16 %v1218_v61, %v1214_v58  ;;  %v2152_v58 = vld [vmem:[#allocation2 + $0x70] sm:$0xff] }
  0xba   : > { %3309 = vmatmul.mubr.f32.gmra.mrb[34].mxu0 %v4290_v63  ;;  %647 = vmatmul.mubr.f32.gmra.mrb[34].mxu1 %v2873_v1  ;;  %v3635_v1 = vpack.c.bf16 %v1695_v51, %v1693_v49  ;;  %v3649_v51 = vpack.c.bf16 %v1712_v44, %v1710_v43  ;;  %v2154_v61 = vld [vmem:[#allocation2 + $0xf0] sm:$0xff]  ;;  %v1948_v43 = vld [vmem:[#allocation2 + $0x360] sm:$0xff] }
  0xbb   : > { %1014 = vmatprep.mubr.f32.mxu0 %v3997_v0  ;;  %1307 = vmatprep.mubr.f32.mxu1 %v3997_v0  ;;  %v3685_v6 = vpack.c.bf16 %v2154_v61, %v2152_v58  ;;  %v1949_v44 = vld [vmem:[#allocation2 + $0x3e0] sm:$0xff]  ;;  %v2167_v61 = vld [vmem:[#allocation2 + $0x468] sm:$0xff] }
  0xbe   : > { %1015 = vmatmul.mubr.f32.vlgmr.msra.gmra.mrb[36].mxu0 %v4216_v59  ;;  %1308 = vmatmul.mubr.f32.vlgmr.msra.gmra.mrb[36].mxu1 %v4298_v13  ;;  %v3629_v59 = vpack.c.bf16 %v1692_v26, %v1690_v25  ;;  %v1225_v26 = vld [vmem:[#allocation2 + $0x5c0] sm:$0xff] }
  0xbf   : > { %1020 = vmatprep.mubr.f32.mxu0 %v3997_v0  ;;  %3624 = vmatpush1.bf16.msra.mxu1 %v3623_v15  ;;  %v1222_v15 = vld [vmem:[#allocation2 + $0x548] sm:$0xff] }
  0xc0   : > { %1313 = vmatprep.mubr.f32.mxu1 %v3997_v0  ;;  %3592 = vmatpush1.bf16.msra.mxu0 %v3591_v16  ;;  %v1226_v16 = vld [vmem:[#allocation2 + $0x5c8] sm:$0xff] }
  0xc1   : > { %3626 = vmatprep.subr.bf16.mxu1 %v3625_v17  ;;  %3594 = vmatprep.subr.bf16.mxu0 %v3593_v22  ;;  %v4326_v17 = vld [vmem:[%s4174_s10 + $0x33] sm:$0xff]  ;;  %v1703_v22 = vld [vmem:[#allocation2 + $0x5d0] sm:$0xff]  ;;  %v3609_v25 = vpack.c.bf16 %v1226_v16, %v1222_v15 }
  0xc2   : > { %1021 = vmatmul.mubr.f32.gmra.mrb[38].mxu0 %v4220_v3  ;;  %1314 = vmatmul.mubr.f32.gmra.mrb[38].mxu1 %v4305_v29  ;;  %v3599_v3 = vpack.c.bf16 %v1201_v38, %v1197_v36  ;;  %v3643_v34 = vpack.c.bf16 %v1703_v22, %v1701_v20  ;;  %v1705_v36 = vld [vmem:[#allocation2 + $0x650] sm:$0xff]  ;;  %v1229_v38 = vld [vmem:[#allocation2 + $0x640] sm:$0xff]  ;;  %v2153_v15 = vld [vmem:[#allocation2 + $0xe8] sm:$0xff] }
  0xc3   : > { %1026 = vmatprep.mubr.f32.mxu0 %v3997_v0  ;;  %1319 = vmatprep.mubr.f32.mxu1 %v3997_v0  ;;  %v2156_v16 = vld [vmem:[#allocation2 + $0x170] sm:$0xff]  ;;  %v2928_v20 = vld [vmem:[%s4174_s10 + $0x14] sm:$0xff] }
  0xc4   : > { %3628 = vmatpush1.bf16.msra.mxu1 %v3627_v31  ;;  %3596 = vmatpush1.bf16.msra.mxu0 %v3595_v33  ;;  %v1230_v31 = vld [vmem:[#allocation2 + $0x648] sm:$0xff] }
  0xc5   : > { %3630 = vmatprep.subr.bf16.mxu1 %v3629_v59  ;;  %3598 = vmatprep.subr.bf16.mxu0 %v3597_v37  ;;  %v1234_v33 = vld [vmem:[#allocation2 + $0x6c8] sm:$0xff]  ;;  %v1707_v37 = vld [vmem:[#allocation2 + $0x6d0] sm:$0xff] }
  0xc6   : > { %1027 = vmatmul.mubr.f32.gmra.mrb[40].mxu0 %v4225_v5  ;;  %1320 = vmatmul.mubr.f32.gmra.mrb[40].mxu1 %v4312_v45  ;;  %v3603_v5 = vpack.c.bf16 %v1209_v54, %v1205_v52  ;;  %v4333_v59 = vld [vmem:[%s4174_s10 + $0x3b] sm:$0xff]  ;;  %v3613_v40 = vpack.c.bf16 %v1234_v33, %v1230_v31  ;;  %v3647_v49 = vpack.c.bf16 %v1707_v37, %v1705_v36  ;;  %v1237_v54 = vld [vmem:[#allocation2 + $0x740] sm:$0xff] }
  0xc7   : > { %1032 = vmatprep.mubr.f32.mxu0 %v3997_v0  ;;  %1325 = vmatprep.mubr.f32.mxu1 %v3997_v0  ;;  %v1709_v52 = vld [vmem:[#allocation2 + $0x750] sm:$0xff]  ;;  %v1946_v33 = vld [vmem:[#allocation2 + $0x260] sm:$0xff]  ;;  %v2159_v37 = vld [vmem:[#allocation2 + $0x268] sm:$0xff] }
  0xc8   : > { %3632 = vmatpush1.bf16.msra.mxu1 %v3631_v46  ;;  %3600 = vmatpush1.bf16.msra.mxu0 %v3599_v3  ;;  %v1238_v46 = vld [vmem:[#allocation2 + $0x748] sm:$0xff]  ;;  %v2162_v31 = vld [vmem:[#allocation2 + $0x2f0] sm:$0xff] }
  0xc9   : > { %3634 = vmatprep.subr.bf16.mxu1 %v3633_v47  ;;  %3602 = vmatprep.subr.bf16.mxu0 %v3601_v53  ;;  %v1242_v3 = vld [vmem:[#allocation2 + $0x7c8] sm:$0xff]  ;;  %v4340_v47 = vld [vmem:[%s4174_s10 + $0x43] sm:$0xff]  ;;  %v3693_v36 = vpack.c.bf16 %v2162_v31, %v2160_v28 }
  0xca   : > { %1033 = vmatmul.mubr.f32.gmra.mrb[42].mxu0 %v4230_v12  ;;  %1326 = vmatmul.mubr.f32.gmra.mrb[42].mxu1 %v4319_v62  ;;  %v3607_v12 = vpack.c.bf16 %v1217_v9, %v1213_v7  ;;  %v1711_v53 = vld [vmem:[#allocation2 + $0x7d0] sm:$0xff]  ;;  %v3617_v55 = vpack.c.bf16 %v1242_v3, %v1238_v46  ;;  %v4378_v9 = vld [vmem:[%s4174_s10 + $0x6b] sm:$0xff] }
  0xcb   : > { %1038 = vmatprep.mubr.f32.mxu0 %v3997_v0  ;;  %1331 = vmatprep.mubr.f32.mxu1 %v3997_v0  ;;  %v3651_v4 = vpack.c.bf16 %v1711_v53, %v1709_v52  ;;  %v4436_v46 = vld [vmem:[%s4174_s10 + $0x24] sm:$0xff] }
  0xcc   : > { %3636 = vmatpush1.bf16.msra.mxu1 %v3635_v1  ;;  %3604 = vmatpush1.bf16.msra.mxu0 %v3603_v5  ;;  %v1942_v1 = vld [vmem:[#allocation2 + $0x60] sm:$0xff]  ;;  %v2168_v52 = vld [vmem:[#allocation2 + $0x470] sm:$0xff] }
  0xcd   : > { %3638 = vmatprep.subr.bf16.mxu1 %v3637_v2  ;;  %3606 = vmatprep.subr.bf16.mxu0 %v3605_v8  ;;  %v1943_v5 = vld [vmem:[#allocation2 + $0xe0] sm:$0xff]  ;;  %v2170_v53 = vld [vmem:[#allocation2 + $0x4f0] sm:$0xff] }
  0xce   : > { %1039 = vmatmul.mubr.f32.gmra.mrb[44].mxu0 %v4235_v14  ;;  %1332 = vmatmul.mubr.f32.gmra.mrb[44].mxu1 %v4326_v17  ;;  %v3611_v14 = vpack.c.bf16 %v1225_v26, %v1221_v24  ;;  %v4347_v2 = vld [vmem:[%s4174_s10 + $0x4b] sm:$0xff]  ;;  %v4350_v7 = vpack.c.bf16 %v1943_v5, %v1942_v1  ;;  %v4356_v8 = vld [vmem:[%s4174_s10 + $0x53] sm:$0xff]  ;;  %v2180_v28 = vld [vmem:[#allocation2 + $0x770] sm:$0xff] }
  0xcf   : > { %1044 = vmatprep.mubr.f32.mxu0 %v3997_v0  ;;  %1337 = vmatprep.mubr.f32.mxu1 %v3997_v0  ;;  %v2157_v26 = vld [vmem:[#allocation2 + $0x1e8] sm:$0xff]  ;;  %v2182_v31 = vld [vmem:[#allocation2 + $0x7f0] sm:$0xff] }
  0xd0   : > { %3640 = vmatpush1.bf16.msra.mxu1 %v3639_v18  ;;  %3608 = vmatpush1.bf16.msra.mxu0 %v3607_v12  ;;  %v2158_v18 = vld [vmem:[#allocation2 + $0x1f0] sm:$0xff]  ;;  %v1944_v12 = vld [vmem:[#allocation2 + $0x160] sm:$0xff]  ;;  %v2169_v1 = vld [vmem:[#allocation2 + $0x4e8] sm:$0xff] }
  0xd1   : > { %3642 = vmatprep.subr.bf16.mxu1 %v3641_v19  ;;  %3610 = vmatprep.subr.bf16.mxu0 %v3609_v25  ;;  %v1945_v19 = vld [vmem:[#allocation2 + $0x1e0] sm:$0xff]  ;;  %v3689_v24 = vpack.c.bf16 %v2158_v18, %v2156_v16  ;;  %v2155_v25 = vld [vmem:[#allocation2 + $0x168] sm:$0xff]  ;;  %v2176_v18 = vld [vmem:[#allocation2 + $0x670] sm:$0xff] }
  0xd2   : > { %1045 = vmatmul.mubr.f32.gmra.mrb[46].mxu0 %v4240_v21  ;;  %1338 = vmatmul.mubr.f32.gmra.mrb[46].mxu1 %v4333_v59  ;;  %v3615_v21 = vpack.c.bf16 %v1233_v42, %v1229_v38  ;;  %v3657_v27 = vpack.c.bf16 %v1945_v19, %v1944_v12  ;;  %v2166_v42 = vld [vmem:[#allocation2 + $0x3f0] sm:$0xff]  ;;  %v1954_v19 = vld [vmem:[#allocation2 + $0x660] sm:$0xff] }
  0xd3   : > { %1050 = vmatprep.mubr.f32.mxu0 %v3997_v0  ;;  %1343 = vmatprep.mubr.f32.mxu1 %v3997_v0  ;;  %v2178_v12 = vld [vmem:[#allocation2 + $0x6f0] sm:$0xff] }
  0xd4   : > { %3644 = vmatpush1.bf16.msra.mxu1 %v3643_v34  ;;  %3612 = vmatpush1.bf16.msra.mxu0 %v3611_v14  ;;  %v1947_v34 = vld [vmem:[#allocation2 + $0x2e0] sm:$0xff]  ;;  %v2929_v14 = vld [vmem:[%s4174_s10 + $0x1c] sm:$0xff] }
  0xd5   : > { %3646 = vmatprep.subr.bf16.mxu1 %v3645_v35  ;;  %3614 = vmatprep.subr.bf16.mxu0 %v3613_v40  ;;  %v3691_v35 = vpack.c.bf16 %v2157_v26, %v2155_v25  ;;  %v3661_v38 = vpack.c.bf16 %v1947_v34, %v1946_v33  ;;  %v2164_v40 = vld [vmem:[#allocation2 + $0x370] sm:$0xff]  ;;  %v2175_v25 = vld [vmem:[#allocation2 + $0x668] sm:$0xff]  ;;  %v1956_v33 = vld [vmem:[#allocation2 + $0x760] sm:$0xff] }
  0xd6   : > { %1051 = vmatmul.mubr.f32.gmra.mrb[48].mxu0 %v4245_v23  ;;  %1344 = vmatmul.mubr.f32.gmra.mrb[48].mxu1 %v4340_v47  ;;  %v3619_v23 = vpack.c.bf16 %v1241_v56, %v1237_v54  ;;  %v1950_v54 = vld [vmem:[#allocation2 + $0x460] sm:$0xff]  ;;  %v2177_v26 = vld [vmem:[#allocation2 + $0x6e8] sm:$0xff] }
  0xd7   : > { %1056 = vmatprep.mubr.f32.mxu0 %v3997_v0  ;;  %1349 = vmatprep.mubr.f32.mxu1 %v3997_v0  ;;  %v4443_v56 = vld [vmem:[%s4174_s10 + $0x2c] sm:$0xff] }
  0xd8   : > { %3648 = vmatpush1.bf16.msra.mxu1 %v3647_v49  ;;  %3616 = vmatpush1.bf16.msra.mxu0 %v3615_v21  ;;  %v3697_v49 = vpack.c.bf16 %v2166_v42, %v2164_v40  ;;  %v2165_v21 = vld [vmem:[#allocation2 + $0x3e8] sm:$0xff]  ;;  %v1957_v34 = vld [vmem:[#allocation2 + $0x7e0] sm:$0xff]  ;;  %v2413_v40 = vld [vmem:[#allocation2 + $0xf8] sm:$0xff] }
  0xd9   : > { %3650 = vmatprep.subr.bf16.mxu1 %v3649_v51  ;;  %3618 = vmatprep.subr.bf16.mxu0 %v3617_v55  ;;  %v3665_v51 = vpack.c.bf16 %v1949_v44, %v1948_v43  ;;  %v1951_v55 = vld [vmem:[#allocation2 + $0x4e0] sm:$0xff] }
  0xda   : > { %1057 = vmatmul.mubr.f32.gmra.mrb[50].mxu0 %v4250_v30  ;;  %1350 = vmatmul.mubr.f32.gmra.mrb[50].mxu1 %v4347_v2  ;;  %v4364_v30 = vld [vmem:[%s4174_s10 + $0x5b] sm:$0xff]  ;;  %v3669_v5 = vpack.c.bf16 %v1951_v55, %v1950_v54  ;;  %v4471_v42 = vld [vmem:[%s4174_s10 + $0x4c] sm:$0xff] }
  0xdb   : > { %1062 = vmatprep.mubr.f32.mxu0 %v3997_v0  ;;  %1355 = vmatprep.mubr.f32.mxu1 %v3997_v0  ;;  %v4480_v44 = vld [vmem:[%s4174_s10 + $0x54] sm:$0xff]  ;;  %v2964_v55 = vld [vmem:[%s4174_s10 + $0x25] sm:$0xff] }
  0xdc   : > { %3652 = vmatpush1.bf16.msra.mxu1 %v3651_v4  ;;  %3620 = vmatpush1.bf16.msra.mxu0 %v3619_v23  ;;  %v2172_v4 = vld [vmem:[#allocation2 + $0x570] sm:$0xff] }
  0xdd   : > { %3686 = vmatprep.subr.bf16.mxu1 %v3685_v6  ;;  %3654 = vmatprep.subr.bf16.mxu0 %v4350_v7  ;;  %v2174_v23 = vld [vmem:[#allocation2 + $0x5f0] sm:$0xff]  ;;  %v1952_v6 = vld [vmem:[#allocation2 + $0x560] sm:$0xff] }
  0xde   : > { %1063 = vmatmul.mubr.f32.gmra.mrb[52].mxu0 %v4255_v32  ;;  %1356 = vmatmul.mubr.f32.gmra.mrb[52].mxu1 %v4356_v8  ;;  %v4371_v32 = vld [vmem:[%s4174_s10 + $0x63] sm:$0xff] }
  0xdf   : > { %1068 = vmatprep.mubr.f32.mxu0 %v3997_v0  ;;  %1361 = vmatprep.mubr.f32.mxu1 %v3997_v0 }
  0xe2   : > { %1069 = vmatmul.mubr.f32.gmra.mrb[54].mxu0 %v4260_v39  ;;  %1362 = vmatmul.mubr.f32.gmra.mrb[54].mxu1 %v4364_v30  ;;  %v4385_v39 = vld [vmem:[%s4174_s10 + $0x73] sm:$0xff] }
  0xe3   : > { %1074 = vmatprep.mubr.f32.mxu0 %v3997_v0  ;;  %1367 = vmatprep.mubr.f32.mxu1 %v3997_v0 }
  0xe6   : > { %1075 = vmatmul.mubr.f32.gmra.mrb[56].mxu0 %v4265_v41  ;;  %1368 = vmatmul.mubr.f32.gmra.mrb[56].mxu1 %v4371_v32  ;;  %v4392_v41 = vld [vmem:[%s4174_s10 + $0x7b] sm:$0xff] }
  0xe7   : > { %1080 = vmatprep.mubr.f32.mxu0 %v3997_v0  ;;  %1373 = vmatprep.mubr.f32.mxu1 %v3997_v0 }
  0xea   : > { %1081 = vmatmul.mubr.f32.gmra.mrb[58].mxu0 %v4270_v48  ;;  %1374 = vmatmul.mubr.f32.gmra.mrb[58].mxu1 %v4378_v9  ;;  %v4399_v48 = vld [vmem:[%s4174_s10 + $0x83] sm:$0xff] }
  0xeb   : > { %1086 = vmatprep.mubr.f32.mxu0 %v3997_v0  ;;  %1379 = vmatprep.mubr.f32.mxu1 %v3997_v0 }
  0xee   : > { %1087 = vmatmul.mubr.f32.gmra.mrb[60].mxu0 %v4275_v50  ;;  %1380 = vmatmul.mubr.f32.gmra.mrb[60].mxu1 %v4385_v39  ;;  %v4406_v50 = vld [vmem:[%s4174_s10 + $0x8b] sm:$0xff] }
  0xef   : > { %1092 = vmatprep.mubr.f32.mxu0 %v3997_v0  ;;  %1385 = vmatprep.mubr.f32.mxu1 %v3997_v0 }
  0xf2   : > { %1093 = vmatmul.mubr.f32.gmra.mrb[62].mxu0 %v4280_v57  ;;  %1386 = vmatmul.mubr.f32.gmra.mrb[62].mxu1 %v4392_v41  ;;  %v2908_v57 = vld [vmem:[%s4174_s10 + $0x92] sm:$0xff] }
  0xf3   : > { %1098 = vmatprep.mubr.f32.mxu0 %v3997_v0  ;;  %1391 = vmatprep.mubr.f32.mxu1 %v3997_v0 }
  0xf6   : > { %1099 = vmatmul.mubr.f32.gmra.mrb[64].mxu0 %v4285_v60  ;;  %1392 = vmatmul.mubr.f32.gmra.mrb[64].mxu1 %v4399_v48  ;;  %v2909_v60 = vld [vmem:[%s4174_s10 + $0x9a] sm:$0xff] }
  0xf7   : > { %1104 = vmatprep.mubr.f32.mxu0 %v3997_v0  ;;  %1397 = vmatprep.mubr.f32.mxu1 %v3997_v0 }
  0xfa   : > { %1105 = vmatmul.mubr.f32.gmra.mrb[66].mxu0 %v4290_v63  ;;  %1398 = vmatmul.mubr.f32.gmra.mrb[66].mxu1 %v4406_v50  ;;  %v2151_v63 = vld [vmem:[#allocation2 + $0x68] sm:$0xff] }
  0xfb   : > { %1110 = vmatprep.mubr.f32.mxu0 %v3997_v0  ;;  %1403 = vmatprep.mubr.f32.mxu1 %v3997_v0  ;;  %v3687_v22 = vpack.c.bf16 %v2153_v15, %v2151_v63  ;;  %v2171_v63 = vld [vmem:[#allocation2 + $0x568] sm:$0xff] }
  0xfc   : > { %v2173_v15 = vld [vmem:[#allocation2 + $0x5e8] sm:$0xff] }
  0xfe   : > { %1111 = vmatmul.mubr.f32.gmra.mrb[68].mxu0 %v2908_v57  ;;  %1404 = vmatmul.mubr.f32.gmra.mrb[68].mxu1 %v4414_v10  ;;  %v4450_v57 = vld [vmem:[%s4174_s10 + $0x34] sm:$0xff] }
  0xff   : > { %1116 = vmatprep.mubr.f32.mxu0 %v3997_v0  ;;  %1409 = vmatprep.mubr.f32.mxu1 %v3997_v0 }
 0x102   : > { %1117 = vmatmul.mubr.f32.gmra.mrb[70].mxu0 %v2909_v60  ;;  %1410 = vmatmul.mubr.f32.gmra.mrb[70].mxu1 %v4421_v11  ;;  %v3703_v60 = vpack.c.bf16 %v2169_v1, %v2167_v61 }
 0x103   : > { %1480 = vmatprep.mubr.f32.mxu0 %v3997_v0  ;;  %1777 = vmatprep.mubr.f32.mxu1 %v3997_v0 }
 0x106   : > { %1481 = vmatmul.mubr.f32.vlgmr.msra.gmra.mrb[72].mxu0 %v4298_v13  ;;  %1778 = vmatmul.mubr.f32.vlgmr.msra.gmra.mrb[72].mxu1 %v2928_v20  ;;  %v2161_v13 = vld [vmem:[#allocation2 + $0x2e8] sm:$0xff]  ;;  %v1955_v20 = vld [vmem:[#allocation2 + $0x6e0] sm:$0xff] }
 0x107   : > { %1486 = vmatprep.mubr.f32.mxu0 %v3997_v0  ;;  %3688 = vmatpush1.bf16.msra.mxu1 %v3687_v22  ;;  %v3695_v3 = vpack.c.bf16 %v2161_v13, %v2159_v37  ;;  %v4457_v22 = vld [vmem:[%s4174_s10 + $0x3c] sm:$0xff]  ;;  %v3681_v13 = vpack.c.bf16 %v1957_v34, %v1956_v33 }
 0x108   : > { %1783 = vmatprep.mubr.f32.mxu1 %v3997_v0  ;;  %3656 = vmatpush3.bf16.msra.mxu0 %v4350_v7  ;;  %v1953_v7 = vld [vmem:[#allocation2 + $0x5e0] sm:$0xff]  ;;  %v2181_v37 = vld [vmem:[#allocation2 + $0x7e8] sm:$0xff] }
 0x109   : > { %3690 = vmatprep.subr.bf16.mxu1 %v3689_v24  ;;  %3658 = vmatprep.subr.bf16.mxu0 %v3657_v27  ;;  %v3673_v16 = vpack.c.bf16 %v1953_v7, %v1952_v6  ;;  %v3707_v24 = vpack.c.bf16 %v2173_v15, %v2171_v63  ;;  %v2965_v7 = vld [vmem:[%s4174_s10 + $0x2d] sm:$0xff] }
 0x10a   : > { %1487 = vmatmul.mubr.f32.gmra.mrb[74].mxu0 %v4305_v29  ;;  %1784 = vmatmul.mubr.f32.gmra.mrb[74].mxu1 %v2929_v14  ;;  %v2163_v29 = vld [vmem:[#allocation2 + $0x368] sm:$0xff]  ;;  %v4464_v14 = vld [vmem:[%s4174_s10 + $0x44] sm:$0xff] }
 0x10b   : > { %1492 = vmatprep.mubr.f32.mxu0 %v3997_v0  ;;  %1789 = vmatprep.mubr.f32.mxu1 %v3997_v0  ;;  %v3699_v58 = vpack.c.bf16 %v2165_v21, %v2163_v29  ;;  %v2418_v15 = vld [vmem:[#allocation2 + $0x378] sm:$0xff] }
 0x10c   : > { %3692 = vmatpush1.bf16.msra.mxu1 %v3691_v35  ;;  %3660 = vmatpush3.bf16.msra.mxu0 %v3657_v27  ;;  %v3677_v27 = vpack.c.bf16 %v1955_v20, %v1954_v19  ;;  %v3711_v35 = vpack.c.bf16 %v2177_v26, %v2175_v25  ;;  %v2420_v25 = vld [vmem:[#allocation2 + $0x478] sm:$0xff] }
 0x10d   : > { %3694 = vmatprep.subr.bf16.mxu1 %v3693_v36  ;;  %3662 = vmatprep.subr.bf16.mxu0 %v3661_v38  ;;  %v2179_v36 = vld [vmem:[#allocation2 + $0x768] sm:$0xff]  ;;  %v2421_v26 = vld [vmem:[#allocation2 + $0x4f8] sm:$0xff] }
 0x10e   : > { %1493 = vmatmul.mubr.f32.gmra.mrb[76].mxu0 %v4312_v45  ;;  %1790 = vmatmul.mubr.f32.gmra.mrb[76].mxu1 %v4436_v46  ;;  %v3701_v45 = vpack.c.bf16 %v2170_v53, %v2168_v52  ;;  %v3715_v43 = vpack.c.bf16 %v2181_v37, %v2179_v36  ;;  %v2415_v52 = vld [vmem:[#allocation2 + $0x1f8] sm:$0xff] }
 0x10f   : > { %1498 = vmatprep.mubr.f32.mxu0 %v3997_v0  ;;  %1795 = vmatprep.mubr.f32.mxu1 %v3997_v0  ;;  %v2422_v36 = vld [vmem:[#allocation2 + $0x578] sm:$0xff] }
 0x110   : > { %3696 = vmatpush1.bf16.msra.mxu1 %v3695_v3  ;;  %3664 = vmatpush3.bf16.msra.mxu0 %v3661_v38  ;;  %v2412_v38 = vld [vmem:[#allocation2 + $0x78] sm:$0xff] }
 0x111   : > { %3698 = vmatprep.subr.bf16.mxu1 %v3697_v49  ;;  %3666 = vmatprep.subr.bf16.mxu0 %v3665_v51  ;;  %v4502_v3 = vld [vmem:[%s4174_s10 + $0x6c] sm:$0xff] }
 0x112   : > { %1499 = vmatmul.mubr.f32.gmra.mrb[78].mxu0 %v4319_v62  ;;  %1796 = vmatmul.mubr.f32.gmra.mrb[78].mxu1 %v4443_v56  ;;  %v3705_v62 = vpack.c.bf16 %v2174_v23, %v2172_v4  ;;  %v2417_v4 = vld [vmem:[#allocation2 + $0x2f8] sm:$0xff] }
 0x113   : > { %1504 = vmatprep.mubr.f32.mxu0 %v3997_v0  ;;  %1801 = vmatprep.mubr.f32.mxu1 %v3997_v0  ;;  %v2423_v37 = vld [vmem:[#allocation2 + $0x5f8] sm:$0xff] }
 0x114   : > { %3700 = vmatpush1.bf16.msra.mxu1 %v3699_v58  ;;  %3668 = vmatpush3.bf16.msra.mxu0 %v3665_v51  ;;  %v2414_v51 = vld [vmem:[#allocation2 + $0x178] sm:$0xff] }
 0x115   : > { %3702 = vmatprep.subr.bf16.mxu1 %v3701_v45  ;;  %3670 = vmatprep.subr.bf16.mxu0 %v3669_v5  ;;  %v3721_v45 = vpack.c.bf16 %v2415_v52, %v2414_v51  ;;  %v2969_v51 = vld [vmem:[%s4174_s10 + $0x4d] sm:$0xff] }
 0x116   : > { %1505 = vmatmul.mubr.f32.gmra.mrb[80].mxu0 %v4326_v17  ;;  %1802 = vmatmul.mubr.f32.gmra.mrb[80].mxu1 %v4450_v57  ;;  %v3709_v17 = vpack.c.bf16 %v2178_v12, %v2176_v18 }
 0x117   : > { %1510 = vmatprep.mubr.f32.mxu0 %v3997_v0  ;;  %1807 = vmatprep.mubr.f32.mxu1 %v3997_v0 }
 0x118   : > { %3704 = vmatpush1.bf16.msra.mxu1 %v3703_v60  ;;  %3672 = vmatpush3.bf16.msra.mxu0 %v3669_v5  ;;  %v2416_v5 = vld [vmem:[#allocation2 + $0x278] sm:$0xff] }
 0x119   : > { %3706 = vmatprep.subr.bf16.mxu1 %v3705_v62  ;;  %3674 = vmatprep.subr.bf16.mxu0 %v3673_v16 }
 0x11a   : > { %1511 = vmatmul.mubr.f32.gmra.mrb[82].mxu0 %v4333_v59  ;;  %1808 = vmatmul.mubr.f32.gmra.mrb[82].mxu1 %v4457_v22  ;;  %v3713_v59 = vpack.c.bf16 %v2182_v31, %v2180_v28  ;;  %v2967_v31 = vld [vmem:[%s4174_s10 + $0x3d] sm:$0xff] }
 0x11b   : > { %1516 = vmatprep.mubr.f32.mxu0 %v3997_v0  ;;  %1813 = vmatprep.mubr.f32.mxu1 %v3997_v0 }
 0x11c   : > { %3708 = vmatpush1.bf16.msra.mxu1 %v3707_v24  ;;  %3676 = vmatpush3.bf16.msra.mxu0 %v3673_v16  ;;  %v2419_v16 = vld [vmem:[#allocation2 + $0x3f8] sm:$0xff] }
 0x11d   : > { %3710 = vmatprep.subr.bf16.mxu1 %v3709_v17  ;;  %3678 = vmatprep.subr.bf16.mxu0 %v3677_v27 }
 0x11e   : > { %1517 = vmatmul.mubr.f32.gmra.mrb[84].mxu0 %v4340_v47  ;;  %1814 = vmatmul.mubr.f32.gmra.mrb[84].mxu1 %v4464_v14  ;;  %v4474_v47 = vpack.c.bf16 %v2413_v40, %v2412_v38  ;;  %v2968_v40 = vld [vmem:[%s4174_s10 + $0x45] sm:$0xff] }
 0x11f   : > { %1522 = vmatprep.mubr.f32.mxu0 %v3997_v0  ;;  %1819 = vmatprep.mubr.f32.mxu1 %v3997_v0 }
 0x120   : > { %3712 = vmatpush1.bf16.msra.mxu1 %v3711_v35  ;;  %3680 = vmatpush3.bf16.msra.mxu0 %v3677_v27 }
 0x121   : > { %3714 = vmatprep.subr.bf16.mxu1 %v3713_v59  ;;  %3682 = vmatprep.subr.bf16.mxu0 %v3681_v13 }
 0x122   : > { %1523 = vmatmul.mubr.f32.gmra.mrb[86].mxu0 %v4347_v2  ;;  %1820 = vmatmul.mubr.f32.gmra.mrb[86].mxu1 %v4471_v42  ;;  %v4488_v2 = vld [vmem:[%s4174_s10 + $0x5c] sm:$0xff] }
 0x123   : > { %1528 = vmatprep.mubr.f32.mxu0 %v3997_v0  ;;  %1825 = vmatprep.mubr.f32.mxu1 %v3997_v0 }
 0x124   : > { %3716 = vmatpush1.bf16.msra.mxu1 %v3715_v43  ;;  %3684 = vmatpush3.bf16.msra.mxu0 %v3681_v13 }
 0x125   : > { %3718 = vmatprep.subr.bf16.mxu0 %v4474_v47 }
 0x126   : > { %1529 = vmatmul.mubr.f32.gmra.mrb[88].mxu0 %v4356_v8  ;;  %1826 = vmatmul.mubr.f32.gmra.mrb[88].mxu1 %v4480_v44  ;;  %v4495_v8 = vld [vmem:[%s4174_s10 + $0x64] sm:$0xff] }
 0x127   : > { %1534 = vmatprep.mubr.f32.mxu0 %v3997_v0  ;;  %1831 = vmatprep.mubr.f32.mxu1 %v3997_v0 }
 0x12a   : > { %1535 = vmatmul.mubr.f32.gmra.mrb[90].mxu0 %v4364_v30  ;;  %1832 = vmatmul.mubr.f32.gmra.mrb[90].mxu1 %v4488_v2  ;;  %v4509_v30 = vld [vmem:[%s4174_s10 + $0x74] sm:$0xff] }
 0x12b   : > { %1540 = vmatprep.mubr.f32.mxu0 %v3997_v0  ;;  %1837 = vmatprep.mubr.f32.mxu1 %v3997_v0 }
 0x12e   : > { %1541 = vmatmul.mubr.f32.gmra.mrb[92].mxu0 %v4371_v32  ;;  %1838 = vmatmul.mubr.f32.gmra.mrb[92].mxu1 %v4495_v8  ;;  %v4516_v32 = vld [vmem:[%s4174_s10 + $0x7c] sm:$0xff] }
 0x12f   : > { %1546 = vmatprep.mubr.f32.mxu0 %v3997_v0  ;;  %1843 = vmatprep.mubr.f32.mxu1 %v3997_v0 }
 0x132   : > { %1547 = vmatmul.mubr.f32.gmra.mrb[94].mxu0 %v4378_v9  ;;  %1844 = vmatmul.mubr.f32.gmra.mrb[94].mxu1 %v4502_v3  ;;  %v4523_v9 = vld [vmem:[%s4174_s10 + $0x84] sm:$0xff] }
 0x133   : > { %1552 = vmatprep.mubr.f32.mxu0 %v3997_v0  ;;  %1849 = vmatprep.mubr.f32.mxu1 %v3997_v0 }
 0x136   : > { %1553 = vmatmul.mubr.f32.gmra.mrb[96].mxu0 %v4385_v39  ;;  %1850 = vmatmul.mubr.f32.gmra.mrb[96].mxu1 %v4509_v30  ;;  %v4530_v39 = vld [vmem:[%s4174_s10 + $0x8c] sm:$0xff] }
 0x137   : > { %1558 = vmatprep.mubr.f32.mxu0 %v3997_v0  ;;  %1855 = vmatprep.mubr.f32.mxu1 %v3997_v0 }
 0x13a   : > { %1559 = vmatmul.mubr.f32.gmra.mrb[98].mxu0 %v4392_v41  ;;  %1856 = vmatmul.mubr.f32.gmra.mrb[98].mxu1 %v4516_v32  ;;  %v4537_v41 = vld [vmem:[%s4174_s10 + $0x94] sm:$0xff] }
 0x13b   : > { %1564 = vmatprep.mubr.f32.mxu0 %v3997_v0  ;;  %1861 = vmatprep.mubr.f32.mxu1 %v3997_v0 }
 0x13e   : > { %1565 = vmatmul.mubr.f32.gmra.mrb[100].mxu0 %v4399_v48  ;;  %1862 = vmatmul.mubr.f32.gmra.mrb[100].mxu1 %v4523_v9  ;;  %v4542_v48 = vld [vmem:[#allocation5] ss:$0 sm:$0xff] }
 0x13f   : > { %1570 = vmatprep.mubr.f32.mxu0 %v3997_v0  ;;  %1867 = vmatprep.mubr.f32.mxu1 %v3997_v0 }
 0x142   : > { %1571 = vmatmul.mubr.f32.gmra.mrb[102].mxu0 %v4406_v50  ;;  %1868 = vmatmul.mubr.f32.gmra.mrb[102].mxu1 %v4530_v39  ;;  %v4546_v50 = vld [vmem:[%s4174_s10 + $0x9c] sm:$0xff] }
 0x143   : > { %1576 = vmatprep.mubr.f32.mxu0 %v3997_v0  ;;  %1873 = vmatprep.mubr.f32.mxu1 %v3997_v0 }
 0x146   : > { %1577 = vmatmul.mubr.f32.gmra.mrb[104].mxu0 %v4414_v10  ;;  %1874 = vmatmul.mubr.f32.gmra.mrb[104].mxu1 %v4537_v41 }
 0x147   : > { %1582 = vmatprep.mubr.f32.mxu0 %v3997_v0  ;;  %1879 = vmatprep.mubr.f32.mxu1 %v3997_v0 }
 0x149   : > { %v3227_v49 = vpop.f32.mrb[0].mxu0  ;;  %v546_v29 = vpop.f32.mrb[0].mxu1 }
 0x14a   : > { %v321_v21 = vpop.f32.mrb[1].mxu0  ;;  %1583 = vmatmul.mubr.f32.gmra.mrb[106].mxu0 %v4421_v11  ;;  %v411_v10 = vadd.f32 %v3227_v49, %v4542_v48  ;;  %v4551_v54 = vpop.f32.mrb[1].mxu1  ;;  %1880 = vmatmul.mubr.f32.gmra.mrb[106].mxu1 %v4546_v50  ;;  %v2424_v49 = vld [vmem:[#allocation2 + $0x678] sm:$0xff] }
 0x14b   : > { %v410_v53 = vadd.f32 %v4542_v48, %v321_v21  ;;  %3343 = vmatprep.mubr.f32.mxu0 %v4436_v46  ;;  %2247 = vmatprep.mubr.f32.mxu1 %v3997_v0 }
 0x14d   : > { %v3230_v58 = vpop.f32.mrb[2].mxu0  ;;  %v4557_v61 = vadd.f32 %v546_v29, %v410_v53  ;;  %v552_v11 = vpop.f32.mrb[2].mxu1  ;;  %v2425_v29 = vld [vmem:[#allocation2 + $0x6f8] sm:$0xff] }
 0x14e   : > { %3344 = vmatmul.mubr.f32.vlgmr.msra.gmra.mrb[108].mxu0 %v4443_v56  ;;  %v331_v1 = vpop.f32.mrb[3].mxu0  ;;  %v4560_v23 = vadd.f32 %v552_v11, %v411_v10  ;;  %v4562_v6 = vpop.f32.mrb[3].mxu1  ;;  %2248 = vmatmul.mubr.f32.vlgmr.msra.gmra.mrb[108].mxu1 %v2964_v55  ;;  %v3725_v56 = vpack.c.bf16 %v2417_v4, %v2416_v5  ;;  %v413_v19 = vadd.f32 %v3230_v58, %v4542_v48  ;;  %v2426_v58 = vld [vmem:[#allocation2 + $0x778] sm:$0xff] }
 0x14f   : > { %v412_v46 = vadd.f32 %v4542_v48, %v331_v1  ;;  %3346 = vmatprep.mubr.f32.mxu0 %v4450_v57  ;;  %2253 = vmatprep.mubr.f32.mxu1 %v3997_v0  ;;  %v2966_v57 = vld [vmem:[%s4174_s10 + $0x35] sm:$0xff] }
 0x150   : > { %3720 = vmatpush3.bf16.msra.mxu0 %v4474_v47  ;;  %v3737_v47 = vpack.c.bf16 %v2423_v37, %v2422_v36  ;;  %v2970_v1 = vld [vmem:[%s4174_s10 + $0x55] sm:$0xff] }
 0x151   : > { %v3233_v60 = vpop.f32.mrb[4].mxu0  ;;  %3722 = vmatprep.subr.bf16.mxu0 %v3721_v45  ;;  %v558_v62 = vpop.f32.mrb[4].mxu1  ;;  %v2984_v36 = vld [vmem:[%s4174_s10 + $0x36] sm:$0xff] }
 0x152   : > { %3347 = vmatmul.mubr.f32.gmra.mrb[110].mxu0 %v4457_v22  ;;  %v341_v63 = vpop.f32.mrb[5].mxu0  ;;  %v4570_v18 = vadd.f32 %v558_v62, %v412_v46  ;;  %v4572_v12 = vpop.f32.mrb[5].mxu1  ;;  %2254 = vmatmul.mubr.f32.gmra.mrb[110].mxu1 %v2965_v7  ;;  %v3729_v22 = vpack.c.bf16 %v2419_v16, %v2418_v15  ;;  %v2962_v62 = vld [vmem:[%s4174_s10 + $0xa4] sm:$0xff] }
 0x153   : > { %3349 = vmatprep.mubr.f32.mxu0 %v4464_v14  ;;  %2259 = vmatprep.mubr.f32.mxu1 %v3997_v0  ;;  %v414_v33 = vadd.f32 %v4542_v48, %v341_v63  ;;  %v3733_v14 = vpack.c.bf16 %v2421_v26, %v2420_v25  ;;  %v673_v37 = vadd.f32 %v4542_v48, %v4572_v12 }
 0x154   : > { %3724 = vmatpush3.bf16.msra.mxu0 %v3721_v45  ;;  %v2427_v45 = vld [vmem:[#allocation2 + $0x7f8] sm:$0xff] }
 0x155   : > { %v4578_v20 = vpop.f32.mrb[6].mxu0  ;;  %3726 = vmatprep.subr.bf16.mxu0 %v3725_v56  ;;  %v564_v24 = vpop.f32.mrb[6].mxu1  ;;  %v3745_v4 = vpack.c.bf16 %v2427_v45, %v2426_v58 }
 0x156   : > { %3350 = vmatmul.mubr.f32.gmra.mrb[112].mxu0 %v4471_v42  ;;  %v351_v17 = vpop.f32.mrb[7].mxu0  ;;  %v4581_v27 = vadd.f32 %v564_v24, %v413_v19  ;;  %v4583_v28 = vpop.f32.mrb[7].mxu1  ;;  %2260 = vmatmul.mubr.f32.gmra.mrb[112].mxu1 %v2966_v57  ;;  %v415_v42 = vadd.f32 %v3233_v60, %v4542_v48  ;;  %v2963_v19 = vld [vmem:[%s4174_s10 + $0xac] sm:$0xff] }
 0x157   : > { %3352 = vmatprep.mubr.f32.mxu0 %v4480_v44  ;;  %2265 = vmatprep.mubr.f32.mxu1 %v3997_v0  ;;  %v416_v52 = vadd.f32 %v4542_v48, %v351_v17  ;;  %v2982_v24 = vld [vmem:[%s4174_s10 + $0x26] sm:$0xff] }
 0x158   : > { %3728 = vmatpush3.bf16.msra.mxu0 %v3725_v56  ;;  %v2971_v56 = vld [vmem:[%s4174_s10 + $0x5d] sm:$0xff] }
 0x159   : > { %v4589_v34 = vpop.f32.mrb[8].mxu0  ;;  %3730 = vmatprep.subr.bf16.mxu0 %v3729_v22  ;;  %v570_v35 = vpop.f32.mrb[8].mxu1 }
 0x15a   : > { %3353 = vmatmul.mubr.f32.gmra.mrb[114].mxu0 %v4488_v2  ;;  %v361_v59 = vpop.f32.mrb[9].mxu0  ;;  %v4592_v13 = vadd.f32 %v570_v35, %v414_v33  ;;  %v4594_v38 = vpop.f32.mrb[9].mxu1  ;;  %2266 = vmatmul.mubr.f32.gmra.mrb[114].mxu1 %v2967_v31  ;;  %v419_v17 = vadd.f32 %v4589_v34, %v4542_v48  ;;  %v2973_v34 = vld [vmem:[%s4174_s10 + $0x6d] sm:$0xff] }
 0x15b   : > { %3355 = vmatprep.mubr.f32.mxu0 %v4495_v8  ;;  %2271 = vmatprep.mubr.f32.mxu1 %v3997_v0  ;;  %v418_v63 = vadd.f32 %v4542_v48, %v361_v59  ;;  %v2983_v59 = vld [vmem:[%s4174_s10 + $0x2e] sm:$0xff] }
 0x15c   : > { %3732 = vmatpush3.bf16.msra.mxu0 %v3729_v22  ;;  %v2972_v22 = vld [vmem:[%s4174_s10 + $0x65] sm:$0xff] }
 0x15d   : > { %v4600_v43 = vpop.f32.mrb[10].mxu0  ;;  %3734 = vmatprep.subr.bf16.mxu0 %v3733_v14  ;;  %v576_v44 = vpop.f32.mrb[10].mxu1 }
 0x15e   : > { %3356 = vmatmul.mubr.f32.gmra.mrb[116].mxu0 %v4502_v3  ;;  %v4603_v2 = vpop.f32.mrb[11].mxu0  ;;  %v4605_v21 = vadd.f32 %v576_v44, %v415_v42  ;;  %v4607_v8 = vpop.f32.mrb[11].mxu1  ;;  %2272 = vmatmul.mubr.f32.gmra.mrb[116].mxu1 %v2968_v40  ;;  %v3741_v3 = vpack.c.bf16 %v2425_v29, %v2424_v49  ;;  %v421_v58 = vadd.f32 %v4600_v43, %v4542_v48  ;;  %v2975_v43 = vld [vmem:[%s4174_s10 + $0x7d] sm:$0xff] }
 0x15f   : > { %3358 = vmatprep.mubr.f32.mxu0 %v4509_v30  ;;  %2277 = vmatprep.mubr.f32.mxu1 %v3997_v0  ;;  %v420_v40 = vadd.f32 %v4542_v48, %v4603_v2  ;;  %v676_v12 = vadd.f32 %v4542_v48, %v4607_v8  ;;  %v2974_v2 = vld [vmem:[%s4174_s10 + $0x75] sm:$0xff] }
 0x160   : > { %3736 = vmatpush3.bf16.msra.mxu0 %v3733_v14 }
 0x161   : > { %v4613_v10 = vpop.f32.mrb[12].mxu0  ;;  %3738 = vmatprep.subr.bf16.mxu0 %v3737_v47  ;;  %v582_v53 = vpop.f32.mrb[12].mxu1 }
 0x162   : > { %3359 = vmatmul.mubr.f32.gmra.mrb[118].mxu0 %v4516_v32  ;;  %v4616_v55 = vpop.f32.mrb[13].mxu0  ;;  %v4618_v11 = vadd.f32 %v582_v53, %v416_v52  ;;  %v4620_v30 = vpop.f32.mrb[13].mxu1  ;;  %2278 = vmatmul.mubr.f32.gmra.mrb[118].mxu1 %v2969_v51  ;;  %v417_v32 = vadd.f32 %v4578_v20, %v4542_v48  ;;  %v672_v20 = vadd.f32 %v4542_v48, %v4562_v6  ;;  %v2985_v52 = vld [vmem:[%s4174_s10 + $0x3e] sm:$0xff] }
 0x163   : > { %3361 = vmatprep.mubr.f32.mxu0 %v4523_v9  ;;  %2283 = vmatprep.mubr.f32.mxu1 %v3997_v0  ;;  %v675_v53 = vadd.f32 %v4542_v48, %v4594_v38 }
 0x164   : > { %3740 = vmatpush3.bf16.msra.mxu0 %v3737_v47 }
 0x165   : > { %v4627_v5 = vpop.f32.mrb[14].mxu0  ;;  %3742 = vmatprep.subr.bf16.mxu0 %v3741_v3  ;;  %v588_v46 = vpop.f32.mrb[14].mxu1 }
 0x166   : > { %3362 = vmatmul.mubr.f32.gmra.mrb[120].mxu0 %v4530_v39  ;;  %v4630_v7 = vpop.f32.mrb[15].mxu0  ;;  %v4632_v60 = vadd.f32 %v588_v46, %v417_v32  ;;  %v4634_v9 = vpop.f32.mrb[15].mxu1  ;;  %2284 = vmatmul.mubr.f32.gmra.mrb[120].mxu1 %v2970_v1 }
 0x167   : > { %3364 = vmatprep.mubr.f32.mxu0 %v4537_v41  ;;  %2289 = vmatprep.mubr.f32.mxu1 %v3997_v0  ;;  %v678_v38 = vadd.f32 %v4542_v48, %v4634_v9 }
 0x168   : > { %3744 = vmatpush3.bf16.msra.mxu0 %v3741_v3  ;;  %v2986_v3 = vld [vmem:[%s4174_s10 + $0x46] sm:$0xff] }
 0x169   : > { %v4641_v39 = vpop.f32.mrb[16].mxu0  ;;  %3746 = vmatprep.subr.bf16.mxu0 %v3745_v4  ;;  %v594_v15 = vpop.f32.mrb[16].mxu1 }
 0x16a   : > { %3365 = vmatmul.mubr.f32.gmra.mrb[122].mxu0 %v4546_v50  ;;  %v4644_v16 = vpop.f32.mrb[17].mxu0  ;;  %v4646_v57 = vadd.f32 %v594_v15, %v418_v63  ;;  %v4648_v41 = vpop.f32.mrb[17].mxu1  ;;  %2290 = vmatmul.mubr.f32.gmra.mrb[122].mxu1 %v2971_v56  ;;  %v671_v50 = vadd.f32 %v4542_v48, %v4551_v54  ;;  %v674_v54 = vadd.f32 %v4542_v48, %v4583_v28  ;;  %v2988_v63 = vld [vmem:[%s4174_s10 + $0x56] sm:$0xff] }
 0x16b   : > { %3367 = vmatprep.mubr.f32.mxu0 %v2962_v62  ;;  %2295 = vmatprep.mubr.f32.mxu1 %v3997_v0  ;;  %v2987_v62 = vld [vmem:[%s4174_s10 + $0x4e] sm:$0xff]  ;;  %v677_v15 = vadd.f32 %v4542_v48, %v4620_v30 }
 0x16c   : > { %3748 = vmatpush3.bf16.msra.mxu0 %v3745_v4 }
 0x16d   : > { %v3286_v25 = vpop.f32.mrb[18].mxu0  ;;  %v600_v26 = vpop.f32.mrb[18].mxu1 }
 0x16e   : > { %v4660_v31 = vadd.f32 %v3286_v25, %v672_v20  ;;  %v791_v33 = vpop.f32.mrb[19].mxu0  ;;  %3368 = vmatmul.mubr.f32.gmra.mrb[124].mxu0 %v2963_v19  ;;  %v4662_v6 = vadd.f32 %v600_v26, %v419_v17  ;;  %v602_v14 = vpop.f32.mrb[19].mxu1  ;;  %2296 = vmatmul.mubr.f32.gmra.mrb[124].mxu1 %v2972_v22  ;;  %v422_v19 = vadd.f32 %v4542_v48, %v4616_v55  ;;  %v2989_v26 = vld [vmem:[%s4174_s10 + $0x5e] sm:$0xff] }
 0x16f   : > { %v4664_v35 = vadd.f32 %v791_v33, %v671_v50  ;;  %3402 = vmatprep.mubr.f32.mxu0 %v2982_v24  ;;  %2301 = vmatprep.mubr.f32.mxu1 %v3997_v0  ;;  %v680_v30 = vadd.f32 %v4542_v48, %v602_v14  ;;  %v2976_v55 = vld [vmem:[%s4174_s10 + $0x85] sm:$0xff] }
 0x170   : > { %v2990_v33 = vld [vmem:[%s4174_s10 + $0x66] sm:$0xff] }
 0x171   : > { %v3289_v42 = vpop.f32.mrb[20].mxu0  ;;  %v606_v47 = vpop.f32.mrb[20].mxu1 }
 0x172   : > { %v4676_v44 = vadd.f32 %v3289_v42, %v674_v54  ;;  %v801_v49 = vpop.f32.mrb[21].mxu0  ;;  %3403 = vmatmul.mubr.f32.vlgmr.msra.gmra.mrb[126].mxu0 %v2983_v59  ;;  %v4678_v28 = vadd.f32 %v606_v47, %v420_v40  ;;  %v608_v29 = vpop.f32.mrb[21].mxu1  ;;  %2302 = vmatmul.mubr.f32.gmra.mrb[126].mxu1 %v2973_v34  ;;  %v423_v59 = vadd.f32 %v4613_v10, %v4542_v48 }
 0x173   : > { %v4680_v51 = vadd.f32 %v801_v49, %v673_v37  ;;  %3405 = vmatprep.mubr.f32.mxu0 %v2984_v36  ;;  %2307 = vmatprep.mubr.f32.mxu1 %v3997_v0  ;;  %v679_v54 = vadd.f32 %v4542_v48, %v4648_v41  ;;  %v2991_v49 = vld [vmem:[%s4174_s10 + $0x6e] sm:$0xff] }
 0x174   : > { %v2977_v41 = vld [vmem:[%s4174_s10 + $0x8d] sm:$0xff] }
 0x175   : > { %v3292_v45 = vpop.f32.mrb[22].mxu0  ;;  %v612_v1 = vpop.f32.mrb[22].mxu1 }
 0x176   : > { %v4692_v32 = vadd.f32 %v3292_v45, %v676_v12  ;;  %v811_v4 = vpop.f32.mrb[23].mxu0  ;;  %3406 = vmatmul.mubr.f32.gmra.mrb[128].mxu0 %v2985_v52  ;;  %v4694_v8 = vadd.f32 %v612_v1, %v421_v58  ;;  %v614_v46 = vpop.f32.mrb[23].mxu1  ;;  %2308 = vmatmul.mubr.f32.gmra.mrb[128].mxu1 %v2974_v2  ;;  %v2992_v52 = vld [vmem:[%s4174_s10 + $0x76] sm:$0xff]  ;;  %v424_v12 = vadd.f32 %v4542_v48, %v4630_v7 }
 0x177   : > { %v4696_v56 = vadd.f32 %v811_v4, %v675_v53  ;;  %3408 = vmatprep.mubr.f32.mxu0 %v2986_v3  ;;  %2313 = vmatprep.mubr.f32.mxu1 %v3997_v0  ;;  %v682_v10 = vadd.f32 %v4542_v48, %v614_v46  ;;  %v681_v2 = vadd.f32 %v4542_v48, %v608_v29  ;;  %v2978_v7 = vld [vmem:[%s4174_s10 + $0x95] sm:$0xff]  ;;  %v2994_v29 = vld [vmem:[%s4174_s10 + $0x86] sm:$0xff] }
 0x179   : > { %v3295_v20 = vpop.f32.mrb[24].mxu0  ;;  %v618_v22 = vpop.f32.mrb[24].mxu1 }
 0x17a   : > { %v4708_v24 = vadd.f32 %v3295_v20, %v678_v38  ;;  %v821_v50 = vpop.f32.mrb[25].mxu0  ;;  %3409 = vmatmul.mubr.f32.gmra.mrb[130].mxu0 %v2987_v62  ;;  %v4710_v9 = vadd.f32 %v618_v22, %v422_v19  ;;  %v620_v17 = vpop.f32.mrb[25].mxu1  ;;  %2314 = vmatmul.mubr.f32.gmra.mrb[130].mxu1 %v2975_v43  ;;  %v2993_v62 = vld [vmem:[%s4174_s10 + $0x7e] sm:$0xff]  ;;  %v425_v43 = vadd.f32 %v4627_v5, %v4542_v48 }
 0x17b   : > { %v4712_v25 = vadd.f32 %v821_v50, %v677_v15  ;;  %3411 = vmatprep.mubr.f32.mxu0 %v2988_v63  ;;  %2319 = vmatprep.mubr.f32.mxu1 %v3997_v0  ;;  %v683_v63 = vadd.f32 %v4542_v48, %v620_v17  ;;  %v2979_v5 = vld [vmem:[%s4174_s10 + $0x9d] sm:$0xff] }
 0x17c   : > { %v2996_v17 = vld [vmem:[%s4174_s10 + $0x96] sm:$0xff] }
 0x17d   : > { %v3298_v34 = vpop.f32.mrb[26].mxu0  ;;  %v624_v36 = vpop.f32.mrb[26].mxu1 }
 0x17e   : > { %v4723_v37 = vadd.f32 %v3298_v34, %v680_v30  ;;  %v831_v40 = vpop.f32.mrb[27].mxu0  ;;  %3412 = vmatmul.mubr.f32.gmra.mrb[132].mxu0 %v2989_v26  ;;  %v4725_v14 = vadd.f32 %v624_v36, %v423_v59  ;;  %v626_v42 = vpop.f32.mrb[27].mxu1  ;;  %2320 = vmatmul.mubr.f32.gmra.mrb[132].mxu1 %v2976_v55  ;;  %v2995_v55 = vld [vmem:[%s4174_s10 + $0x8e] sm:$0xff]  ;;  %v426_v59 = vadd.f32 %v4542_v48, %v4644_v16  ;;  %v2980_v16 = vld [vmem:[%s4174_s10 + $0xa5] sm:$0xff] }
 0x17f   : > { %v4727_v47 = vadd.f32 %v831_v40, %v679_v54  ;;  %3414 = vmatprep.mubr.f32.mxu0 %v2990_v33  ;;  %2325 = vmatprep.mubr.f32.mxu1 %v3997_v0  ;;  %v684_v38 = vadd.f32 %v4542_v48, %v626_v42 }
 0x181   : > { %v3301_v3 = vpop.f32.mrb[28].mxu0  ;;  %v630_v53 = vpop.f32.mrb[28].mxu1 }
 0x182   : > { %v4737_v58 = vadd.f32 %v3301_v3, %v682_v10  ;;  %v841_v45 = vpop.f32.mrb[29].mxu0  ;;  %3415 = vmatmul.mubr.f32.gmra.mrb[134].mxu0 %v2991_v49  ;;  %v4739_v1 = vadd.f32 %v630_v53, %v424_v12  ;;  %v632_v4 = vpop.f32.mrb[29].mxu1  ;;  %2326 = vmatmul.mubr.f32.gmra.mrb[134].mxu1 %v2977_v41  ;;  %v2998_v12 = vld [vmem:[%s4174_s10 + $0xa6] sm:$0xff] }
 0x183   : > { %v4741_v46 = vadd.f32 %v841_v45, %v681_v2  ;;  %3417 = vmatprep.mubr.f32.mxu0 %v2992_v52  ;;  %2331 = vmatprep.mubr.f32.mxu1 %v3997_v0  ;;  %v685_v54 = vadd.f32 %v4542_v48, %v632_v4  ;;  %v2997_v52 = vld [vmem:[%s4174_s10 + $0x9e] sm:$0xff]  ;;  %v427_v2 = vadd.f32 %v4641_v39, %v4542_v48  ;;  %v2981_v39 = vld [vmem:[%s4174_s10 + $0xad] sm:$0xff] }
 0x185   : > { %v3304_v15 = vpop.f32.mrb[30].mxu0  ;;  %v636_v19 = vpop.f32.mrb[30].mxu1 }
 0x186   : > { %v4751_v20 = vadd.f32 %v3304_v15, %v684_v38  ;;  %v851_v22 = vpop.f32.mrb[31].mxu0  ;;  %3418 = vmatmul.mubr.f32.gmra.mrb[136].mxu0 %v2993_v62  ;;  %v4753_v50 = vadd.f32 %v636_v19, %v425_v43  ;;  %v638_v26 = vpop.f32.mrb[31].mxu1  ;;  %2332 = vmatmul.mubr.f32.gmra.mrb[136].mxu1 %v2978_v7 }
 0x187   : > { %v4755_v30 = vadd.f32 %v851_v22, %v683_v63  ;;  %3420 = vmatprep.mubr.f32.mxu0 %v2994_v29  ;;  %v686_v33 = vadd.f32 %v4542_v48, %v638_v26  ;;  %2337 = vmatprep.mubr.f32.mxu1 %v3997_v0  ;;  %v2999_v29 = vld [vmem:[%s4174_s10 + $0xae] sm:$0xff] }
 0x189   : > { %v3307_v34 = vpop.f32.mrb[32].mxu0  ;;  %v642_v36 = vpop.f32.mrb[32].mxu1 }
 0x18a   : > { %v4765_v40 = vadd.f32 %v3307_v34, %v686_v33  ;;  %v861_v42 = vpop.f32.mrb[33].mxu0  ;;  %3421 = vmatmul.mubr.f32.gmra.mrb[138].mxu0 %v2995_v55  ;;  %v4767_v49 = vadd.f32 %v642_v36, %v426_v59  ;;  %v644_v10 = vpop.f32.mrb[33].mxu1  ;;  %2338 = vmatmul.mubr.f32.gmra.mrb[138].mxu1 %v2979_v5 }
 0x18b   : > { %v4769_v41 = vadd.f32 %v861_v42, %v685_v54  ;;  %3423 = vmatprep.mubr.f32.mxu0 %v2996_v17  ;;  %2343 = vmatprep.mubr.f32.mxu1 %v3997_v0  ;;  %v687_v3 = vadd.f32 %v4542_v48, %v644_v10 }
 0x18d   : > { %v3310_v53 = vpop.f32.mrb[34].mxu0  ;;  %v648_v45 = vpop.f32.mrb[34].mxu1 }
 0x18e   : > { %v871_v4 = vpop.f32.mrb[35].mxu0  ;;  %3424 = vmatmul.mubr.f32.gmra.mrb[140].mxu0 %v2997_v52  ;;  %v4779_v62 = vadd.f32 %v648_v45, %v427_v2  ;;  %v650_v38 = vpop.f32.mrb[35].mxu1  ;;  %2344 = vmatmul.mubr.f32.gmra.mrb[140].mxu1 %v2980_v16 }
 0x18f   : > { %v4781_v7 = vadd.f32 %v871_v4, %v687_v3  ;;  %3426 = vmatprep.mubr.f32.mxu0 %v2998_v12  ;;  %v688_v43 = vadd.f32 %v4542_v48, %v650_v38  ;;  %2349 = vmatprep.mubr.f32.mxu1 %v3997_v0 }
 0x191   : > { %v1016_v63 = vpop.f32.mrb[36].mxu0  ;;  %v1309_v19 = vpop.f32.mrb[36].mxu1  ;;  %v4792_v26 = vadd.f32 %v3310_v53, %v688_v43 }
 0x192   : > { %v1123_v15 = vadd.f32 %v1016_v63, %v4557_v61  ;;  %3427 = vmatmul.mubr.f32.gmra.mrb[142].mxu0 %v2999_v29  ;;  %v4790_v22 = vpop.f32.mrb[37].mxu0  ;;  %v1311_v55 = vpop.f32.mrb[37].mxu1  ;;  %2350 = vmatmul.mubr.f32.gmra.mrb[142].mxu1 %v2981_v39 }
 0x193   : > { %v4795_v5 = vadd.f32 %v1311_v55, %v4664_v35 }
 0x194   : > { %v1589_v33 = vadd.f32 %v1309_v19, %v1123_v15 }
 0x195   : > { %v1022_v17 = vpop.f32.mrb[38].mxu0  ;;  %v1315_v61 = vpop.f32.mrb[38].mxu1 }
 0x196   : > { %2601 = vst [vmem:[%s4797_s21] sm:$0xff] %v1589_v33  ;;  %v1124_v0 = vadd.f32 %v1022_v17, %v4560_v23  ;;  %v4801_v59 = vpop.f32.mrb[39].mxu0  ;;  %v1317_v54 = vpop.f32.mrb[39].mxu1 }
 0x197   : > { %v4804_v36 = vadd.f32 %v1317_v54, %v4660_v31 }
 0x198   : > { %v1590_v34 = vadd.f32 %v1315_v61, %v1124_v0 }
 0x199   : > { %v1028_v42 = vpop.f32.mrb[40].mxu0  ;;  %v1321_v10 = vpop.f32.mrb[40].mxu1 }
 0x19a   : > { %2602 = vst [vmem:[%s4797_s21 + $0x8] sm:$0xff] %v1590_v34  ;;  %v1125_v35 = vadd.f32 %v1028_v42, %v4570_v18  ;;  %v4808_v52 = vpop.f32.mrb[41].mxu0  ;;  %v1323_v16 = vpop.f32.mrb[41].mxu1 }
 0x19b   : > { %v4811_v23 = vadd.f32 %v1323_v16, %v4680_v51 }
 0x19c   : > { %v1591_v12 = vadd.f32 %v1321_v10, %v1125_v35 }
 0x19d   : > { %v1034_v2 = vpop.f32.mrb[42].mxu0  ;;  %v1327_v31 = vpop.f32.mrb[42].mxu1 }
 0x19e   : > { %2603 = vst [vmem:[%s4797_s21 + $0x10] sm:$0xff] %v1591_v12  ;;  %v1126_v3 = vadd.f32 %v1034_v2, %v4581_v27  ;;  %v4815_v53 = vpop.f32.mrb[43].mxu0  ;;  %v1329_v45 = vpop.f32.mrb[43].mxu1 }
 0x19f   : > { %v4818_v18 = vadd.f32 %v1329_v45, %v4676_v44 }
 0x1a0   : > { %v1592_v4 = vadd.f32 %v1327_v31, %v1126_v3 }
 0x1a1   : > { %v1040_v38 = vpop.f32.mrb[44].mxu0  ;;  %v1333_v51 = vpop.f32.mrb[44].mxu1 }
 0x1a2   : > { %2604 = vst [vmem:[%s4797_s21 + $0x18] sm:$0xff] %v1592_v4  ;;  %v1127_v29 = vadd.f32 %v1040_v38, %v4592_v13  ;;  %v4822_v43 = vpop.f32.mrb[45].mxu0  ;;  %v1335_v39 = vpop.f32.mrb[45].mxu1 }
 0x1a3   : > { %v4825_v27 = vadd.f32 %v1335_v39, %v4696_v56 }
 0x1a4   : > { %v1593_v63 = vadd.f32 %v1333_v51, %v1127_v29 }
 0x1a5   : > { %v1046_v15 = vpop.f32.mrb[46].mxu0  ;;  %v1339_v44 = vpop.f32.mrb[46].mxu1 }
 0x1a6   : > { %2605 = vst [vmem:[%s4797_s21 + $0x20] sm:$0xff] %v1593_v63  ;;  %v1128_v19 = vadd.f32 %v1046_v15, %v4605_v21  ;;  %v4829_v55 = vpop.f32.mrb[47].mxu0  ;;  %v1341_v33 = vpop.f32.mrb[47].mxu1 }
 0x1a7   : > { %v4832_v13 = vadd.f32 %v1341_v33, %v4692_v32 }
 0x1a8   : > { %v1594_v17 = vadd.f32 %v1339_v44, %v1128_v19 }
 0x1a9   : > { %v1052_v0 = vpop.f32.mrb[48].mxu0  ;;  %v1345_v56 = vpop.f32.mrb[48].mxu1 }
 0x1aa   : > { %2606 = vst [vmem:[%s4797_s21 + $0x28] sm:$0xff] %v1594_v17  ;;  %v1129_v61 = vadd.f32 %v1052_v0, %v4618_v11  ;;  %v4836_v54 = vpop.f32.mrb[49].mxu0  ;;  %v1347_v34 = vpop.f32.mrb[49].mxu1 }
 0x1ab   : > { %v4839_v21 = vadd.f32 %v1347_v34, %v4712_v25 }
 0x1ac   : > { %v1595_v42 = vadd.f32 %v1345_v56, %v1129_v61 }
 0x1ad   : > { %v1058_v35 = vpop.f32.mrb[50].mxu0  ;;  %v1351_v32 = vpop.f32.mrb[50].mxu1 }
 0x1ae   : > { %2607 = vst [vmem:[%s4797_s21 + $0x30] sm:$0xff] %v1595_v42  ;;  %v1130_v10 = vadd.f32 %v1058_v35, %v4632_v60  ;;  %v4843_v16 = vpop.f32.mrb[51].mxu0  ;;  %v1353_v12 = vpop.f32.mrb[51].mxu1 }
 0x1af   : > { %v4846_v11 = vadd.f32 %v1353_v12, %v4708_v24 }
 0x1b0   : > { %v1596_v2 = vadd.f32 %v1351_v32, %v1130_v10 }
 0x1b1   : > { %v1064_v3 = vpop.f32.mrb[52].mxu0  ;;  %v1357_v25 = vpop.f32.mrb[52].mxu1 }
 0x1b2   : > { %2608 = vst [vmem:[%s4797_s21 + $0x38] sm:$0xff] %v1596_v2  ;;  %v1131_v31 = vadd.f32 %v1064_v3, %v4646_v57  ;;  %v4850_v45 = vpop.f32.mrb[53].mxu0  ;;  %v1359_v4 = vpop.f32.mrb[53].mxu1 }
 0x1b3   : > { %v4853_v60 = vadd.f32 %v1359_v4, %v4727_v47 }
 0x1b4   : > { %v1597_v38 = vadd.f32 %v1357_v25, %v1131_v31 }
 0x1b5   : > { %v1070_v29 = vpop.f32.mrb[54].mxu0  ;;  %v1363_v24 = vpop.f32.mrb[54].mxu1 }
 0x1b6   : > { %2609 = vst [vmem:[%s4797_s21 + $0x40] sm:$0xff] %v1597_v38  ;;  %v1132_v51 = vadd.f32 %v1070_v29, %v4662_v6  ;;  %v4857_v39 = vpop.f32.mrb[55].mxu0  ;;  %v1365_v63 = vpop.f32.mrb[55].mxu1 }
 0x1b7   : > { %v4860_v57 = vadd.f32 %v1365_v63, %v4723_v37 }
 0x1b8   : > { %v1598_v15 = vadd.f32 %v1363_v24, %v1132_v51 }
 0x1b9   : > { %v1076_v19 = vpop.f32.mrb[56].mxu0  ;;  %v1369_v47 = vpop.f32.mrb[56].mxu1 }
 0x1ba   : > { %2610 = vst [vmem:[%s4797_s21 + $0x48] sm:$0xff] %v1598_v15  ;;  %v1133_v44 = vadd.f32 %v1076_v19, %v4678_v28  ;;  %v4864_v33 = vpop.f32.mrb[57].mxu0  ;;  %v1371_v17 = vpop.f32.mrb[57].mxu1 }
 0x1bb   : > { %v4867_v6 = vadd.f32 %v1371_v17, %v4741_v46 }
 0x1bc   : > { %v1599_v0 = vadd.f32 %v1369_v47, %v1133_v44 }
 0x1bd   : > { %v1082_v61 = vpop.f32.mrb[58].mxu0  ;;  %v1375_v37 = vpop.f32.mrb[58].mxu1 }
 0x1be   : > { %2611 = vst [vmem:[%s4797_s21 + $0x50] sm:$0xff] %v1599_v0  ;;  %v1134_v56 = vadd.f32 %v1082_v61, %v4694_v8  ;;  %v4871_v34 = vpop.f32.mrb[59].mxu0  ;;  %v1377_v42 = vpop.f32.mrb[59].mxu1 }
 0x1bf   : > { %v4874_v28 = vadd.f32 %v1377_v42, %v4737_v58 }
 0x1c0   : > { %v1600_v35 = vadd.f32 %v1375_v37, %v1134_v56 }
 0x1c1   : > { %v1088_v10 = vpop.f32.mrb[60].mxu0  ;;  %v1381_v46 = vpop.f32.mrb[60].mxu1 }
 0x1c2   : > { %2612 = vst [vmem:[%s4797_s21 + $0x58] sm:$0xff] %v1600_v35  ;;  %v1135_v32 = vadd.f32 %v1088_v10, %v4710_v9  ;;  %v4878_v12 = vpop.f32.mrb[61].mxu0  ;;  %v1383_v2 = vpop.f32.mrb[61].mxu1 }
 0x1c3   : > { %v4881_v8 = vadd.f32 %v1383_v2, %v4755_v30 }
 0x1c4   : > { %v1601_v3 = vadd.f32 %v1381_v46, %v1135_v32 }
 0x1c5   : > { %v1094_v31 = vpop.f32.mrb[62].mxu0  ;;  %v1387_v58 = vpop.f32.mrb[62].mxu1 }
 0x1c6   : > { %2613 = vst [vmem:[%s4797_s21 + $0x60] sm:$0xff] %v1601_v3  ;;  %v1136_v25 = vadd.f32 %v1094_v31, %v4725_v14  ;;  %v4885_v4 = vpop.f32.mrb[63].mxu0  ;;  %v1389_v38 = vpop.f32.mrb[63].mxu1 }
 0x1c7   : > { %v4888_v9 = vadd.f32 %v1389_v38, %v4751_v20 }
 0x1c8   : > { %v1602_v29 = vadd.f32 %v1387_v58, %v1136_v25 }
 0x1c9   : > { %v1100_v51 = vpop.f32.mrb[64].mxu0  ;;  %v1393_v30 = vpop.f32.mrb[64].mxu1 }
 0x1ca   : > { %2614 = vst [vmem:[%s4797_s21 + $0x68] sm:$0xff] %v1602_v29  ;;  %v1137_v24 = vadd.f32 %v1100_v51, %v4739_v1  ;;  %v4892_v63 = vpop.f32.mrb[65].mxu0  ;;  %v1395_v15 = vpop.f32.mrb[65].mxu1 }
 0x1cb   : > { %v4895_v14 = vadd.f32 %v1395_v15, %v4769_v41 }
 0x1cc   : > { %v1603_v19 = vadd.f32 %v1393_v30, %v1137_v24  ;;  %v1142_v30 = vadd.f32 %v4542_v48, %v4801_v59 }
 0x1cd   : > { %v1106_v44 = vpop.f32.mrb[66].mxu0  ;;  %v1399_v20 = vpop.f32.mrb[66].mxu1 }
 0x1ce   : > { %2615 = vst [vmem:[%s4797_s21 + $0x70] sm:$0xff] %v1603_v19  ;;  %v1138_v47 = vadd.f32 %v1106_v44, %v4753_v50  ;;  %v4899_v17 = vpop.f32.mrb[67].mxu0  ;;  %v1401_v0 = vpop.f32.mrb[67].mxu1 }
 0x1cf   : > { %v4902_v1 = vadd.f32 %v1401_v0, %v4765_v40  ;;  %v1143_v0 = vadd.f32 %v4542_v48, %v4808_v52 }
 0x1d0   : > { %v1604_v61 = vadd.f32 %v1399_v20, %v1138_v47 }
 0x1d1   : > { %v1112_v56 = vpop.f32.mrb[68].mxu0  ;;  %v1405_v41 = vpop.f32.mrb[68].mxu1 }
 0x1d2   : > { %2616 = vst [vmem:[%s4797_s21 + $0x78] sm:$0xff] %v1604_v61  ;;  %v1139_v37 = vadd.f32 %v1112_v56, %v4767_v49  ;;  %v4906_v42 = vpop.f32.mrb[69].mxu0  ;;  %v1407_v35 = vpop.f32.mrb[69].mxu1  ;;  %v1141_v49 = vadd.f32 %v4542_v48, %v4790_v22 }
 0x1d3   : > { %v4909_v50 = vadd.f32 %v1407_v35, %v4781_v7 }
 0x1d4   : > { %v1605_v10 = vadd.f32 %v1405_v41, %v1139_v37 }
 0x1d5   : > { %v1118_v32 = vpop.f32.mrb[70].mxu0  ;;  %v1411_v40 = vpop.f32.mrb[70].mxu1 }
 0x1d6   : > { %2617 = vst [vmem:[%s4797_s21 + $0x80] sm:$0xff] %v1605_v10  ;;  %v1140_v46 = vadd.f32 %v1118_v32, %v4779_v62  ;;  %v4913_v2 = vpop.f32.mrb[71].mxu0  ;;  %v1413_v3 = vpop.f32.mrb[71].mxu1  ;;  %v1144_v32 = vadd.f32 %v4542_v48, %v4815_v53 }
 0x1d7   : > { %v4918_v25 = vadd.f32 %v1413_v3, %v4792_v26 }
 0x1d8   : > { %v1606_v31 = vadd.f32 %v1411_v40, %v1140_v46 }
 0x1d9   : > { %v1482_v58 = vpop.f32.mrb[72].mxu0  ;;  %v1779_v38 = vpop.f32.mrb[72].mxu1 }
 0x1da   : > { %2618 = vst [vmem:[%s4797_s21 + $0x88] sm:$0xff] %v1606_v31  ;;  %v4921_v7 = vadd.f32 %v1482_v58, %v1141_v49  ;;  %v1484_v29 = vpop.f32.mrb[73].mxu0  ;;  %v1886_v62 = vadd.f32 %v1779_v38, %v4795_v5  ;;  %v1781_v24 = vpop.f32.mrb[73].mxu1  ;;  %v1145_v38 = vadd.f32 %v4542_v48, %v4822_v43 }
 0x1db   : > { %v1643_v51 = vadd.f32 %v4542_v48, %v1484_v29 }
 0x1dc   : > { %3000 = vst [vmem:[%s4797_s21 + $0x90] sm:$0xff] %v1886_v62 }
 0x1dd   : > { %v4928_v22 = vadd.f32 %v1781_v24, %v1643_v51  ;;  %v1488_v26 = vpop.f32.mrb[74].mxu0  ;;  %v1785_v19 = vpop.f32.mrb[74].mxu1 }
 0x1de   : > { %v4930_v15 = vadd.f32 %v1488_v26, %v1142_v30  ;;  %v1490_v44 = vpop.f32.mrb[75].mxu0  ;;  %v1887_v47 = vadd.f32 %v1785_v19, %v4804_v36  ;;  %v1787_v5 = vpop.f32.mrb[75].mxu1  ;;  %v1146_v19 = vadd.f32 %v4542_v48, %v4829_v55 }
 0x1df   : > { %v1644_v20 = vadd.f32 %v4542_v48, %v1490_v44 }
 0x1e0   : > { %3001 = vst [vmem:[%s4797_s21 + $0x98] sm:$0xff] %v1887_v47 }
 0x1e1   : > { %v4937_v61 = vadd.f32 %v1787_v5, %v1644_v20  ;;  %v1494_v59 = vpop.f32.mrb[76].mxu0  ;;  %v1791_v37 = vpop.f32.mrb[76].mxu1 }
 0x1e2   : > { %v4939_v56 = vadd.f32 %v1494_v59, %v1143_v0  ;;  %v1496_v41 = vpop.f32.mrb[77].mxu0  ;;  %v1888_v35 = vadd.f32 %v1791_v37, %v4811_v23  ;;  %v1793_v36 = vpop.f32.mrb[77].mxu1  ;;  %v1147_v37 = vadd.f32 %v4542_v48, %v4836_v54 }
 0x1e3   : > { %v1645_v10 = vadd.f32 %v4542_v48, %v1496_v41 }
 0x1e4   : > { %3002 = vst [vmem:[%s4797_s21 + $0xa0] sm:$0xff] %v1888_v35 }
 0x1e5   : > { %v4946_v46 = vadd.f32 %v1793_v36, %v1645_v10  ;;  %v1500_v52 = vpop.f32.mrb[78].mxu0  ;;  %v1797_v3 = vpop.f32.mrb[78].mxu1 }
 0x1e6   : > { %v4948_v40 = vadd.f32 %v1500_v52, %v1144_v32  ;;  %v1502_v49 = vpop.f32.mrb[79].mxu0  ;;  %v1889_v31 = vadd.f32 %v1797_v3, %v4818_v18  ;;  %v1799_v23 = vpop.f32.mrb[79].mxu1  ;;  %v1148_v3 = vadd.f32 %v4542_v48, %v4843_v16 }
 0x1e7   : > { %v1646_v58 = vadd.f32 %v4542_v48, %v1502_v49 }
 0x1e8   : > { %3003 = vst [vmem:[%s4797_s21 + $0xa8] sm:$0xff] %v1889_v31 }
 0x1e9   : > { %v4955_v29 = vadd.f32 %v1799_v23, %v1646_v58  ;;  %v1506_v53 = vpop.f32.mrb[80].mxu0  ;;  %v1803_v51 = vpop.f32.mrb[80].mxu1 }
 0x1ea   : > { %v4957_v62 = vadd.f32 %v1506_v53, %v1145_v38  ;;  %v1508_v24 = vpop.f32.mrb[81].mxu0  ;;  %v1890_v30 = vadd.f32 %v1803_v51, %v4825_v27  ;;  %v1805_v18 = vpop.f32.mrb[81].mxu1  ;;  %v4987_v53 = vld [vmem:[#allocation5] ss:$0 sm:$0xff] }
 0x1eb   : > { %v1647_v26 = vadd.f32 %v4542_v48, %v1508_v24  ;;  %v1149_v24 = vadd.f32 %v4987_v53, %v4850_v45 }
 0x1ec   : > { %3004 = vst [vmem:[%s4797_s21 + $0xb0] sm:$0xff] %v1890_v30 }
 0x1ed   : > { %v4964_v44 = vadd.f32 %v1805_v18, %v1647_v26  ;;  %v1512_v43 = vpop.f32.mrb[82].mxu0  ;;  %v1809_v20 = vpop.f32.mrb[82].mxu1 }
 0x1ee   : > { %v4966_v47 = vadd.f32 %v1512_v43, %v1146_v19  ;;  %v1514_v5 = vpop.f32.mrb[83].mxu0  ;;  %v1891_v0 = vadd.f32 %v1809_v20, %v4832_v13  ;;  %v1811_v27 = vpop.f32.mrb[83].mxu1  ;;  %v1150_v20 = vadd.f32 %v4987_v53, %v4857_v39 }
 0x1ef   : > { %v1648_v59 = vadd.f32 %v4542_v48, %v1514_v5 }
 0x1f0   : > { %3005 = vst [vmem:[%s4797_s21 + $0xb8] sm:$0xff] %v1891_v0 }
 0x1f1   : > { %v4973_v41 = vadd.f32 %v1811_v27, %v1648_v59  ;;  %v1518_v55 = vpop.f32.mrb[84].mxu0  ;;  %v1815_v10 = vpop.f32.mrb[84].mxu1 }
 0x1f2   : > { %v4975_v35 = vadd.f32 %v1518_v55, %v1147_v37  ;;  %v1520_v36 = vpop.f32.mrb[85].mxu0  ;;  %v1892_v32 = vadd.f32 %v1815_v10, %v4839_v21  ;;  %v1817_v13 = vpop.f32.mrb[85].mxu1  ;;  %v1151_v10 = vadd.f32 %v4987_v53, %v4864_v33 }
 0x1f3   : > { %v1649_v52 = vadd.f32 %v4542_v48, %v1520_v36 }
 0x1f4   : > { %3006 = vst [vmem:[%s4797_s21 + $0xc0] sm:$0xff] %v1892_v32 }
 0x1f5   : > { %v4982_v49 = vadd.f32 %v1817_v13, %v1649_v52  ;;  %v1524_v54 = vpop.f32.mrb[86].mxu0  ;;  %v1821_v58 = vpop.f32.mrb[86].mxu1 }
 0x1f6   : > { %v4984_v31 = vadd.f32 %v1524_v54, %v1148_v3  ;;  %v1526_v23 = vpop.f32.mrb[87].mxu0  ;;  %v1893_v38 = vadd.f32 %v1821_v58, %v4846_v11  ;;  %v1823_v51 = vpop.f32.mrb[87].mxu1  ;;  %v1152_v58 = vadd.f32 %v4987_v53, %v4871_v34 }
 0x1f7   : > { %v1650_v21 = vadd.f32 %v4987_v53, %v1526_v23 }
 0x1f8   : > { %3007 = vst [vmem:[%s4797_s21 + $0xc8] sm:$0xff] %v1893_v38 }
 0x1f9   : > { %v4993_v48 = vadd.f32 %v1823_v51, %v1650_v21  ;;  %v1530_v16 = vpop.f32.mrb[88].mxu0  ;;  %v1827_v26 = vpop.f32.mrb[88].mxu1 }
 0x1fa   : > { %v4995_v30 = vadd.f32 %v1530_v16, %v1149_v24  ;;  %v1532_v18 = vpop.f32.mrb[89].mxu0  ;;  %v1894_v19 = vadd.f32 %v1827_v26, %v4853_v60  ;;  %v1829_v43 = vpop.f32.mrb[89].mxu1  ;;  %v1153_v26 = vadd.f32 %v4987_v53, %v4878_v12 }
 0x1fb   : > { %v1651_v11 = vadd.f32 %v4987_v53, %v1532_v18 }
 0x1fc   : > { %3008 = vst [vmem:[%s4797_s21 + $0xd0] sm:$0xff] %v1894_v19 }
 0x1fd   : > { %v5002_v5 = vadd.f32 %v1829_v43, %v1651_v11  ;;  %v1536_v45 = vpop.f32.mrb[90].mxu0  ;;  %v1833_v59 = vpop.f32.mrb[90].mxu1 }
 0x1fe   : > { %v5004_v0 = vadd.f32 %v1536_v45, %v1150_v20  ;;  %v1538_v27 = vpop.f32.mrb[91].mxu0  ;;  %v1895_v37 = vadd.f32 %v1833_v59, %v4860_v57  ;;  %v1835_v60 = vpop.f32.mrb[91].mxu1  ;;  %v1154_v59 = vadd.f32 %v4987_v53, %v4885_v4 }
 0x1ff   : > { %v1652_v55 = vadd.f32 %v4987_v53, %v1538_v27 }
 0x200   : > { %3009 = vst [vmem:[%s4797_s21 + $0xd8] sm:$0xff] %v1895_v37 }
 0x201   : > { %v5011_v36 = vadd.f32 %v1835_v60, %v1652_v55  ;;  %v1542_v39 = vpop.f32.mrb[92].mxu0  ;;  %v1839_v52 = vpop.f32.mrb[92].mxu1 }
 0x202   : > { %v5013_v32 = vadd.f32 %v1542_v39, %v1151_v10  ;;  %v1544_v13 = vpop.f32.mrb[93].mxu0  ;;  %v1896_v3 = vadd.f32 %v1839_v52, %v4867_v6  ;;  %v1841_v57 = vpop.f32.mrb[93].mxu1  ;;  %v1155_v52 = vadd.f32 %v4987_v53, %v4892_v63 }
 0x203   : > { %v1653_v54 = vadd.f32 %v4987_v53, %v1544_v13 }
 0x204   : > { %3010 = vst [vmem:[%s4797_s21 + $0xe0] sm:$0xff] %v1896_v3 }
 0x205   : > { %v5020_v23 = vadd.f32 %v1841_v57, %v1653_v54  ;;  %v1548_v33 = vpop.f32.mrb[94].mxu0  ;;  %v1845_v21 = vpop.f32.mrb[94].mxu1 }
 0x206   : > { %v5022_v38 = vadd.f32 %v1548_v33, %v1152_v58  ;;  %v1550_v51 = vpop.f32.mrb[95].mxu0  ;;  %v1897_v24 = vadd.f32 %v1845_v21, %v4874_v28  ;;  %v1847_v6 = vpop.f32.mrb[95].mxu1  ;;  %v1156_v21 = vadd.f32 %v4987_v53, %v4899_v17 }
 0x207   : > { %v1654_v16 = vadd.f32 %v4987_v53, %v1550_v51 }
 0x208   : > { %3011 = vst [vmem:[%s4797_s21 + $0xe8] sm:$0xff] %v1897_v24 }
 0x209   : > { %v5029_v18 = vadd.f32 %v1847_v6, %v1654_v16  ;;  %v1554_v34 = vpop.f32.mrb[96].mxu0  ;;  %v1851_v11 = vpop.f32.mrb[96].mxu1 }
 0x20a   : > { %v5031_v19 = vadd.f32 %v1554_v34, %v1153_v26  ;;  %v1556_v43 = vpop.f32.mrb[97].mxu0  ;;  %v1898_v20 = vadd.f32 %v1851_v11, %v4881_v8  ;;  %v1853_v28 = vpop.f32.mrb[97].mxu1  ;;  %v1157_v11 = vadd.f32 %v4987_v53, %v4906_v42 }
 0x20b   : > { %v1655_v45 = vadd.f32 %v4987_v53, %v1556_v43 }
 0x20c   : > { %3012 = vst [vmem:[%s4797_s21 + $0xf0] sm:$0xff] %v1898_v20 }
 0x20d   : > { %v5038_v27 = vadd.f32 %v1853_v28, %v1655_v45  ;;  %v1560_v12 = vpop.f32.mrb[98].mxu0  ;;  %v1857_v55 = vpop.f32.mrb[98].mxu1 }
 0x20e   : > { %v5040_v37 = vadd.f32 %v1560_v12, %v1154_v59  ;;  %v1562_v60 = vpop.f32.mrb[99].mxu0  ;;  %v1899_v10 = vadd.f32 %v1857_v55, %v4888_v9  ;;  %v1859_v8 = vpop.f32.mrb[99].mxu1  ;;  %v1158_v55 = vadd.f32 %v4987_v53, %v4913_v2 }
 0x20f   : > { %v1656_v39 = vadd.f32 %v4987_v53, %v1562_v60 }
 0x210   : > { %3013 = vst [vmem:[%s4797_s21 + $0xf8] sm:$0xff] %v1899_v10 }
 0x211   : > { %v5047_v13 = vadd.f32 %v1859_v8, %v1656_v39  ;;  %v1566_v4 = vpop.f32.mrb[100].mxu0  ;;  %v1863_v54 = vpop.f32.mrb[100].mxu1 }
 0x212   : > { %v5049_v3 = vadd.f32 %v1566_v4, %v1155_v52  ;;  %v1568_v57 = vpop.f32.mrb[101].mxu0  ;;  %v1900_v58 = vadd.f32 %v1863_v54, %v4895_v14  ;;  %v1865_v9 = vpop.f32.mrb[101].mxu1 }
 0x213   : > { %v1657_v33 = vadd.f32 %v4987_v53, %v1568_v57 }
 0x214   : > { %3014 = vst [vmem:[%s4797_s21 + $0x100] sm:$0xff] %v1900_v58 }
 0x215   : > { %v5056_v51 = vadd.f32 %v1865_v9, %v1657_v33  ;;  %v1572_v63 = vpop.f32.mrb[102].mxu0  ;;  %v1869_v16 = vpop.f32.mrb[102].mxu1 }
 0x216   : > { %v5058_v24 = vadd.f32 %v1572_v63, %v1156_v21  ;;  %v1574_v6 = vpop.f32.mrb[103].mxu0  ;;  %v1901_v26 = vadd.f32 %v1869_v16, %v4902_v1  ;;  %v1871_v14 = vpop.f32.mrb[103].mxu1 }
 0x217   : > { %v1658_v34 = vadd.f32 %v4987_v53, %v1574_v6 }
 0x218   : > { %3015 = vst [vmem:[%s4797_s21 + $0x108] sm:$0xff] %v1901_v26 }
 0x219   : > { %v5065_v43 = vadd.f32 %v1871_v14, %v1658_v34  ;;  %v1578_v17 = vpop.f32.mrb[104].mxu0  ;;  %v1875_v45 = vpop.f32.mrb[104].mxu1 }
 0x21a   : > { %v5067_v20 = vadd.f32 %v1578_v17, %v1157_v11  ;;  %v1580_v28 = vpop.f32.mrb[105].mxu0  ;;  %v1902_v59 = vadd.f32 %v1875_v45, %v4909_v50  ;;  %v1877_v1 = vpop.f32.mrb[105].mxu1 }
 0x21b   : > { %v1659_v12 = vadd.f32 %v4987_v53, %v1580_v28 }
 0x21c   : > { %3016 = vst [vmem:[%s4797_s21 + $0x110] sm:$0xff] %v1902_v59 }
 0x21d   : > { %v5074_v60 = vadd.f32 %v1877_v1, %v1659_v12  ;;  %v1584_v42 = vpop.f32.mrb[106].mxu0  ;;  %v1881_v39 = vpop.f32.mrb[106].mxu1 }
 0x21e   : > { %v5076_v10 = vadd.f32 %v1584_v42, %v1158_v55  ;;  %v1586_v8 = vpop.f32.mrb[107].mxu0  ;;  %v1903_v52 = vadd.f32 %v1881_v39, %v4918_v25  ;;  %v1883_v50 = vpop.f32.mrb[107].mxu1 }
 0x21f   : > { %v1660_v4 = vadd.f32 %v4987_v53, %v1586_v8 }
 0x220   : > { %3017 = vst [vmem:[%s4797_s21 + $0x118] sm:$0xff] %v1903_v52 }
 0x221   : > { %v5081_v54 = vadd.f32 %v1883_v50, %v1660_v4  ;;  %v3345_v57 = vpop.f32.mrb[108].mxu0  ;;  %v2249_v58 = vpop.f32.mrb[108].mxu1 }
 0x222   : > { %v2114_v2 = vadd.f32 %v3345_v57, %v4930_v15  ;;  %v2024_v33 = vpop.f32.mrb[109].mxu0  ;;  %v2251_v21 = vpop.f32.mrb[109].mxu1 }
 0x223   : > { %v2113_v9 = vadd.f32 %v2024_v33, %v4921_v7  ;;  %v5086_v63 = vadd.f32 %v2251_v21, %v4928_v22 }
 0x225   : > { %v2356_v25 = vadd.f32 %v2249_v58, %v2113_v9  ;;  %v3348_v16 = vpop.f32.mrb[110].mxu0  ;;  %v2255_v6 = vpop.f32.mrb[110].mxu1 }
 0x226   : > { %v2116_v53 = vadd.f32 %v3348_v16, %v4948_v40  ;;  %v2034_v26 = vpop.f32.mrb[111].mxu0  ;;  %v2357_v34 = vadd.f32 %v2255_v6, %v2114_v2  ;;  %v2257_v14 = vpop.f32.mrb[111].mxu1 }
 0x227   : > { %3018 = vst [vmem:[%s4797_s21 + $0x120] sm:$0xff] %v2356_v25  ;;  %v2115_v15 = vadd.f32 %v2034_v26, %v4939_v56  ;;  %v5092_v11 = vadd.f32 %v2257_v14, %v4937_v61 }
 0x228   : > { %3019 = vst [vmem:[%s4797_s21 + $0x128] sm:$0xff] %v2357_v34 }
 0x229   : > { %v3351_v7 = vpop.f32.mrb[112].mxu0  ;;  %v2261_v17 = vpop.f32.mrb[112].mxu1 }
 0x22a   : > { %v2118_v22 = vadd.f32 %v3351_v7, %v4966_v47  ;;  %v2044_v45 = vpop.f32.mrb[113].mxu0  ;;  %v2358_v28 = vadd.f32 %v2261_v17, %v2115_v15  ;;  %v2263_v59 = vpop.f32.mrb[113].mxu1 }
 0x22b   : > { %v2117_v40 = vadd.f32 %v2044_v45, %v4957_v62  ;;  %v5098_v12 = vadd.f32 %v2263_v59, %v4946_v46 }
 0x22c   : > { %3020 = vst [vmem:[%s4797_s21 + $0x130] sm:$0xff] %v2358_v28 }
 0x22d   : > { %v3354_v56 = vpop.f32.mrb[114].mxu0  ;;  %v2267_v61 = vpop.f32.mrb[114].mxu1 }
 0x22e   : > { %v2120_v1 = vadd.f32 %v3354_v56, %v4984_v31  ;;  %v2054_v55 = vpop.f32.mrb[115].mxu0  ;;  %v2359_v42 = vadd.f32 %v2267_v61, %v2116_v53  ;;  %v2269_v39 = vpop.f32.mrb[115].mxu1 }
 0x22f   : > { %v2119_v47 = vadd.f32 %v2054_v55, %v4975_v35  ;;  %v2377_v8 = vadd.f32 %v2269_v39, %v4955_v29 }
 0x230   : > { %3021 = vst [vmem:[%s4797_s21 + $0x138] sm:$0xff] %v2359_v42 }
 0x231   : > { %v3357_v52 = vpop.f32.mrb[116].mxu0  ;;  %v2273_v46 = vpop.f32.mrb[116].mxu1 }
 0x232   : > { %v2122_v62 = vadd.f32 %v3357_v52, %v5004_v0  ;;  %v2064_v4 = vpop.f32.mrb[117].mxu0  ;;  %v2360_v50 = vadd.f32 %v2273_v46, %v2117_v40  ;;  %v2275_v31 = vpop.f32.mrb[117].mxu1 }
 0x233   : > { %v2121_v57 = vadd.f32 %v2064_v4, %v4995_v30  ;;  %v5108_v2 = vadd.f32 %v2275_v31, %v4964_v44 }
 0x234   : > { %3022 = vst [vmem:[%s4797_s21 + $0x140] sm:$0xff] %v2360_v50 }
 0x235   : > { %v3360_v58 = vpop.f32.mrb[118].mxu0  ;;  %v2279_v29 = vpop.f32.mrb[118].mxu1 }
 0x236   : > { %v2124_v35 = vadd.f32 %v3360_v58, %v5022_v38  ;;  %v2074_v33 = vpop.f32.mrb[119].mxu0  ;;  %v2361_v9 = vadd.f32 %v2279_v29, %v2118_v22  ;;  %v2281_v21 = vpop.f32.mrb[119].mxu1 }
 0x237   : > { %v2123_v0 = vadd.f32 %v2074_v33, %v5013_v32  ;;  %v2379_v25 = vadd.f32 %v2281_v21, %v4973_v41 }
 0x238   : > { %3023 = vst [vmem:[%s4797_s21 + $0x148] sm:$0xff] %v2361_v9 }
 0x239   : > { %v3363_v16 = vpop.f32.mrb[120].mxu0  ;;  %v2285_v44 = vpop.f32.mrb[120].mxu1 }
 0x23a   : > { %v5116_v30 = vadd.f32 %v3363_v16, %v5040_v37  ;;  %v2084_v53 = vpop.f32.mrb[121].mxu0  ;;  %v2362_v6 = vadd.f32 %v2285_v44, %v2119_v47  ;;  %v2287_v26 = vpop.f32.mrb[121].mxu1 }
 0x23b   : > { %v2125_v38 = vadd.f32 %v2084_v53, %v5031_v19  ;;  %v2380_v34 = vadd.f32 %v2287_v26, %v4982_v49 }
 0x23c   : > { %3024 = vst [vmem:[%s4797_s21 + $0x150] sm:$0xff] %v2362_v6 }
 0x23d   : > { %v3366_v15 = vpop.f32.mrb[122].mxu0  ;;  %v2291_v41 = vpop.f32.mrb[122].mxu1 }
 0x23e   : > { %v5122_v32 = vadd.f32 %v3366_v15, %v5058_v24  ;;  %v2094_v14 = vpop.f32.mrb[123].mxu0  ;;  %v2363_v7 = vadd.f32 %v2291_v41, %v2120_v1  ;;  %v2293_v22 = vpop.f32.mrb[123].mxu1 }
 0x23f   : > { %v5125_v37 = vadd.f32 %v2094_v14, %v5049_v3  ;;  %v2381_v17 = vadd.f32 %v2293_v22, %v4993_v48 }
 0x240   : > { %3025 = vst [vmem:[%s4797_s21 + $0x158] sm:$0xff] %v2363_v7 }
 0x241   : > { %v3369_v19 = vpop.f32.mrb[124].mxu0  ;;  %v2297_v45 = vpop.f32.mrb[124].mxu1 }
 0x242   : > { %v5130_v49 = vadd.f32 %v3369_v19, %v5076_v10  ;;  %v2104_v24 = vpop.f32.mrb[125].mxu0  ;;  %v2364_v28 = vadd.f32 %v2297_v45, %v2121_v57  ;;  %v2299_v59 = vpop.f32.mrb[125].mxu1 }
 0x243   : > { %v5133_v40 = vadd.f32 %v2104_v24, %v5067_v20  ;;  %v2382_v3 = vadd.f32 %v2299_v59, %v5002_v5 }
 0x244   : > { %3026 = vst [vmem:[%s4797_s21 + $0x160] sm:$0xff] %v2364_v28 }
 0x245   : > { %v3404_v56 = vpop.f32.mrb[126].mxu0  ;;  %v2303_v48 = vpop.f32.mrb[126].mxu1 }
 0x246   : > { %v2584_v1 = vadd.f32 %v3404_v56, %v5092_v11  ;;  %v2494_v61 = vpop.f32.mrb[127].mxu0  ;;  %v2365_v10 = vadd.f32 %v2303_v48, %v2122_v62  ;;  %v2305_v55 = vpop.f32.mrb[127].mxu1 }
 0x247   : > { %v2583_v42 = vadd.f32 %v2494_v61, %v5086_v63  ;;  %v2383_v20 = vadd.f32 %v2305_v55, %v5011_v36 }
 0x248   : > { %3037 = vst [vmem:[%s4797_s21 + $0x1b8] sm:$0xff] %v2584_v1  ;;  %3027 = vst [vmem:[%s4797_s21 + $0x168] sm:$0xff] %v2365_v10 }
 0x249   : > { %3036 = vst [vmem:[%s4797_s21 + $0x1b0] sm:$0xff] %v2583_v42  ;;  %v3407_v47 = vpop.f32.mrb[128].mxu0  ;;  %v2309_v5 = vpop.f32.mrb[128].mxu1 }
 0x24a   : > { %v2586_v39 = vadd.f32 %v3407_v47, %v2377_v8  ;;  %v2504_v52 = vpop.f32.mrb[129].mxu0  ;;  %v2366_v46 = vadd.f32 %v2309_v5, %v2123_v0  ;;  %v2311_v11 = vpop.f32.mrb[129].mxu1 }
 0x24b   : > { %v2585_v62 = vadd.f32 %v2504_v52, %v5098_v12  ;;  %v2384_v4 = vadd.f32 %v2311_v11, %v5020_v23 }
 0x24c   : > { %3039 = vst [vmem:[%s4797_s21 + $0x1c8] sm:$0xff] %v2586_v39  ;;  %3028 = vst [vmem:[%s4797_s21 + $0x170] sm:$0xff] %v2366_v46 }
 0x24d   : > { %3038 = vst [vmem:[%s4797_s21 + $0x1c0] sm:$0xff] %v2585_v62  ;;  %v3410_v63 = vpop.f32.mrb[130].mxu0  ;;  %v2315_v36 = vpop.f32.mrb[130].mxu1 }
 0x24e   : > { %v2588_v50 = vadd.f32 %v3410_v63, %v2379_v25  ;;  %v2514_v57 = vpop.f32.mrb[131].mxu0  ;;  %v2367_v31 = vadd.f32 %v2315_v36, %v2124_v35  ;;  %v2317_v8 = vpop.f32.mrb[131].mxu1 }
 0x24f   : > { %v2587_v58 = vadd.f32 %v2514_v57, %v5108_v2  ;;  %v2385_v29 = vadd.f32 %v2317_v8, %v5029_v18 }
 0x250   : > { %3041 = vst [vmem:[%s4797_s21 + $0x1d8] sm:$0xff] %v2588_v50  ;;  %3029 = vst [vmem:[%s4797_s21 + $0x178] sm:$0xff] %v2367_v31 }
 0x251   : > { %3040 = vst [vmem:[%s4797_s21 + $0x1d0] sm:$0xff] %v2587_v58  ;;  %v3413_v12 = vpop.f32.mrb[132].mxu0  ;;  %v2321_v23 = vpop.f32.mrb[132].mxu1 }
 0x252   : > { %v2590_v33 = vadd.f32 %v3413_v12, %v2381_v17  ;;  %v2524_v9 = vpop.f32.mrb[133].mxu0  ;;  %v2368_v0 = vadd.f32 %v2321_v23, %v2125_v38  ;;  %v2323_v21 = vpop.f32.mrb[133].mxu1 }
 0x253   : > { %v2589_v35 = vadd.f32 %v2524_v9, %v2380_v34  ;;  %v2386_v25 = vadd.f32 %v2323_v21, %v5038_v27 }
 0x254   : > { %3043 = vst [vmem:[%s4797_s21 + $0x1e8] sm:$0xff] %v2590_v33  ;;  %3030 = vst [vmem:[%s4797_s21 + $0x180] sm:$0xff] %v2368_v0 }
 0x255   : > { %3042 = vst [vmem:[%s4797_s21 + $0x1e0] sm:$0xff] %v2589_v35  ;;  %v3416_v2 = vpop.f32.mrb[134].mxu0  ;;  %v2327_v16 = vpop.f32.mrb[134].mxu1 }
 0x256   : > { %v2592_v18 = vadd.f32 %v3416_v2, %v2383_v20  ;;  %v2534_v44 = vpop.f32.mrb[135].mxu0  ;;  %v2369_v53 = vadd.f32 %v2327_v16, %v5116_v30  ;;  %v2329_v6 = vpop.f32.mrb[135].mxu1 }
 0x257   : > { %v2591_v38 = vadd.f32 %v2534_v44, %v2382_v3  ;;  %v2387_v26 = vadd.f32 %v2329_v6, %v5047_v13 }
 0x258   : > { %3045 = vst [vmem:[%s4797_s21 + $0x1f8] sm:$0xff] %v2592_v18  ;;  %3031 = vst [vmem:[%s4797_s21 + $0x188] sm:$0xff] %v2369_v53 }
 0x259   : > { %3044 = vst [vmem:[%s4797_s21 + $0x1f0] sm:$0xff] %v2591_v38  ;;  %v3419_v34 = vpop.f32.mrb[136].mxu0  ;;  %v2333_v27 = vpop.f32.mrb[136].mxu1 }
 0x25a   : > { %v2594_v15 = vadd.f32 %v3419_v34, %v2385_v29  ;;  %v2544_v41 = vpop.f32.mrb[137].mxu0  ;;  %v2370_v14 = vadd.f32 %v2333_v27, %v5125_v37  ;;  %v2335_v7 = vpop.f32.mrb[137].mxu1 }
 0x25b   : > { %v2593_v30 = vadd.f32 %v2544_v41, %v2384_v4  ;;  %v2388_v22 = vadd.f32 %v2335_v7, %v5056_v51 }
 0x25c   : > { %3047 = vst [vmem:[%s4797_s21 + $0x208] sm:$0xff] %v2594_v15  ;;  %3032 = vst [vmem:[%s4797_s21 + $0x190] sm:$0xff] %v2370_v14 }
 0x25d   : > { %3046 = vst [vmem:[%s4797_s21 + $0x200] sm:$0xff] %v2593_v30  ;;  %v3422_v17 = vpop.f32.mrb[138].mxu0  ;;  %v2339_v13 = vpop.f32.mrb[138].mxu1 }
 0x25e   : > { %v2596_v19 = vadd.f32 %v3422_v17, %v2387_v26  ;;  %v2554_v45 = vpop.f32.mrb[139].mxu0  ;;  %v2371_v24 = vadd.f32 %v2339_v13, %v5122_v32  ;;  %v2341_v28 = vpop.f32.mrb[139].mxu1 }
 0x25f   : > { %v2595_v37 = vadd.f32 %v2554_v45, %v2386_v25  ;;  %v2389_v59 = vadd.f32 %v2341_v28, %v5065_v43 }
 0x260   : > { %3049 = vst [vmem:[%s4797_s21 + $0x218] sm:$0xff] %v2596_v19  ;;  %3033 = vst [vmem:[%s4797_s21 + $0x198] sm:$0xff] %v2371_v24 }
 0x261   : > { %3048 = vst [vmem:[%s4797_s21 + $0x210] sm:$0xff] %v2595_v37  ;;  %v3425_v3 = vpop.f32.mrb[140].mxu0  ;;  %v2345_v51 = vpop.f32.mrb[140].mxu1 }
 0x262   : > { %v2598_v56 = vadd.f32 %v3425_v3, %v2389_v59  ;;  %v2564_v48 = vpop.f32.mrb[141].mxu0  ;;  %v2372_v1 = vadd.f32 %v2345_v51, %v5133_v40  ;;  %v2347_v61 = vpop.f32.mrb[141].mxu1 }
 0x263   : > { %v2597_v32 = vadd.f32 %v2564_v48, %v2388_v22  ;;  %v2390_v10 = vadd.f32 %v2347_v61, %v5074_v60 }
 0x264   : > { %3051 = vst [vmem:[%s4797_s21 + $0x228] sm:$0xff] %v2598_v56  ;;  %3034 = vst [vmem:[%s4797_s21 + $0x1a0] sm:$0xff] %v2372_v1 }
 0x265   : > { %3050 = vst [vmem:[%s4797_s21 + $0x220] sm:$0xff] %v2597_v32  ;;  %v3428_v43 = vpop.f32.mrb[142].mxu0  ;;  %v2351_v55 = vpop.f32.mrb[142].mxu1 }
 0x266   : > { %v2574_v42 = vpop.f32.mrb[143].mxu0  ;;  %v2373_v20 = vadd.f32 %v2351_v55, %v5130_v49  ;;  %v2353_v47 = vpop.f32.mrb[143].mxu1 }
 0x267   : > { %v2599_v5 = vadd.f32 %v2574_v42, %v2390_v10  ;;  %v2391_v39 = vadd.f32 %v2353_v47, %v5081_v54 }
 0x268   : > { %3035 = vst [vmem:[%s4797_s21 + $0x1a8] sm:$0xff] %v2373_v20 }
 0x269   : > { %3052 = vst [vmem:[%s4797_s21 + $0x230] sm:$0xff] %v2599_v5  ;;  %v2600_v40 = vadd.f32 %v3428_v43, %v2391_v39 }
 0x26b   : > { %3053 = vst [vmem:[%s4797_s21 + $0x238] sm:$0xff] %v2600_v40 }
 0x26c   : > { %s2684_s25 = smul.u32 18, %s3975_s15  ;;  %s2708_s28 = sshll.u32 %s4797_s21, 4  ;;  %s2709_s28 = int_to_ptr.vmem [resolvable:$true] %s2708_s28 }
 0x26d   : > { %s3751_s7 = smul.u32 144, %s3979_s16  ;;  %s3998_s23 = smov 2304  }
 0x26e   : > { %p5253_p2 = scmp.ne.s32.totalorder %s5245_s26, 0  ;;  %s3999_s22 = smov 4608  }
 0x26f   : > { %s2689_s29 = sadd.s32 %s3751_s7, %s2684_s25  ;;  %s4000_s6 = smov 18  }
 0x270   : > { %3760 = sst [smem:[#allocation9]] (%p5253_p2), %s3998_s23  ;;  %s3054_s18 = sshll.u32 %s2689_s29, 7 }
 0x271   : > { %3761 = sst [smem:[#allocation9 + $0x1]] (%p5253_p2), %s3999_s22  ;;  %s2691_s8 = scalar_lea.hbm %s5235_s3, %s3054_s18 }
 0x272   : > { %3762 = sst [smem:[#allocation9 + $0x2]] (%p5253_p2), %s4000_s6  ;;  %s4001_s15 = smov 128  }
 0x273   : > { %3763 = sst [smem:[#allocation9 + $0x3]] (%p5253_p2), %s4001_s15  ;;  %s4002_s16 = smov 8  }
 0x274   : > { %3764 = sst [smem:[#allocation9 + $0x4]] (%p5253_p2), %s4001_s15  ;;  %s4003_s9 = smov [#allocation8]  }
 0x275   : > { %3765 = sst [smem:[#allocation9 + $0x5]] (%p5253_p2), %s4002_s16  ;;  %s4004_s10 = smov 0  }
 0x276   : > { %3766 = dma.general (%p5253_p2), %s2709_s28, 9216, %s2691_s8, %s2677_s24, %s4003_s9, [#allocation9], %s4004_s10, 0  }
 0x277 PF: > { %p3783_p10 = scmp.ge.s32.totalorder %s3991_s19, 2  ;;  %s2736_s11 = sand.u32 1, %s3963_s12  }
 0x278   : > { %p5254_p12 = scmp.ne.s32.totalorder %s5247_s27, 0  ;;  %s2737_s20 = scalar_lea.sflag [#allocation4], %s2736_s11 }
 0x27a   : > { %p3776_p1 = pnand %p3783_p10, %p5254_p12 }
 0x27c   : > { %3958 = dma.done.wait (!%p3776_p1), %s2737_s20, 9216  }
 0x27d   : > { %3960 = vsyncadd (!%p3776_p1), %s2737_s20, 4294958080  ;;  %s18_s19 = sadd.s32 1, %s3991_s19   ;;  %s5255_s16 = sld [smem:[#allocation13_spill]] }
 0x27e   : > { %p15_p4 = scmp.ge.s32.totalorder %s18_s19, 6   ;;  %s5256_s26 = sld [smem:[#allocation14_spill]] }
 0x27f   : > { %s5257_s18 = sld [smem:[#allocation15_spill]]  ;;  %s5258_s12 = smov %s3967_s13 }
 0x280   : > { %s5259_s13 = smov %s3971_s14  ;;  %s5260_s14 = smov %s4104_s5 }
 0x281   : > { %s5261_s15 = smov %s3983_s17  ;;  %17 = sbr.rel (!%p15_p4) target bundleno = 7 (0x7), region = 93 }
 0x284   : > { %s5262_s17 = smov %s5256_s26 }
 0x288   :  { %2742 = vsyncpa [#allocation3], 1 }
 0x289   :  { %2744 = vsyncpa [#allocation3 + $0x1], 1 }
 0x28a   :  { %2745 = vsyncpa [#allocation6], 1 }
 0x28b   :  { %2746 = vsyncpa [#allocation4], 1 }
 0x28c   :  { %2748 = vsyncpa [#allocation4 + $0x1], 1 }

</bundles_post_ra>
